<compile_context>
chip_gen: v7x
topology: tpu7x:2x2x1
jax: 0.10.0
libtpu: 0.0.40
codegen_flags: <defaults>
</compile_context>

<pallas_src>
import jax
import jax.numpy as jnp
import numpy as np
from jax.experimental import pallas as pl
from jax.experimental.pallas import tpu as pltpu

BN_EPS = 1e-5


def _compiler_params():
    return pltpu.CompilerParams(
        dimension_semantics=("parallel",),
        vmem_limit_bytes=32 * 1024 * 1024,
    )


# ------------------ fused 1x1 conv + BN (low-res) + bilinear x2 + ReLU ------------------

def _upsample_kernel(x_ref, w_ref, scale_ref, shift_ref, o_ref, zpad_ref):
    # x_ref: (1, H*W, Cin) low-res pixels; o_ref: (1, 4, H, W, Cs) polyphase layout where
    # phase index 2*p + q holds output pixel (2m+p, 2j+q); zpad_ref: (H+2, W+2, Cs) f32.
    _, _, H, W, _ = o_ref.shape

    # 1x1 conv + folded BN at LOW resolution (commutes exactly with bilinear x2).
    z = jnp.dot(x_ref[0], w_ref[...], preferred_element_type=jnp.float32)
    z = z * scale_ref[...] + shift_ref[...]
    z = z.reshape(H, W, z.shape[-1])

    # Replicate-padded copy of z (edge clamp of align_corners=False bilinear).
    zpad_ref[1:H + 1, 1:W + 1, :] = z
    zpad_ref[0:1, 1:W + 1, :] = z[0:1]
    zpad_ref[H + 1:H + 2, 1:W + 1, :] = z[H - 1:H]
    zpad_ref[:, 0:1, :] = zpad_ref[:, 1:2, :]
    zpad_ref[:, W + 1:W + 2, :] = zpad_ref[:, W:W + 1, :]

    def tap(dy, dx):  # clamped low-res neighbor at offset (dy-1, dx-1), shape (H, W, Cs)
        return zpad_ref[dy:dy + H, dx:dx + W, :]

    # x2 bilinear, align_corners=False: even outputs mix (prev, cur) with (0.25, 0.75),
    # odd outputs mix (cur, next) with (0.75, 0.25); separable in rows and columns.
    for p in (0, 1):
        if p == 0:
            rows = [0.25 * tap(0, dx) + 0.75 * tap(1, dx) for dx in range(3)]
        else:
            rows = [0.75 * tap(1, dx) + 0.25 * tap(2, dx) for dx in range(3)]
        u_even = 0.25 * rows[0] + 0.75 * rows[1]
        u_odd = 0.75 * rows[1] + 0.25 * rows[2]
        o_ref[0, 2 * p + 0] = jnp.maximum(u_even, 0.0).astype(o_ref.dtype)
        o_ref[0, 2 * p + 1] = jnp.maximum(u_odd, 0.0).astype(o_ref.dtype)


def upsample_conv1x1_bn_relu(x_nhwc, w, scale, shift, compute_dtype):
    """InterpConv: bilinear x2 -> 1x1 conv -> BN -> ReLU (conv/BN commuted to low res)."""
    N, H, W, Cin = x_nhwc.shape
    Cs = w.shape[1]
    assert W % 8 == 0, "W must be a multiple of 8 for clean in-kernel reshapes"
    x_flat = x_nhwc.reshape(N, H * W, Cin).astype(compute_dtype)
    out = pl.pallas_call(
        _upsample_kernel,
        out_shape=jax.ShapeDtypeStruct((N, 4, H, W, Cs), compute_dtype),
        grid_spec=pltpu.PrefetchScalarGridSpec(
            num_scalar_prefetch=0,
            grid=(N,),
            in_specs=[
                pl.BlockSpec((1, H * W, Cin), lambda n: (n, 0, 0)),
                pl.BlockSpec((Cin, Cs), lambda n: (0, 0)),
                pl.BlockSpec((1, Cs), lambda n: (0, 0)),
                pl.BlockSpec((1, Cs), lambda n: (0, 0)),
            ],
            out_specs=pl.BlockSpec((1, 4, H, W, Cs), lambda n: (n, 0, 0, 0, 0)),
            scratch_shapes=[pltpu.VMEM((H + 2, W + 2, Cs), jnp.float32)],
        ),
        compiler_params=_compiler_params(),
    )(x_flat, w.astype(compute_dtype), scale, shift)
    # polyphase (N, 2p+q, m, j, C) -> NHWC (N, 2m+p, 2j+q, C): pure layout plumbing.
    # TODO(synk): fold this interleave into the consumer conv kernel (strided stores or
    # polyphase taps) to save one small HBM round-trip of `up`.
    up = out.reshape(N, 2, 2, H, W, Cs).transpose(0, 3, 1, 4, 2, 5)
    return up.reshape(N, 2 * H, 2 * W, Cs)


# ---------------------- 3x3 conv (+ folded BN + ReLU), in-kernel taps -------------------

def _make_conv3x3_kernel(n_inputs, Hout, Wout):
    def kernel(*refs):
        x_refs = refs[:n_inputs]
        w_refs = refs[n_inputs:2 * n_inputs]
        scale_ref, shift_ref, o_ref = refs[2 * n_inputs:2 * n_inputs + 3]
        Cout = o_ref.shape[-1]
        acc = jnp.zeros((Hout * Wout, Cout), jnp.float32)
        # 9 shifted matmuls per input (18 for the skip+up pair), accumulated in f32.
        # Equivalent to conv3x3(concat(inputs, channels)) with the weight split along K.
        for x_ref, w_ref in zip(x_refs, w_refs):
            Cin = x_ref.shape[-1]
            for dy in range(3):
                for dx in range(3):
                    patch = x_ref[0, dy:dy + Hout, dx:dx + Wout, :]
                    acc = acc + jnp.dot(patch.reshape(Hout * Wout, Cin),
                                        w_ref[3 * dy + dx],
                                        preferred_element_type=jnp.float32)
        y = acc * scale_ref[...] + shift_ref[...]
        y = jnp.maximum(y, 0.0)
        o_ref[0] = y.reshape(Hout, Wout, Cout).astype(o_ref.dtype)
    return kernel


def conv3x3_bn_relu(inputs, weights, scale, shift, out_dtype, compute_dtype):
    """3x3 / stride 1 / pad 1 conv over the (virtual) channel-concat of `inputs`,
    folded BN + ReLU. weights[i]: (9, Cin_i, Cout); the concat is never materialized."""
    N, Hout, Wout, _ = inputs[0].shape
    Cout = weights[0].shape[-1]
    assert Wout % 8 == 0, "W must be a multiple of 8 for clean in-kernel reshapes"
    n_in = len(inputs)
    args, in_specs = [], []
    for a in inputs:
        Ci = a.shape[-1]
        args.append(jnp.pad(a.astype(compute_dtype), ((0, 0), (1, 1), (1, 1), (0, 0))))
        in_specs.append(pl.BlockSpec((1, Hout + 2, Wout + 2, Ci), lambda n: (n, 0, 0, 0)))
    for w in weights:
        Ci = w.shape[1]
        args.append(w.astype(compute_dtype))
        in_specs.append(pl.BlockSpec((9, Ci, Cout), lambda n: (0, 0, 0)))
    args += [scale, shift]
    in_specs += [pl.BlockSpec((1, Cout), lambda n: (0, 0)),
                 pl.BlockSpec((1, Cout), lambda n: (0, 0))]
    # TODO(synk): for large feature maps / wide channels, add row-block (1-row halo) and
    # Cout/K grid axes instead of one whole-image block per batch element.
    return pl.pallas_call(
        _make_conv3x3_kernel(n_in, Hout, Wout),
        out_shape=jax.ShapeDtypeStruct((N, Hout, Wout, Cout), out_dtype),
        grid_spec=pltpu.PrefetchScalarGridSpec(
            num_scalar_prefetch=0,
            grid=(N,),
            in_specs=in_specs,
            out_specs=pl.BlockSpec((1, Hout, Wout, Cout), lambda n: (n, 0, 0, 0)),
        ),
        compiler_params=_compiler_params(),
    )(*args)


# --------------------------------------- forward ----------------------------------------

def init_params(key, in_channels, skip_channels, out_channels):
    ks = jax.random.split(key, 6)

    def bn(k, c):
        k1, k2, k3, k4 = jax.random.split(k, 4)
        gamma = 1.0 + 0.1 * jax.random.normal(k1, (c,), jnp.float32)
        beta = 0.1 * jax.random.normal(k2, (c,), jnp.float32)
        mean = 0.1 * jax.random.normal(k3, (c,), jnp.float32)
        var = 1.0 + 0.1 * jax.random.uniform(k4, (c,), jnp.float32)
        scale = gamma / jnp.sqrt(var + BN_EPS)
        shift = beta - mean * scale
        return scale.reshape(1, c), shift.reshape(1, c)

    p = {}
    p['w_up'] = 0.2 * jax.random.normal(ks[0], (in_channels, skip_channels), jnp.float32)
    p['bn_up'] = bn(ks[1], skip_channels)
    p['w_c1'] = 0.2 * jax.random.normal(ks[2], (3, 3, 2 * skip_channels, out_channels),
                                        jnp.float32)
    p['bn_c1'] = bn(ks[3], out_channels)
    p['w_c2'] = 0.2 * jax.random.normal(ks[4], (3, 3, out_channels, out_channels),
                                        jnp.float32)
    p['bn_c2'] = bn(ks[5], out_channels)
    return p


def _upconv_block_forward(skip_nchw, x_nchw, p, compute_dtype=jnp.bfloat16):
    skip = jnp.transpose(skip_nchw, (0, 2, 3, 1))
    x = jnp.transpose(x_nchw, (0, 2, 3, 1))
    Cs = p['w_up'].shape[1]
    Cout = p['w_c1'].shape[-1]

    up = upsample_conv1x1_bn_relu(x, p['w_up'], *p['bn_up'], compute_dtype=compute_dtype)

    # First conv of conv_block over cat([skip, up], dim=channels) without materializing
    # the concat: split w_c1 along its input-channel (K) axis.
    w1_skip = p['w_c1'][:, :, :Cs, :].reshape(9, Cs, Cout)
    w1_up = p['w_c1'][:, :, Cs:, :].reshape(9, Cs, Cout)
    h = conv3x3_bn_relu([skip, up], [w1_skip, w1_up], *p['bn_c1'],
                        out_dtype=compute_dtype, compute_dtype=compute_dtype)

    w2 = p['w_c2'].reshape(9, Cout, Cout)
    h = conv3x3_bn_relu([h], [w2], *p['bn_c2'],
                        out_dtype=jnp.float32, compute_dtype=compute_dtype)
    return jnp.transpose(h, (0, 3, 1, 2))


upconv_block_forward = jax.jit(_upconv_block_forward, static_argnames=("compute_dtype",))


# ------------------------------------ pure-JAX reference --------------------------------

def _bilinear_x2_taps(size):
    # PyTorch bilinear, align_corners=False, scale_factor=2
    o = jnp.arange(2 * size, dtype=jnp.float32)
    src = (o + 0.5) / 2.0 - 0.5
    i0f = jnp.floor(src)
    frac = src - i0f
    i0 = jnp.clip(i0f, 0, size - 1).astype(jnp.int32)
    i1 = jnp.clip(i0f + 1, 0, size - 1).astype(jnp.int32)
    return i0, i1, frac


def _ref_bilinear_x2(x_nhwc):
    N, H, W, C = x_nhwc.shape
    y0, y1, fy = _bilinear_x2_taps(H)
    x0, x1, fx = _bilinear_x2_taps(W)
    rows = ((1 - fy)[None, :, None, None] * jnp.take(x_nhwc, y0, axis=1)
            + fy[None, :, None, None] * jnp.take(x_nhwc, y1, axis=1))
    out = ((1 - fx)[None, None, :, None] * jnp.take(rows, x0, axis=2)
           + fx[None, None, :, None] * jnp.take(rows, x1, axis=2))
    return out


def _ref_forward(skip_nchw, x_nchw, p):
    skip = jnp.transpose(skip_nchw, (0, 2, 3, 1))
    x = jnp.transpose(x_nchw, (0, 2, 3, 1))
    up = _ref_bilinear_x2(x)
    up = jnp.maximum(jnp.einsum('nhwc,cd->nhwd', up, p['w_up']) * p['bn_up'][0]
                     + p['bn_up'][1], 0.0)
    cat = jnp.concatenate([skip, up], axis=-1)

    def conv(inp, w, scale, shift):
        y = jax.lax.conv_general_dilated(inp, w, window_strides=(1, 1), padding='SAME',
                                         dimension_numbers=('NHWC', 'HWIO', 'NHWC'))
        return jnp.maximum(y * scale + shift, 0.0)

    h = conv(cat, p['w_c1'], *p['bn_c1'])
    h = conv(h, p['w_c2'], *p['bn_c2'])
    return jnp.transpose(h, (0, 3, 1, 2))


if __name__ == "__main__":
    key = jax.random.PRNGKey(0)
    k_skip, k_x, k_p = jax.random.split(key, 3)

    N, in_channels, skip_channels, out_channels = 2, 8, 4, 8
    H = W = 8  # high-level (low-res) feature map; skip is 2H x 2W

    x = jax.random.normal(k_x, (N, in_channels, H, W), jnp.float32)               # NCHW
    skip = jax.random.normal(k_skip, (N, skip_channels, 2 * H, 2 * W), jnp.float32)
    params = init_params(k_p, in_channels, skip_channels, out_channels)

    ref = jax.block_until_ready(_ref_forward(skip, x, params))

    # float32 mode: tight check against the XLA reference.
    out_f32 = jax.block_until_ready(
        upconv_block_forward(skip, x, params, compute_dtype=jnp.float32))
    assert out_f32.shape == (N, out_channels, 2 * H, 2 * W)
    np.testing.assert_allclose(np.asarray(out_f32), np.asarray(ref), rtol=1e-3, atol=1e-3)

    # bf16 operands / f32 accumulation (recommended production config): looser tolerance.
    out_bf16 = jax.block_until_ready(
        upconv_block_forward(skip, x, params, compute_dtype=jnp.bfloat16))
    assert out_bf16.shape == (N, out_channels, 2 * H, 2 * W)
    np.testing.assert_allclose(np.asarray(out_bf16), np.asarray(ref), rtol=5e-2, atol=1e-1)

    print("KERNEL_OK")
</pallas_src>

<mosaic_0001>
module attributes {stable_mosaic.version = 11 : i64} {
  func.func @_upsample_kernel(%arg0: i32, %arg1: memref<1x64x8xf32, #tpu.memory_space<vmem>>, %arg2: memref<8x4xf32, #tpu.memory_space<vmem>>, %arg3: memref<1x4xf32, #tpu.memory_space<vmem>>, %arg4: memref<1x4xf32, #tpu.memory_space<vmem>>, %arg5: memref<1x4x8x8x4xf32, #tpu.memory_space<vmem>>, %arg6: memref<10x10x4xf32, #tpu.memory_space<vmem>>) attributes {dimension_semantics = [#tpu.dimension_semantics<parallel>], iteration_bounds = array<i64: 2>, scalar_prefetch = 0 : i64, scratch_operands = 1 : i64, tpu.core_type = #tpu.core_type<tc>, window_params = [{transform_indices = @transform_0, window_bounds = array<i64: 1, 64, 8>}, {pipeline_mode = #tpu.pipeline_mode<synchronous>, transform_indices = @transform_1, window_bounds = array<i64: 8, 4>}, {pipeline_mode = #tpu.pipeline_mode<synchronous>, transform_indices = @transform_2, window_bounds = array<i64: 1, 4>}, {pipeline_mode = #tpu.pipeline_mode<synchronous>, transform_indices = @transform_3, window_bounds = array<i64: 1, 4>}, {transform_indices = @transform_4, window_bounds = array<i64: 1, 4, 8, 8, 4>}]} {
    %c0 = arith.constant 0 : index
    %c0_0 = arith.constant 0 : index
    %c0_1 = arith.constant 0 : index
    %0 = vector.load %arg1[%c0, %c0_0, %c0_1] : memref<1x64x8xf32, #tpu.memory_space<vmem>>, vector<1x64x8xf32>
    %1 = vector.shape_cast %0 : vector<1x64x8xf32> to vector<64x8xf32>
    %c0_2 = arith.constant 0 : index
    %c0_3 = arith.constant 0 : index
    %2 = vector.load %arg2[%c0_2, %c0_3] : memref<8x4xf32, #tpu.memory_space<vmem>>, vector<8x4xf32>
    %cst = arith.constant dense<0.000000e+00> : vector<64x4xf32>
    %3 = tpu.matmul %1, %2, %cst {dimension_numbers = #tpu.dot_dimension_numbers<[1], [0], [0], [1], [0, 0, 1, 1], [], []>} : vector<64x8xf32>, vector<8x4xf32>, vector<64x4xf32> -> vector<64x4xf32>
    %c0_4 = arith.constant 0 : index
    %c0_5 = arith.constant 0 : index
    %4 = vector.load %arg3[%c0_4, %c0_5] : memref<1x4xf32, #tpu.memory_space<vmem>>, vector<1x4xf32>
    %5 = vector.broadcast %4 : vector<1x4xf32> to vector<64x4xf32>
    %6 = arith.mulf %3, %5 : vector<64x4xf32>
    %c0_6 = arith.constant 0 : index
    %c0_7 = arith.constant 0 : index
    %7 = vector.load %arg4[%c0_6, %c0_7] : memref<1x4xf32, #tpu.memory_space<vmem>>, vector<1x4xf32>
    %8 = vector.broadcast %7 : vector<1x4xf32> to vector<64x4xf32>
    %9 = arith.addf %6, %8 : vector<64x4xf32>
    %10 = vector.shape_cast %9 : vector<64x4xf32> to vector<8x8x4xf32>
    %c1 = arith.constant 1 : index
    %c1_8 = arith.constant 1 : index
    %c0_9 = arith.constant 0 : index
    %11 = vector.load %arg6[%c1, %c1_8, %c0_9] : memref<10x10x4xf32, #tpu.memory_space<vmem>>, vector<8x8x4xf32>
    tpu.vector_store %arg6[%c1, %c1_8, %c0_9], %10 {strides = array<i32>} : memref<10x10x4xf32, #tpu.memory_space<vmem>>, vector<8x8x4xf32>,
    %12 = vector.extract_strided_slice %10 {offsets = [0, 0, 0], sizes = [1, 8, 4], strides = [1, 1, 1]} : vector<8x8x4xf32> to vector<1x8x4xf32>
    %c0_10 = arith.constant 0 : index
    %c1_11 = arith.constant 1 : index
    %c0_12 = arith.constant 0 : index
    %13 = vector.load %arg6[%c0_10, %c1_11, %c0_12] : memref<10x10x4xf32, #tpu.memory_space<vmem>>, vector<1x8x4xf32>
    tpu.vector_store %arg6[%c0_10, %c1_11, %c0_12], %12 {strides = array<i32>} : memref<10x10x4xf32, #tpu.memory_space<vmem>>, vector<1x8x4xf32>,
    %14 = vector.extract_strided_slice %10 {offsets = [7, 0, 0], sizes = [1, 8, 4], strides = [1, 1, 1]} : vector<8x8x4xf32> to vector<1x8x4xf32>
    %c9 = arith.constant 9 : index
    %c1_13 = arith.constant 1 : index
    %c0_14 = arith.constant 0 : index
    %15 = vector.load %arg6[%c9, %c1_13, %c0_14] : memref<10x10x4xf32, #tpu.memory_space<vmem>>, vector<1x8x4xf32>
    tpu.vector_store %arg6[%c9, %c1_13, %c0_14], %14 {strides = array<i32>} : memref<10x10x4xf32, #tpu.memory_space<vmem>>, vector<1x8x4xf32>,
    %c0_15 = arith.constant 0 : index
    %c1_16 = arith.constant 1 : index
    %c0_17 = arith.constant 0 : index
    %16 = vector.load %arg6[%c0_15, %c1_16, %c0_17] : memref<10x10x4xf32, #tpu.memory_space<vmem>>, vector<10x1x4xf32>
    %c0_18 = arith.constant 0 : index
    %c0_19 = arith.constant 0 : index
    %c0_20 = arith.constant 0 : index
    %17 = vector.load %arg6[%c0_18, %c0_19, %c0_20] : memref<10x10x4xf32, #tpu.memory_space<vmem>>, vector<10x1x4xf32>
    tpu.vector_store %arg6[%c0_18, %c0_19, %c0_20], %16 {strides = array<i32>} : memref<10x10x4xf32, #tpu.memory_space<vmem>>, vector<10x1x4xf32>,
    %c0_21 = arith.constant 0 : index
    %c8 = arith.constant 8 : index
    %c0_22 = arith.constant 0 : index
    %18 = vector.load %arg6[%c0_21, %c8, %c0_22] : memref<10x10x4xf32, #tpu.memory_space<vmem>>, vector<10x1x4xf32>
    %c0_23 = arith.constant 0 : index
    %c9_24 = arith.constant 9 : index
    %c0_25 = arith.constant 0 : index
    %19 = vector.load %arg6[%c0_23, %c9_24, %c0_25] : memref<10x10x4xf32, #tpu.memory_space<vmem>>, vector<10x1x4xf32>
    tpu.vector_store %arg6[%c0_23, %c9_24, %c0_25], %18 {strides = array<i32>} : memref<10x10x4xf32, #tpu.memory_space<vmem>>, vector<10x1x4xf32>,
    %c0_26 = arith.constant 0 : index
    %c0_27 = arith.constant 0 : index
    %c0_28 = arith.constant 0 : index
    %20 = vector.load %arg6[%c0_26, %c0_27, %c0_28] : memref<10x10x4xf32, #tpu.memory_space<vmem>>, vector<8x8x4xf32>
    %cst_29 = arith.constant 2.500000e-01 : f32
    %21 = vector.broadcast %cst_29 : f32 to vector<8x8x4xf32>
    %22 = arith.mulf %21, %20 : vector<8x8x4xf32>
    %c1_30 = arith.constant 1 : index
    %c0_31 = arith.constant 0 : index
    %c0_32 = arith.constant 0 : index
    %23 = vector.load %arg6[%c1_30, %c0_31, %c0_32] : memref<10x10x4xf32, #tpu.memory_space<vmem>>, vector<8x8x4xf32>
    %cst_33 = arith.constant 7.500000e-01 : f32
    %24 = vector.broadcast %cst_33 : f32 to vector<8x8x4xf32>
    %25 = arith.mulf %24, %23 : vector<8x8x4xf32>
    %26 = arith.addf %22, %25 : vector<8x8x4xf32>
    %c0_34 = arith.constant 0 : index
    %c1_35 = arith.constant 1 : index
    %c0_36 = arith.constant 0 : index
    %27 = vector.load %arg6[%c0_34, %c1_35, %c0_36] : memref<10x10x4xf32, #tpu.memory_space<vmem>>, vector<8x8x4xf32>
    %cst_37 = arith.constant 2.500000e-01 : f32
    %28 = vector.broadcast %cst_37 : f32 to vector<8x8x4xf32>
    %29 = arith.mulf %28, %27 : vector<8x8x4xf32>
    %c1_38 = arith.constant 1 : index
    %c1_39 = arith.constant 1 : index
    %c0_40 = arith.constant 0 : index
    %30 = vector.load %arg6[%c1_38, %c1_39, %c0_40] : memref<10x10x4xf32, #tpu.memory_space<vmem>>, vector<8x8x4xf32>
    %cst_41 = arith.constant 7.500000e-01 : f32
    %31 = vector.broadcast %cst_41 : f32 to vector<8x8x4xf32>
    %32 = arith.mulf %31, %30 : vector<8x8x4xf32>
    %33 = arith.addf %29, %32 : vector<8x8x4xf32>
    %c0_42 = arith.constant 0 : index
    %c2 = arith.constant 2 : index
    %c0_43 = arith.constant 0 : index
    %34 = vector.load %arg6[%c0_42, %c2, %c0_43] : memref<10x10x4xf32, #tpu.memory_space<vmem>>, vector<8x8x4xf32>
    %cst_44 = arith.constant 2.500000e-01 : f32
    %35 = vector.broadcast %cst_44 : f32 to vector<8x8x4xf32>
    %36 = arith.mulf %35, %34 : vector<8x8x4xf32>
    %c1_45 = arith.constant 1 : index
    %c2_46 = arith.constant 2 : index
    %c0_47 = arith.constant 0 : index
    %37 = vector.load %arg6[%c1_45, %c2_46, %c0_47] : memref<10x10x4xf32, #tpu.memory_space<vmem>>, vector<8x8x4xf32>
    %cst_48 = arith.constant 7.500000e-01 : f32
    %38 = vector.broadcast %cst_48 : f32 to vector<8x8x4xf32>
    %39 = arith.mulf %38, %37 : vector<8x8x4xf32>
    %40 = arith.addf %36, %39 : vector<8x8x4xf32>
    %cst_49 = arith.constant 2.500000e-01 : f32
    %41 = vector.broadcast %cst_49 : f32 to vector<8x8x4xf32>
    %42 = arith.mulf %41, %26 : vector<8x8x4xf32>
    %cst_50 = arith.constant 7.500000e-01 : f32
    %43 = vector.broadcast %cst_50 : f32 to vector<8x8x4xf32>
    %44 = arith.mulf %43, %33 : vector<8x8x4xf32>
    %45 = arith.addf %42, %44 : vector<8x8x4xf32>
    %cst_51 = arith.constant 7.500000e-01 : f32
    %46 = vector.broadcast %cst_51 : f32 to vector<8x8x4xf32>
    %47 = arith.mulf %46, %33 : vector<8x8x4xf32>
    %cst_52 = arith.constant 2.500000e-01 : f32
    %48 = vector.broadcast %cst_52 : f32 to vector<8x8x4xf32>
    %49 = arith.mulf %48, %40 : vector<8x8x4xf32>
    %50 = arith.addf %47, %49 : vector<8x8x4xf32>
    %cst_53 = arith.constant 0.000000e+00 : f32
    %51 = vector.broadcast %cst_53 : f32 to vector<8x8x4xf32>
    %52 = arith.maximumf %45, %51 : vector<8x8x4xf32>
    %c0_54 = arith.constant 0 : index
    %c0_55 = arith.constant 0 : index
    %c0_56 = arith.constant 0 : index
    %c0_57 = arith.constant 0 : index
    %c0_58 = arith.constant 0 : index
    %53 = vector.load %arg5[%c0_54, %c0_55, %c0_56, %c0_57, %c0_58] : memref<1x4x8x8x4xf32, #tpu.memory_space<vmem>>, vector<1x1x8x8x4xf32>
    %54 = vector.shape_cast %53 : vector<1x1x8x8x4xf32> to vector<8x8x4xf32>
    %55 = vector.shape_cast %52 : vector<8x8x4xf32> to vector<1x1x8x8x4xf32>
    tpu.vector_store %arg5[%c0_54, %c0_55, %c0_56, %c0_57, %c0_58], %55 {strides = array<i32>} : memref<1x4x8x8x4xf32, #tpu.memory_space<vmem>>, vector<1x1x8x8x4xf32>,
    %cst_59 = arith.constant 0.000000e+00 : f32
    %56 = vector.broadcast %cst_59 : f32 to vector<8x8x4xf32>
    %57 = arith.maximumf %50, %56 : vector<8x8x4xf32>
    %c0_60 = arith.constant 0 : index
    %c1_61 = arith.constant 1 : index
    %c0_62 = arith.constant 0 : index
    %c0_63 = arith.constant 0 : index
    %c0_64 = arith.constant 0 : index
    %58 = vector.load %arg5[%c0_60, %c1_61, %c0_62, %c0_63, %c0_64] : memref<1x4x8x8x4xf32, #tpu.memory_space<vmem>>, vector<1x1x8x8x4xf32>
    %59 = vector.shape_cast %58 : vector<1x1x8x8x4xf32> to vector<8x8x4xf32>
    %60 = vector.shape_cast %57 : vector<8x8x4xf32> to vector<1x1x8x8x4xf32>
    tpu.vector_store %arg5[%c0_60, %c1_61, %c0_62, %c0_63, %c0_64], %60 {strides = array<i32>} : memref<1x4x8x8x4xf32, #tpu.memory_space<vmem>>, vector<1x1x8x8x4xf32>,
    %c1_65 = arith.constant 1 : index
    %c0_66 = arith.constant 0 : index
    %c0_67 = arith.constant 0 : index
    %61 = vector.load %arg6[%c1_65, %c0_66, %c0_67] : memref<10x10x4xf32, #tpu.memory_space<vmem>>, vector<8x8x4xf32>
    %cst_68 = arith.constant 7.500000e-01 : f32
    %62 = vector.broadcast %cst_68 : f32 to vector<8x8x4xf32>
    %63 = arith.mulf %62, %61 : vector<8x8x4xf32>
    %c2_69 = arith.constant 2 : index
    %c0_70 = arith.constant 0 : index
    %c0_71 = arith.constant 0 : index
    %64 = vector.load %arg6[%c2_69, %c0_70, %c0_71] : memref<10x10x4xf32, #tpu.memory_space<vmem>>, vector<8x8x4xf32>
    %cst_72 = arith.constant 2.500000e-01 : f32
    %65 = vector.broadcast %cst_72 : f32 to vector<8x8x4xf32>
    %66 = arith.mulf %65, %64 : vector<8x8x4xf32>
    %67 = arith.addf %63, %66 : vector<8x8x4xf32>
    %c1_73 = arith.constant 1 : index
    %c1_74 = arith.constant 1 : index
    %c0_75 = arith.constant 0 : index
    %68 = vector.load %arg6[%c1_73, %c1_74, %c0_75] : memref<10x10x4xf32, #tpu.memory_space<vmem>>, vector<8x8x4xf32>
    %cst_76 = arith.constant 7.500000e-01 : f32
    %69 = vector.broadcast %cst_76 : f32 to vector<8x8x4xf32>
    %70 = arith.mulf %69, %68 : vector<8x8x4xf32>
    %c2_77 = arith.constant 2 : index
    %c1_78 = arith.constant 1 : index
    %c0_79 = arith.constant 0 : index
    %71 = vector.load %arg6[%c2_77, %c1_78, %c0_79] : memref<10x10x4xf32, #tpu.memory_space<vmem>>, vector<8x8x4xf32>
    %cst_80 = arith.constant 2.500000e-01 : f32
    %72 = vector.broadcast %cst_80 : f32 to vector<8x8x4xf32>
    %73 = arith.mulf %72, %71 : vector<8x8x4xf32>
    %74 = arith.addf %70, %73 : vector<8x8x4xf32>
    %c1_81 = arith.constant 1 : index
    %c2_82 = arith.constant 2 : index
    %c0_83 = arith.constant 0 : index
    %75 = vector.load %arg6[%c1_81, %c2_82, %c0_83] : memref<10x10x4xf32, #tpu.memory_space<vmem>>, vector<8x8x4xf32>
    %cst_84 = arith.constant 7.500000e-01 : f32
    %76 = vector.broadcast %cst_84 : f32 to vector<8x8x4xf32>
    %77 = arith.mulf %76, %75 : vector<8x8x4xf32>
    %c2_85 = arith.constant 2 : index
    %c2_86 = arith.constant 2 : index
    %c0_87 = arith.constant 0 : index
    %78 = vector.load %arg6[%c2_85, %c2_86, %c0_87] : memref<10x10x4xf32, #tpu.memory_space<vmem>>, vector<8x8x4xf32>
    %cst_88 = arith.constant 2.500000e-01 : f32
    %79 = vector.broadcast %cst_88 : f32 to vector<8x8x4xf32>
    %80 = arith.mulf %79, %78 : vector<8x8x4xf32>
    %81 = arith.addf %77, %80 : vector<8x8x4xf32>
    %cst_89 = arith.constant 2.500000e-01 : f32
    %82 = vector.broadcast %cst_89 : f32 to vector<8x8x4xf32>
    %83 = arith.mulf %82, %67 : vector<8x8x4xf32>
    %cst_90 = arith.constant 7.500000e-01 : f32
    %84 = vector.broadcast %cst_90 : f32 to vector<8x8x4xf32>
    %85 = arith.mulf %84, %74 : vector<8x8x4xf32>
    %86 = arith.addf %83, %85 : vector<8x8x4xf32>
    %cst_91 = arith.constant 7.500000e-01 : f32
    %87 = vector.broadcast %cst_91 : f32 to vector<8x8x4xf32>
    %88 = arith.mulf %87, %74 : vector<8x8x4xf32>
    %cst_92 = arith.constant 2.500000e-01 : f32
    %89 = vector.broadcast %cst_92 : f32 to vector<8x8x4xf32>
    %90 = arith.mulf %89, %81 : vector<8x8x4xf32>
    %91 = arith.addf %88, %90 : vector<8x8x4xf32>
    %cst_93 = arith.constant 0.000000e+00 : f32
    %92 = vector.broadcast %cst_93 : f32 to vector<8x8x4xf32>
    %93 = arith.maximumf %86, %92 : vector<8x8x4xf32>
    %c0_94 = arith.constant 0 : index
    %c2_95 = arith.constant 2 : index
    %c0_96 = arith.constant 0 : index
    %c0_97 = arith.constant 0 : index
    %c0_98 = arith.constant 0 : index
    %94 = vector.load %arg5[%c0_94, %c2_95, %c0_96, %c0_97, %c0_98] : memref<1x4x8x8x4xf32, #tpu.memory_space<vmem>>, vector<1x1x8x8x4xf32>
    %95 = vector.shape_cast %94 : vector<1x1x8x8x4xf32> to vector<8x8x4xf32>
    %96 = vector.shape_cast %93 : vector<8x8x4xf32> to vector<1x1x8x8x4xf32>
    tpu.vector_store %arg5[%c0_94, %c2_95, %c0_96, %c0_97, %c0_98], %96 {strides = array<i32>} : memref<1x4x8x8x4xf32, #tpu.memory_space<vmem>>, vector<1x1x8x8x4xf32>,
    %cst_99 = arith.constant 0.000000e+00 : f32
    %97 = vector.broadcast %cst_99 : f32 to vector<8x8x4xf32>
    %98 = arith.maximumf %91, %97 : vector<8x8x4xf32>
    %c0_100 = arith.constant 0 : index
    %c3 = arith.constant 3 : index
    %c0_101 = arith.constant 0 : index
    %c0_102 = arith.constant 0 : index
    %c0_103 = arith.constant 0 : index
    %99 = vector.load %arg5[%c0_100, %c3, %c0_101, %c0_102, %c0_103] : memref<1x4x8x8x4xf32, #tpu.memory_space<vmem>>, vector<1x1x8x8x4xf32>
    %100 = vector.shape_cast %99 : vector<1x1x8x8x4xf32> to vector<8x8x4xf32>
    %101 = vector.shape_cast %98 : vector<8x8x4xf32> to vector<1x1x8x8x4xf32>
    tpu.vector_store %arg5[%c0_100, %c3, %c0_101, %c0_102, %c0_103], %101 {strides = array<i32>} : memref<1x4x8x8x4xf32, #tpu.memory_space<vmem>>, vector<1x1x8x8x4xf32>,
    return
  }
  func.func @transform_0(%arg0: i32) -> (i32, i32, i32) {
    %c0_i32 = arith.constant 0 : i32
    %c0_i32_0 = arith.constant 0 : i32
    %c0_i32_1 = arith.constant 0 : i32
    return %arg0, %c0_i32, %c0_i32_0 : i32, i32, i32
  }
  func.func @transform_1(%arg0: i32) -> (i32, i32) {
    %c0_i32 = arith.constant 0 : i32
    %c0_i32_0 = arith.constant 0 : i32
    %c0_i32_1 = arith.constant 0 : i32
    return %c0_i32, %c0_i32_0 : i32, i32
  }
  func.func @transform_2(%arg0: i32) -> (i32, i32) {
    %c0_i32 = arith.constant 0 : i32
    %c0_i32_0 = arith.constant 0 : i32
    %c0_i32_1 = arith.constant 0 : i32
    return %c0_i32, %c0_i32_0 : i32, i32
  }
  func.func @transform_3(%arg0: i32) -> (i32, i32) {
    %c0_i32 = arith.constant 0 : i32
    %c0_i32_0 = arith.constant 0 : i32
    %c0_i32_1 = arith.constant 0 : i32
    return %c0_i32, %c0_i32_0 : i32, i32
  }
  func.func @transform_4(%arg0: i32) -> (i32, i32, i32, i32, i32) {
    %c0_i32 = arith.constant 0 : i32
    %c0_i32_0 = arith.constant 0 : i32
    %c0_i32_1 = arith.constant 0 : i32
    %c0_i32_2 = arith.constant 0 : i32
    %c0_i32_3 = arith.constant 0 : i32
    return %arg0, %c0_i32, %c0_i32_0, %c0_i32_1, %c0_i32_2 : i32, i32, i32, i32, i32
  }
}

module attributes {stable_mosaic.version = 11 : i64} {
  func.func @kernel(%arg0: i32, %arg1: memref<1x18x18x8xf32, #tpu.memory_space<vmem>>, %arg2: memref<9x8x8xf32, #tpu.memory_space<vmem>>, %arg3: memref<1x8xf32, #tpu.memory_space<vmem>>, %arg4: memref<1x8xf32, #tpu.memory_space<vmem>>, %arg5: memref<1x16x16x8xf32, #tpu.memory_space<vmem>>) attributes {dimension_semantics = [#tpu.dimension_semantics<parallel>], iteration_bounds = array<i64: 2>, scalar_prefetch = 0 : i64, scratch_operands = 0 : i64, tpu.core_type = #tpu.core_type<tc>, window_params = [{transform_indices = @transform_0, window_bounds = array<i64: 1, 18, 18, 8>}, {pipeline_mode = #tpu.pipeline_mode<synchronous>, transform_indices = @transform_1, window_bounds = array<i64: 9, 8, 8>}, {pipeline_mode = #tpu.pipeline_mode<synchronous>, transform_indices = @transform_2, window_bounds = array<i64: 1, 8>}, {pipeline_mode = #tpu.pipeline_mode<synchronous>, transform_indices = @transform_3, window_bounds = array<i64: 1, 8>}, {transform_indices = @transform_4, window_bounds = array<i64: 1, 16, 16, 8>}]} {
    %cst = arith.constant 0.000000e+00 : f32
    %0 = vector.broadcast %cst : f32 to vector<256x8xf32>
    %c0 = arith.constant 0 : index
    %c0_0 = arith.constant 0 : index
    %c0_1 = arith.constant 0 : index
    %c0_2 = arith.constant 0 : index
    %1 = vector.load %arg1[%c0, %c0_0, %c0_1, %c0_2] : memref<1x18x18x8xf32, #tpu.memory_space<vmem>>, vector<1x16x16x8xf32>
    %2 = vector.shape_cast %1 : vector<1x16x16x8xf32> to vector<16x16x8xf32>
    %3 = vector.shape_cast %2 : vector<16x16x8xf32> to vector<256x8xf32>
    %c0_3 = arith.constant 0 : index
    %c0_4 = arith.constant 0 : index
    %c0_5 = arith.constant 0 : index
    %4 = vector.load %arg2[%c0_3, %c0_4, %c0_5] : memref<9x8x8xf32, #tpu.memory_space<vmem>>, vector<1x8x8xf32>
    %5 = vector.shape_cast %4 : vector<1x8x8xf32> to vector<8x8xf32>
    %cst_6 = arith.constant dense<0.000000e+00> : vector<256x8xf32>
    %6 = tpu.matmul %3, %5, %cst_6 {dimension_numbers = #tpu.dot_dimension_numbers<[1], [0], [0], [1], [0, 0, 1, 1], [], []>} : vector<256x8xf32>, vector<8x8xf32>, vector<256x8xf32> -> vector<256x8xf32>
    %7 = arith.addf %0, %6 : vector<256x8xf32>
    %c0_7 = arith.constant 0 : index
    %c0_8 = arith.constant 0 : index
    %c1 = arith.constant 1 : index
    %c0_9 = arith.constant 0 : index
    %8 = vector.load %arg1[%c0_7, %c0_8, %c1, %c0_9] : memref<1x18x18x8xf32, #tpu.memory_space<vmem>>, vector<1x16x16x8xf32>
    %9 = vector.shape_cast %8 : vector<1x16x16x8xf32> to vector<16x16x8xf32>
    %10 = vector.shape_cast %9 : vector<16x16x8xf32> to vector<256x8xf32>
    %c1_10 = arith.constant 1 : index
    %c0_11 = arith.constant 0 : index
    %c0_12 = arith.constant 0 : index
    %11 = vector.load %arg2[%c1_10, %c0_11, %c0_12] : memref<9x8x8xf32, #tpu.memory_space<vmem>>, vector<1x8x8xf32>
    %12 = vector.shape_cast %11 : vector<1x8x8xf32> to vector<8x8xf32>
    %cst_13 = arith.constant dense<0.000000e+00> : vector<256x8xf32>
    %13 = tpu.matmul %10, %12, %cst_13 {dimension_numbers = #tpu.dot_dimension_numbers<[1], [0], [0], [1], [0, 0, 1, 1], [], []>} : vector<256x8xf32>, vector<8x8xf32>, vector<256x8xf32> -> vector<256x8xf32>
    %14 = arith.addf %7, %13 : vector<256x8xf32>
    %c0_14 = arith.constant 0 : index
    %c0_15 = arith.constant 0 : index
    %c2 = arith.constant 2 : index
    %c0_16 = arith.constant 0 : index
    %15 = vector.load %arg1[%c0_14, %c0_15, %c2, %c0_16] : memref<1x18x18x8xf32, #tpu.memory_space<vmem>>, vector<1x16x16x8xf32>
    %16 = vector.shape_cast %15 : vector<1x16x16x8xf32> to vector<16x16x8xf32>
    %17 = vector.shape_cast %16 : vector<16x16x8xf32> to vector<256x8xf32>
    %c2_17 = arith.constant 2 : index
    %c0_18 = arith.constant 0 : index
    %c0_19 = arith.constant 0 : index
    %18 = vector.load %arg2[%c2_17, %c0_18, %c0_19] : memref<9x8x8xf32, #tpu.memory_space<vmem>>, vector<1x8x8xf32>
    %19 = vector.shape_cast %18 : vector<1x8x8xf32> to vector<8x8xf32>
    %cst_20 = arith.constant dense<0.000000e+00> : vector<256x8xf32>
    %20 = tpu.matmul %17, %19, %cst_20 {dimension_numbers = #tpu.dot_dimension_numbers<[1], [0], [0], [1], [0, 0, 1, 1], [], []>} : vector<256x8xf32>, vector<8x8xf32>, vector<256x8xf32> -> vector<256x8xf32>
    %21 = arith.addf %14, %20 : vector<256x8xf32>
    %c0_21 = arith.constant 0 : index
    %c1_22 = arith.constant 1 : index
    %c0_23 = arith.constant 0 : index
    %c0_24 = arith.constant 0 : index
    %22 = vector.load %arg1[%c0_21, %c1_22, %c0_23, %c0_24] : memref<1x18x18x8xf32, #tpu.memory_space<vmem>>, vector<1x16x16x8xf32>
    %23 = vector.shape_cast %22 : vector<1x16x16x8xf32> to vector<16x16x8xf32>
    %24 = vector.shape_cast %23 : vector<16x16x8xf32> to vector<256x8xf32>
    %c3 = arith.constant 3 : index
    %c0_25 = arith.constant 0 : index
    %c0_26 = arith.constant 0 : index
    %25 = vector.load %arg2[%c3, %c0_25, %c0_26] : memref<9x8x8xf32, #tpu.memory_space<vmem>>, vector<1x8x8xf32>
    %26 = vector.shape_cast %25 : vector<1x8x8xf32> to vector<8x8xf32>
    %cst_27 = arith.constant dense<0.000000e+00> : vector<256x8xf32>
    %27 = tpu.matmul %24, %26, %cst_27 {dimension_numbers = #tpu.dot_dimension_numbers<[1], [0], [0], [1], [0, 0, 1, 1], [], []>} : vector<256x8xf32>, vector<8x8xf32>, vector<256x8xf32> -> vector<256x8xf32>
    %28 = arith.addf %21, %27 : vector<256x8xf32>
    %c0_28 = arith.constant 0 : index
    %c1_29 = arith.constant 1 : index
    %c1_30 = arith.constant 1 : index
    %c0_31 = arith.constant 0 : index
    %29 = vector.load %arg1[%c0_28, %c1_29, %c1_30, %c0_31] : memref<1x18x18x8xf32, #tpu.memory_space<vmem>>, vector<1x16x16x8xf32>
    %30 = vector.shape_cast %29 : vector<1x16x16x8xf32> to vector<16x16x8xf32>
    %31 = vector.shape_cast %30 : vector<16x16x8xf32> to vector<256x8xf32>
    %c4 = arith.constant 4 : index
    %c0_32 = arith.constant 0 : index
    %c0_33 = arith.constant 0 : index
    %32 = vector.load %arg2[%c4, %c0_32, %c0_33] : memref<9x8x8xf32, #tpu.memory_space<vmem>>, vector<1x8x8xf32>
    %33 = vector.shape_cast %32 : vector<1x8x8xf32> to vector<8x8xf32>
    %cst_34 = arith.constant dense<0.000000e+00> : vector<256x8xf32>
    %34 = tpu.matmul %31, %33, %cst_34 {dimension_numbers = #tpu.dot_dimension_numbers<[1], [0], [0], [1], [0, 0, 1, 1], [], []>} : vector<256x8xf32>, vector<8x8xf32>, vector<256x8xf32> -> vector<256x8xf32>
    %35 = arith.addf %28, %34 : vector<256x8xf32>
    %c0_35 = arith.constant 0 : index
    %c1_36 = arith.constant 1 : index
    %c2_37 = arith.constant 2 : index
    %c0_38 = arith.constant 0 : index
    %36 = vector.load %arg1[%c0_35, %c1_36, %c2_37, %c0_38] : memref<1x18x18x8xf32, #tpu.memory_space<vmem>>, vector<1x16x16x8xf32>
    %37 = vector.shape_cast %36 : vector<1x16x16x8xf32> to vector<16x16x8xf32>
    %38 = vector.shape_cast %37 : vector<16x16x8xf32> to vector<256x8xf32>
    %c5 = arith.constant 5 : index
    %c0_39 = arith.constant 0 : index
    %c0_40 = arith.constant 0 : index
    %39 = vector.load %arg2[%c5, %c0_39, %c0_40] : memref<9x8x8xf32, #tpu.memory_space<vmem>>, vector<1x8x8xf32>
    %40 = vector.shape_cast %39 : vector<1x8x8xf32> to vector<8x8xf32>
    %cst_41 = arith.constant dense<0.000000e+00> : vector<256x8xf32>
    %41 = tpu.matmul %38, %40, %cst_41 {dimension_numbers = #tpu.dot_dimension_numbers<[1], [0], [0], [1], [0, 0, 1, 1], [], []>} : vector<256x8xf32>, vector<8x8xf32>, vector<256x8xf32> -> vector<256x8xf32>
    %42 = arith.addf %35, %41 : vector<256x8xf32>
    %c0_42 = arith.constant 0 : index
    %c2_43 = arith.constant 2 : index
    %c0_44 = arith.constant 0 : index
    %c0_45 = arith.constant 0 : index
    %43 = vector.load %arg1[%c0_42, %c2_43, %c0_44, %c0_45] : memref<1x18x18x8xf32, #tpu.memory_space<vmem>>, vector<1x16x16x8xf32>
    %44 = vector.shape_cast %43 : vector<1x16x16x8xf32> to vector<16x16x8xf32>
    %45 = vector.shape_cast %44 : vector<16x16x8xf32> to vector<256x8xf32>
    %c6 = arith.constant 6 : index
    %c0_46 = arith.constant 0 : index
    %c0_47 = arith.constant 0 : index
    %46 = vector.load %arg2[%c6, %c0_46, %c0_47] : memref<9x8x8xf32, #tpu.memory_space<vmem>>, vector<1x8x8xf32>
    %47 = vector.shape_cast %46 : vector<1x8x8xf32> to vector<8x8xf32>
    %cst_48 = arith.constant dense<0.000000e+00> : vector<256x8xf32>
    %48 = tpu.matmul %45, %47, %cst_48 {dimension_numbers = #tpu.dot_dimension_numbers<[1], [0], [0], [1], [0, 0, 1, 1], [], []>} : vector<256x8xf32>, vector<8x8xf32>, vector<256x8xf32> -> vector<256x8xf32>
    %49 = arith.addf %42, %48 : vector<256x8xf32>
    %c0_49 = arith.constant 0 : index
    %c2_50 = arith.constant 2 : index
    %c1_51 = arith.constant 1 : index
    %c0_52 = arith.constant 0 : index
    %50 = vector.load %arg1[%c0_49, %c2_50, %c1_51, %c0_52] : memref<1x18x18x8xf32, #tpu.memory_space<vmem>>, vector<1x16x16x8xf32>
    %51 = vector.shape_cast %50 : vector<1x16x16x8xf32> to vector<16x16x8xf32>
    %52 = vector.shape_cast %51 : vector<16x16x8xf32> to vector<256x8xf32>
    %c7 = arith.constant 7 : index
    %c0_53 = arith.constant 0 : index
    %c0_54 = arith.constant 0 : index
    %53 = vector.load %arg2[%c7, %c0_53, %c0_54] : memref<9x8x8xf32, #tpu.memory_space<vmem>>, vector<1x8x8xf32>
    %54 = vector.shape_cast %53 : vector<1x8x8xf32> to vector<8x8xf32>
    %cst_55 = arith.constant dense<0.000000e+00> : vector<256x8xf32>
    %55 = tpu.matmul %52, %54, %cst_55 {dimension_numbers = #tpu.dot_dimension_numbers<[1], [0], [0], [1], [0, 0, 1, 1], [], []>} : vector<256x8xf32>, vector<8x8xf32>, vector<256x8xf32> -> vector<256x8xf32>
    %56 = arith.addf %49, %55 : vector<256x8xf32>
    %c0_56 = arith.constant 0 : index
    %c2_57 = arith.constant 2 : index
    %c2_58 = arith.constant 2 : index
    %c0_59 = arith.constant 0 : index
    %57 = vector.load %arg1[%c0_56, %c2_57, %c2_58, %c0_59] : memref<1x18x18x8xf32, #tpu.memory_space<vmem>>, vector<1x16x16x8xf32>
    %58 = vector.shape_cast %57 : vector<1x16x16x8xf32> to vector<16x16x8xf32>
    %59 = vector.shape_cast %58 : vector<16x16x8xf32> to vector<256x8xf32>
    %c8 = arith.constant 8 : index
    %c0_60 = arith.constant 0 : index
    %c0_61 = arith.constant 0 : index
    %60 = vector.load %arg2[%c8, %c0_60, %c0_61] : memref<9x8x8xf32, #tpu.memory_space<vmem>>, vector<1x8x8xf32>
    %61 = vector.shape_cast %60 : vector<1x8x8xf32> to vector<8x8xf32>
    %cst_62 = arith.constant dense<0.000000e+00> : vector<256x8xf32>
    %62 = tpu.matmul %59, %61, %cst_62 {dimension_numbers = #tpu.dot_dimension_numbers<[1], [0], [0], [1], [0, 0, 1, 1], [], []>} : vector<256x8xf32>, vector<8x8xf32>, vector<256x8xf32> -> vector<256x8xf32>
    %63 = arith.addf %56, %62 : vector<256x8xf32>
    %c0_63 = arith.constant 0 : index
    %c0_64 = arith.constant 0 : index
    %64 = vector.load %arg3[%c0_63, %c0_64] : memref<1x8xf32, #tpu.memory_space<vmem>>, vector<1x8xf32>
    %65 = vector.broadcast %64 : vector<1x8xf32> to vector<256x8xf32>
    %66 = arith.mulf %63, %65 : vector<256x8xf32>
    %c0_65 = arith.constant 0 : index
    %c0_66 = arith.constant 0 : index
    %67 = vector.load %arg4[%c0_65, %c0_66] : memref<1x8xf32, #tpu.memory_space<vmem>>, vector<1x8xf32>
    %68 = vector.broadcast %67 : vector<1x8xf32> to vector<256x8xf32>
    %69 = arith.addf %66, %68 : vector<256x8xf32>
    %cst_67 = arith.constant 0.000000e+00 : f32
    %70 = vector.broadcast %cst_67 : f32 to vector<256x8xf32>
    %71 = arith.maximumf %69, %70 : vector<256x8xf32>
    %72 = vector.shape_cast %71 : vector<256x8xf32> to vector<16x16x8xf32>
    %c0_68 = arith.constant 0 : index
    %c0_69 = arith.constant 0 : index
    %c0_70 = arith.constant 0 : index
    %c0_71 = arith.constant 0 : index
    %73 = vector.load %arg5[%c0_68, %c0_69, %c0_70, %c0_71] : memref<1x16x16x8xf32, #tpu.memory_space<vmem>>, vector<1x16x16x8xf32>
    %74 = vector.shape_cast %73 : vector<1x16x16x8xf32> to vector<16x16x8xf32>
    %75 = vector.shape_cast %72 : vector<16x16x8xf32> to vector<1x16x16x8xf32>
    tpu.vector_store %arg5[%c0_68, %c0_69, %c0_70, %c0_71], %75 {strides = array<i32>} : memref<1x16x16x8xf32, #tpu.memory_space<vmem>>, vector<1x16x16x8xf32>,
    return
  }
  func.func @transform_0(%arg0: i32) -> (i32, i32, i32, i32) {
    %c0_i32 = arith.constant 0 : i32
    %c0_i32_0 = arith.constant 0 : i32
    %c0_i32_1 = arith.constant 0 : i32
    %c0_i32_2 = arith.constant 0 : i32
    return %arg0, %c0_i32, %c0_i32_0, %c0_i32_1 : i32, i32, i32, i32
  }
  func.func @transform_1(%arg0: i32) -> (i32, i32, i32) {
    %c0_i32 = arith.constant 0 : i32
    %c0_i32_0 = arith.constant 0 : i32
    %c0_i32_1 = arith.constant 0 : i32
    %c0_i32_2 = arith.constant 0 : i32
    return %c0_i32, %c0_i32_0, %c0_i32_1 : i32, i32, i32
  }
  func.func @transform_2(%arg0: i32) -> (i32, i32) {
    %c0_i32 = arith.constant 0 : i32
    %c0_i32_0 = arith.constant 0 : i32
    %c0_i32_1 = arith.constant 0 : i32
    return %c0_i32, %c0_i32_0 : i32, i32
  }
  func.func @transform_3(%arg0: i32) -> (i32, i32) {
    %c0_i32 = arith.constant 0 : i32
    %c0_i32_0 = arith.constant 0 : i32
    %c0_i32_1 = arith.constant 0 : i32
    return %c0_i32, %c0_i32_0 : i32, i32
  }
  func.func @transform_4(%arg0: i32) -> (i32, i32, i32, i32) {
    %c0_i32 = arith.constant 0 : i32
    %c0_i32_0 = arith.constant 0 : i32
    %c0_i32_1 = arith.constant 0 : i32
    %c0_i32_2 = arith.constant 0 : i32
    return %arg0, %c0_i32, %c0_i32_0, %c0_i32_1 : i32, i32, i32, i32
  }
}

module attributes {stable_mosaic.version = 11 : i64} {
  func.func @kernel(%arg0: i32, %arg1: memref<1x18x18x4xf32, #tpu.memory_space<vmem>>, %arg2: memref<1x18x18x4xf32, #tpu.memory_space<vmem>>, %arg3: memref<9x4x8xf32, #tpu.memory_space<vmem>>, %arg4: memref<9x4x8xf32, #tpu.memory_space<vmem>>, %arg5: memref<1x8xf32, #tpu.memory_space<vmem>>, %arg6: memref<1x8xf32, #tpu.memory_space<vmem>>, %arg7: memref<1x16x16x8xf32, #tpu.memory_space<vmem>>) attributes {dimension_semantics = [#tpu.dimension_semantics<parallel>], iteration_bounds = array<i64: 2>, scalar_prefetch = 0 : i64, scratch_operands = 0 : i64, tpu.core_type = #tpu.core_type<tc>, window_params = [{transform_indices = @transform_0, window_bounds = array<i64: 1, 18, 18, 4>}, {transform_indices = @transform_1, window_bounds = array<i64: 1, 18, 18, 4>}, {pipeline_mode = #tpu.pipeline_mode<synchronous>, transform_indices = @transform_2, window_bounds = array<i64: 9, 4, 8>}, {pipeline_mode = #tpu.pipeline_mode<synchronous>, transform_indices = @transform_3, window_bounds = array<i64: 9, 4, 8>}, {pipeline_mode = #tpu.pipeline_mode<synchronous>, transform_indices = @transform_4, window_bounds = array<i64: 1, 8>}, {pipeline_mode = #tpu.pipeline_mode<synchronous>, transform_indices = @transform_5, window_bounds = array<i64: 1, 8>}, {transform_indices = @transform_6, window_bounds = array<i64: 1, 16, 16, 8>}]} {
    %cst = arith.constant 0.000000e+00 : f32
    %0 = vector.broadcast %cst : f32 to vector<256x8xf32>
    %c0 = arith.constant 0 : index
    %c0_0 = arith.constant 0 : index
    %c0_1 = arith.constant 0 : index
    %c0_2 = arith.constant 0 : index
    %1 = vector.load %arg1[%c0, %c0_0, %c0_1, %c0_2] : memref<1x18x18x4xf32, #tpu.memory_space<vmem>>, vector<1x16x16x4xf32>
    %2 = vector.shape_cast %1 : vector<1x16x16x4xf32> to vector<16x16x4xf32>
    %3 = vector.shape_cast %2 : vector<16x16x4xf32> to vector<256x4xf32>
    %c0_3 = arith.constant 0 : index
    %c0_4 = arith.constant 0 : index
    %c0_5 = arith.constant 0 : index
    %4 = vector.load %arg3[%c0_3, %c0_4, %c0_5] : memref<9x4x8xf32, #tpu.memory_space<vmem>>, vector<1x4x8xf32>
    %5 = vector.shape_cast %4 : vector<1x4x8xf32> to vector<4x8xf32>
    %cst_6 = arith.constant dense<0.000000e+00> : vector<256x8xf32>
    %6 = tpu.matmul %3, %5, %cst_6 {dimension_numbers = #tpu.dot_dimension_numbers<[1], [0], [0], [1], [0, 0, 1, 1], [], []>} : vector<256x4xf32>, vector<4x8xf32>, vector<256x8xf32> -> vector<256x8xf32>
    %7 = arith.addf %0, %6 : vector<256x8xf32>
    %c0_7 = arith.constant 0 : index
    %c0_8 = arith.constant 0 : index
    %c1 = arith.constant 1 : index
    %c0_9 = arith.constant 0 : index
    %8 = vector.load %arg1[%c0_7, %c0_8, %c1, %c0_9] : memref<1x18x18x4xf32, #tpu.memory_space<vmem>>, vector<1x16x16x4xf32>
    %9 = vector.shape_cast %8 : vector<1x16x16x4xf32> to vector<16x16x4xf32>
    %10 = vector.shape_cast %9 : vector<16x16x4xf32> to vector<256x4xf32>
    %c1_10 = arith.constant 1 : index
    %c0_11 = arith.constant 0 : index
    %c0_12 = arith.constant 0 : index
    %11 = vector.load %arg3[%c1_10, %c0_11, %c0_12] : memref<9x4x8xf32, #tpu.memory_space<vmem>>, vector<1x4x8xf32>
    %12 = vector.shape_cast %11 : vector<1x4x8xf32> to vector<4x8xf32>
    %cst_13 = arith.constant dense<0.000000e+00> : vector<256x8xf32>
    %13 = tpu.matmul %10, %12, %cst_13 {dimension_numbers = #tpu.dot_dimension_numbers<[1], [0], [0], [1], [0, 0, 1, 1], [], []>} : vector<256x4xf32>, vector<4x8xf32>, vector<256x8xf32> -> vector<256x8xf32>
    %14 = arith.addf %7, %13 : vector<256x8xf32>
    %c0_14 = arith.constant 0 : index
    %c0_15 = arith.constant 0 : index
    %c2 = arith.constant 2 : index
    %c0_16 = arith.constant 0 : index
    %15 = vector.load %arg1[%c0_14, %c0_15, %c2, %c0_16] : memref<1x18x18x4xf32, #tpu.memory_space<vmem>>, vector<1x16x16x4xf32>
    %16 = vector.shape_cast %15 : vector<1x16x16x4xf32> to vector<16x16x4xf32>
    %17 = vector.shape_cast %16 : vector<16x16x4xf32> to vector<256x4xf32>
    %c2_17 = arith.constant 2 : index
    %c0_18 = arith.constant 0 : index
    %c0_19 = arith.constant 0 : index
    %18 = vector.load %arg3[%c2_17, %c0_18, %c0_19] : memref<9x4x8xf32, #tpu.memory_space<vmem>>, vector<1x4x8xf32>
    %19 = vector.shape_cast %18 : vector<1x4x8xf32> to vector<4x8xf32>
    %cst_20 = arith.constant dense<0.000000e+00> : vector<256x8xf32>
    %20 = tpu.matmul %17, %19, %cst_20 {dimension_numbers = #tpu.dot_dimension_numbers<[1], [0], [0], [1], [0, 0, 1, 1], [], []>} : vector<256x4xf32>, vector<4x8xf32>, vector<256x8xf32> -> vector<256x8xf32>
    %21 = arith.addf %14, %20 : vector<256x8xf32>
    %c0_21 = arith.constant 0 : index
    %c1_22 = arith.constant 1 : index
    %c0_23 = arith.constant 0 : index
    %c0_24 = arith.constant 0 : index
    %22 = vector.load %arg1[%c0_21, %c1_22, %c0_23, %c0_24] : memref<1x18x18x4xf32, #tpu.memory_space<vmem>>, vector<1x16x16x4xf32>
    %23 = vector.shape_cast %22 : vector<1x16x16x4xf32> to vector<16x16x4xf32>
    %24 = vector.shape_cast %23 : vector<16x16x4xf32> to vector<256x4xf32>
    %c3 = arith.constant 3 : index
    %c0_25 = arith.constant 0 : index
    %c0_26 = arith.constant 0 : index
    %25 = vector.load %arg3[%c3, %c0_25, %c0_26] : memref<9x4x8xf32, #tpu.memory_space<vmem>>, vector<1x4x8xf32>
    %26 = vector.shape_cast %25 : vector<1x4x8xf32> to vector<4x8xf32>
    %cst_27 = arith.constant dense<0.000000e+00> : vector<256x8xf32>
    %27 = tpu.matmul %24, %26, %cst_27 {dimension_numbers = #tpu.dot_dimension_numbers<[1], [0], [0], [1], [0, 0, 1, 1], [], []>} : vector<256x4xf32>, vector<4x8xf32>, vector<256x8xf32> -> vector<256x8xf32>
    %28 = arith.addf %21, %27 : vector<256x8xf32>
    %c0_28 = arith.constant 0 : index
    %c1_29 = arith.constant 1 : index
    %c1_30 = arith.constant 1 : index
    %c0_31 = arith.constant 0 : index
    %29 = vector.load %arg1[%c0_28, %c1_29, %c1_30, %c0_31] : memref<1x18x18x4xf32, #tpu.memory_space<vmem>>, vector<1x16x16x4xf32>
    %30 = vector.shape_cast %29 : vector<1x16x16x4xf32> to vector<16x16x4xf32>
    %31 = vector.shape_cast %30 : vector<16x16x4xf32> to vector<256x4xf32>
    %c4 = arith.constant 4 : index
    %c0_32 = arith.constant 0 : index
    %c0_33 = arith.constant 0 : index
    %32 = vector.load %arg3[%c4, %c0_32, %c0_33] : memref<9x4x8xf32, #tpu.memory_space<vmem>>, vector<1x4x8xf32>
    %33 = vector.shape_cast %32 : vector<1x4x8xf32> to vector<4x8xf32>
    %cst_34 = arith.constant dense<0.000000e+00> : vector<256x8xf32>
    %34 = tpu.matmul %31, %33, %cst_34 {dimension_numbers = #tpu.dot_dimension_numbers<[1], [0], [0], [1], [0, 0, 1, 1], [], []>} : vector<256x4xf32>, vector<4x8xf32>, vector<256x8xf32> -> vector<256x8xf32>
    %35 = arith.addf %28, %34 : vector<256x8xf32>
    %c0_35 = arith.constant 0 : index
    %c1_36 = arith.constant 1 : index
    %c2_37 = arith.constant 2 : index
    %c0_38 = arith.constant 0 : index
    %36 = vector.load %arg1[%c0_35, %c1_36, %c2_37, %c0_38] : memref<1x18x18x4xf32, #tpu.memory_space<vmem>>, vector<1x16x16x4xf32>
    %37 = vector.shape_cast %36 : vector<1x16x16x4xf32> to vector<16x16x4xf32>
    %38 = vector.shape_cast %37 : vector<16x16x4xf32> to vector<256x4xf32>
    %c5 = arith.constant 5 : index
    %c0_39 = arith.constant 0 : index
    %c0_40 = arith.constant 0 : index
    %39 = vector.load %arg3[%c5, %c0_39, %c0_40] : memref<9x4x8xf32, #tpu.memory_space<vmem>>, vector<1x4x8xf32>
    %40 = vector.shape_cast %39 : vector<1x4x8xf32> to vector<4x8xf32>
    %cst_41 = arith.constant dense<0.000000e+00> : vector<256x8xf32>
    %41 = tpu.matmul %38, %40, %cst_41 {dimension_numbers = #tpu.dot_dimension_numbers<[1], [0], [0], [1], [0, 0, 1, 1], [], []>} : vector<256x4xf32>, vector<4x8xf32>, vector<256x8xf32> -> vector<256x8xf32>
    %42 = arith.addf %35, %41 : vector<256x8xf32>
    %c0_42 = arith.constant 0 : index
    %c2_43 = arith.constant 2 : index
    %c0_44 = arith.constant 0 : index
    %c0_45 = arith.constant 0 : index
    %43 = vector.load %arg1[%c0_42, %c2_43, %c0_44, %c0_45] : memref<1x18x18x4xf32, #tpu.memory_space<vmem>>, vector<1x16x16x4xf32>
    %44 = vector.shape_cast %43 : vector<1x16x16x4xf32> to vector<16x16x4xf32>
    %45 = vector.shape_cast %44 : vector<16x16x4xf32> to vector<256x4xf32>
    %c6 = arith.constant 6 : index
    %c0_46 = arith.constant 0 : index
    %c0_47 = arith.constant 0 : index
    %46 = vector.load %arg3[%c6, %c0_46, %c0_47] : memref<9x4x8xf32, #tpu.memory_space<vmem>>, vector<1x4x8xf32>
    %47 = vector.shape_cast %46 : vector<1x4x8xf32> to vector<4x8xf32>
    %cst_48 = arith.constant dense<0.000000e+00> : vector<256x8xf32>
    %48 = tpu.matmul %45, %47, %cst_48 {dimension_numbers = #tpu.dot_dimension_numbers<[1], [0], [0], [1], [0, 0, 1, 1], [], []>} : vector<256x4xf32>, vector<4x8xf32>, vector<256x8xf32> -> vector<256x8xf32>
    %49 = arith.addf %42, %48 : vector<256x8xf32>
    %c0_49 = arith.constant 0 : index
    %c2_50 = arith.constant 2 : index
    %c1_51 = arith.constant 1 : index
    %c0_52 = arith.constant 0 : index
    %50 = vector.load %arg1[%c0_49, %c2_50, %c1_51, %c0_52] : memref<1x18x18x4xf32, #tpu.memory_space<vmem>>, vector<1x16x16x4xf32>
    %51 = vector.shape_cast %50 : vector<1x16x16x4xf32> to vector<16x16x4xf32>
    %52 = vector.shape_cast %51 : vector<16x16x4xf32> to vector<256x4xf32>
    %c7 = arith.constant 7 : index
    %c0_53 = arith.constant 0 : index
    %c0_54 = arith.constant 0 : index
    %53 = vector.load %arg3[%c7, %c0_53, %c0_54] : memref<9x4x8xf32, #tpu.memory_space<vmem>>, vector<1x4x8xf32>
    %54 = vector.shape_cast %53 : vector<1x4x8xf32> to vector<4x8xf32>
    %cst_55 = arith.constant dense<0.000000e+00> : vector<256x8xf32>
    %55 = tpu.matmul %52, %54, %cst_55 {dimension_numbers = #tpu.dot_dimension_numbers<[1], [0], [0], [1], [0, 0, 1, 1], [], []>} : vector<256x4xf32>, vector<4x8xf32>, vector<256x8xf32> -> vector<256x8xf32>
    %56 = arith.addf %49, %55 : vector<256x8xf32>
    %c0_56 = arith.constant 0 : index
    %c2_57 = arith.constant 2 : index
    %c2_58 = arith.constant 2 : index
    %c0_59 = arith.constant 0 : index
    %57 = vector.load %arg1[%c0_56, %c2_57, %c2_58, %c0_59] : memref<1x18x18x4xf32, #tpu.memory_space<vmem>>, vector<1x16x16x4xf32>
    %58 = vector.shape_cast %57 : vector<1x16x16x4xf32> to vector<16x16x4xf32>
    %59 = vector.shape_cast %58 : vector<16x16x4xf32> to vector<256x4xf32>
    %c8 = arith.constant 8 : index
    %c0_60 = arith.constant 0 : index
    %c0_61 = arith.constant 0 : index
    %60 = vector.load %arg3[%c8, %c0_60, %c0_61] : memref<9x4x8xf32, #tpu.memory_space<vmem>>, vector<1x4x8xf32>
    %61 = vector.shape_cast %60 : vector<1x4x8xf32> to vector<4x8xf32>
    %cst_62 = arith.constant dense<0.000000e+00> : vector<256x8xf32>
    %62 = tpu.matmul %59, %61, %cst_62 {dimension_numbers = #tpu.dot_dimension_numbers<[1], [0], [0], [1], [0, 0, 1, 1], [], []>} : vector<256x4xf32>, vector<4x8xf32>, vector<256x8xf32> -> vector<256x8xf32>
    %63 = arith.addf %56, %62 : vector<256x8xf32>
    %c0_63 = arith.constant 0 : index
    %c0_64 = arith.constant 0 : index
    %c0_65 = arith.constant 0 : index
    %c0_66 = arith.constant 0 : index
    %64 = vector.load %arg2[%c0_63, %c0_64, %c0_65, %c0_66] : memref<1x18x18x4xf32, #tpu.memory_space<vmem>>, vector<1x16x16x4xf32>
    %65 = vector.shape_cast %64 : vector<1x16x16x4xf32> to vector<16x16x4xf32>
    %66 = vector.shape_cast %65 : vector<16x16x4xf32> to vector<256x4xf32>
    %c0_67 = arith.constant 0 : index
    %c0_68 = arith.constant 0 : index
    %c0_69 = arith.constant 0 : index
    %67 = vector.load %arg4[%c0_67, %c0_68, %c0_69] : memref<9x4x8xf32, #tpu.memory_space<vmem>>, vector<1x4x8xf32>
    %68 = vector.shape_cast %67 : vector<1x4x8xf32> to vector<4x8xf32>
    %cst_70 = arith.constant dense<0.000000e+00> : vector<256x8xf32>
    %69 = tpu.matmul %66, %68, %cst_70 {dimension_numbers = #tpu.dot_dimension_numbers<[1], [0], [0], [1], [0, 0, 1, 1], [], []>} : vector<256x4xf32>, vector<4x8xf32>, vector<256x8xf32> -> vector<256x8xf32>
    %70 = arith.addf %63, %69 : vector<256x8xf32>
    %c0_71 = arith.constant 0 : index
    %c0_72 = arith.constant 0 : index
    %c1_73 = arith.constant 1 : index
    %c0_74 = arith.constant 0 : index
    %71 = vector.load %arg2[%c0_71, %c0_72, %c1_73, %c0_74] : memref<1x18x18x4xf32, #tpu.memory_space<vmem>>, vector<1x16x16x4xf32>
    %72 = vector.shape_cast %71 : vector<1x16x16x4xf32> to vector<16x16x4xf32>
    %73 = vector.shape_cast %72 : vector<16x16x4xf32> to vector<256x4xf32>
    %c1_75 = arith.constant 1 : index
    %c0_76 = arith.constant 0 : index
    %c0_77 = arith.constant 0 : index
    %74 = vector.load %arg4[%c1_75, %c0_76, %c0_77] : memref<9x4x8xf32, #tpu.memory_space<vmem>>, vector<1x4x8xf32>
    %75 = vector.shape_cast %74 : vector<1x4x8xf32> to vector<4x8xf32>
    %cst_78 = arith.constant dense<0.000000e+00> : vector<256x8xf32>
    %76 = tpu.matmul %73, %75, %cst_78 {dimension_numbers = #tpu.dot_dimension_numbers<[1], [0], [0], [1], [0, 0, 1, 1], [], []>} : vector<256x4xf32>, vector<4x8xf32>, vector<256x8xf32> -> vector<256x8xf32>
    %77 = arith.addf %70, %76 : vector<256x8xf32>
    %c0_79 = arith.constant 0 : index
    %c0_80 = arith.constant 0 : index
    %c2_81 = arith.constant 2 : index
    %c0_82 = arith.constant 0 : index
    %78 = vector.load %arg2[%c0_79, %c0_80, %c2_81, %c0_82] : memref<1x18x18x4xf32, #tpu.memory_space<vmem>>, vector<1x16x16x4xf32>
    %79 = vector.shape_cast %78 : vector<1x16x16x4xf32> to vector<16x16x4xf32>
    %80 = vector.shape_cast %79 : vector<16x16x4xf32> to vector<256x4xf32>
    %c2_83 = arith.constant 2 : index
    %c0_84 = arith.constant 0 : index
    %c0_85 = arith.constant 0 : index
    %81 = vector.load %arg4[%c2_83, %c0_84, %c0_85] : memref<9x4x8xf32, #tpu.memory_space<vmem>>, vector<1x4x8xf32>
    %82 = vector.shape_cast %81 : vector<1x4x8xf32> to vector<4x8xf32>
    %cst_86 = arith.constant dense<0.000000e+00> : vector<256x8xf32>
    %83 = tpu.matmul %80, %82, %cst_86 {dimension_numbers = #tpu.dot_dimension_numbers<[1], [0], [0], [1], [0, 0, 1, 1], [], []>} : vector<256x4xf32>, vector<4x8xf32>, vector<256x8xf32> -> vector<256x8xf32>
    %84 = arith.addf %77, %83 : vector<256x8xf32>
    %c0_87 = arith.constant 0 : index
    %c1_88 = arith.constant 1 : index
    %c0_89 = arith.constant 0 : index
    %c0_90 = arith.constant 0 : index
    %85 = vector.load %arg2[%c0_87, %c1_88, %c0_89, %c0_90] : memref<1x18x18x4xf32, #tpu.memory_space<vmem>>, vector<1x16x16x4xf32>
    %86 = vector.shape_cast %85 : vector<1x16x16x4xf32> to vector<16x16x4xf32>
    %87 = vector.shape_cast %86 : vector<16x16x4xf32> to vector<256x4xf32>
    %c3_91 = arith.constant 3 : index
    %c0_92 = arith.constant 0 : index
    %c0_93 = arith.constant 0 : index
    %88 = vector.load %arg4[%c3_91, %c0_92, %c0_93] : memref<9x4x8xf32, #tpu.memory_space<vmem>>, vector<1x4x8xf32>
    %89 = vector.shape_cast %88 : vector<1x4x8xf32> to vector<4x8xf32>
    %cst_94 = arith.constant dense<0.000000e+00> : vector<256x8xf32>
    %90 = tpu.matmul %87, %89, %cst_94 {dimension_numbers = #tpu.dot_dimension_numbers<[1], [0], [0], [1], [0, 0, 1, 1], [], []>} : vector<256x4xf32>, vector<4x8xf32>, vector<256x8xf32> -> vector<256x8xf32>
    %91 = arith.addf %84, %90 : vector<256x8xf32>
    %c0_95 = arith.constant 0 : index
    %c1_96 = arith.constant 1 : index
    %c1_97 = arith.constant 1 : index
    %c0_98 = arith.constant 0 : index
    %92 = vector.load %arg2[%c0_95, %c1_96, %c1_97, %c0_98] : memref<1x18x18x4xf32, #tpu.memory_space<vmem>>, vector<1x16x16x4xf32>
    %93 = vector.shape_cast %92 : vector<1x16x16x4xf32> to vector<16x16x4xf32>
    %94 = vector.shape_cast %93 : vector<16x16x4xf32> to vector<256x4xf32>
    %c4_99 = arith.constant 4 : index
    %c0_100 = arith.constant 0 : index
    %c0_101 = arith.constant 0 : index
    %95 = vector.load %arg4[%c4_99, %c0_100, %c0_101] : memref<9x4x8xf32, #tpu.memory_space<vmem>>, vector<1x4x8xf32>
    %96 = vector.shape_cast %95 : vector<1x4x8xf32> to vector<4x8xf32>
    %cst_102 = arith.constant dense<0.000000e+00> : vector<256x8xf32>
    %97 = tpu.matmul %94, %96, %cst_102 {dimension_numbers = #tpu.dot_dimension_numbers<[1], [0], [0], [1], [0, 0, 1, 1], [], []>} : vector<256x4xf32>, vector<4x8xf32>, vector<256x8xf32> -> vector<256x8xf32>
    %98 = arith.addf %91, %97 : vector<256x8xf32>
    %c0_103 = arith.constant 0 : index
    %c1_104 = arith.constant 1 : index
    %c2_105 = arith.constant 2 : index
    %c0_106 = arith.constant 0 : index
    %99 = vector.load %arg2[%c0_103, %c1_104, %c2_105, %c0_106] : memref<1x18x18x4xf32, #tpu.memory_space<vmem>>, vector<1x16x16x4xf32>
    %100 = vector.shape_cast %99 : vector<1x16x16x4xf32> to vector<16x16x4xf32>
    %101 = vector.shape_cast %100 : vector<16x16x4xf32> to vector<256x4xf32>
    %c5_107 = arith.constant 5 : index
    %c0_108 = arith.constant 0 : index
    %c0_109 = arith.constant 0 : index
    %102 = vector.load %arg4[%c5_107, %c0_108, %c0_109] : memref<9x4x8xf32, #tpu.memory_space<vmem>>, vector<1x4x8xf32>
    %103 = vector.shape_cast %102 : vector<1x4x8xf32> to vector<4x8xf32>
    %cst_110 = arith.constant dense<0.000000e+00> : vector<256x8xf32>
    %104 = tpu.matmul %101, %103, %cst_110 {dimension_numbers = #tpu.dot_dimension_numbers<[1], [0], [0], [1], [0, 0, 1, 1], [], []>} : vector<256x4xf32>, vector<4x8xf32>, vector<256x8xf32> -> vector<256x8xf32>
    %105 = arith.addf %98, %104 : vector<256x8xf32>
    %c0_111 = arith.constant 0 : index
    %c2_112 = arith.constant 2 : index
    %c0_113 = arith.constant 0 : index
    %c0_114 = arith.constant 0 : index
    %106 = vector.load %arg2[%c0_111, %c2_112, %c0_113, %c0_114] : memref<1x18x18x4xf32, #tpu.memory_space<vmem>>, vector<1x16x16x4xf32>
    %107 = vector.shape_cast %106 : vector<1x16x16x4xf32> to vector<16x16x4xf32>
    %108 = vector.shape_cast %107 : vector<16x16x4xf32> to vector<256x4xf32>
    %c6_115 = arith.constant 6 : index
    %c0_116 = arith.constant 0 : index
    %c0_117 = arith.constant 0 : index
    %109 = vector.load %arg4[%c6_115, %c0_116, %c0_117] : memref<9x4x8xf32, #tpu.memory_space<vmem>>, vector<1x4x8xf32>
    %110 = vector.shape_cast %109 : vector<1x4x8xf32> to vector<4x8xf32>
    %cst_118 = arith.constant dense<0.000000e+00> : vector<256x8xf32>
    %111 = tpu.matmul %108, %110, %cst_118 {dimension_numbers = #tpu.dot_dimension_numbers<[1], [0], [0], [1], [0, 0, 1, 1], [], []>} : vector<256x4xf32>, vector<4x8xf32>, vector<256x8xf32> -> vector<256x8xf32>
    %112 = arith.addf %105, %111 : vector<256x8xf32>
    %c0_119 = arith.constant 0 : index
    %c2_120 = arith.constant 2 : index
    %c1_121 = arith.constant 1 : index
    %c0_122 = arith.constant 0 : index
    %113 = vector.load %arg2[%c0_119, %c2_120, %c1_121, %c0_122] : memref<1x18x18x4xf32, #tpu.memory_space<vmem>>, vector<1x16x16x4xf32>
    %114 = vector.shape_cast %113 : vector<1x16x16x4xf32> to vector<16x16x4xf32>
    %115 = vector.shape_cast %114 : vector<16x16x4xf32> to vector<256x4xf32>
    %c7_123 = arith.constant 7 : index
    %c0_124 = arith.constant 0 : index
    %c0_125 = arith.constant 0 : index
    %116 = vector.load %arg4[%c7_123, %c0_124, %c0_125] : memref<9x4x8xf32, #tpu.memory_space<vmem>>, vector<1x4x8xf32>
    %117 = vector.shape_cast %116 : vector<1x4x8xf32> to vector<4x8xf32>
    %cst_126 = arith.constant dense<0.000000e+00> : vector<256x8xf32>
    %118 = tpu.matmul %115, %117, %cst_126 {dimension_numbers = #tpu.dot_dimension_numbers<[1], [0], [0], [1], [0, 0, 1, 1], [], []>} : vector<256x4xf32>, vector<4x8xf32>, vector<256x8xf32> -> vector<256x8xf32>
    %119 = arith.addf %112, %118 : vector<256x8xf32>
    %c0_127 = arith.constant 0 : index
    %c2_128 = arith.constant 2 : index
    %c2_129 = arith.constant 2 : index
    %c0_130 = arith.constant 0 : index
    %120 = vector.load %arg2[%c0_127, %c2_128, %c2_129, %c0_130] : memref<1x18x18x4xf32, #tpu.memory_space<vmem>>, vector<1x16x16x4xf32>
    %121 = vector.shape_cast %120 : vector<1x16x16x4xf32> to vector<16x16x4xf32>
    %122 = vector.shape_cast %121 : vector<16x16x4xf32> to vector<256x4xf32>
    %c8_131 = arith.constant 8 : index
    %c0_132 = arith.constant 0 : index
    %c0_133 = arith.constant 0 : index
    %123 = vector.load %arg4[%c8_131, %c0_132, %c0_133] : memref<9x4x8xf32, #tpu.memory_space<vmem>>, vector<1x4x8xf32>
    %124 = vector.shape_cast %123 : vector<1x4x8xf32> to vector<4x8xf32>
    %cst_134 = arith.constant dense<0.000000e+00> : vector<256x8xf32>
    %125 = tpu.matmul %122, %124, %cst_134 {dimension_numbers = #tpu.dot_dimension_numbers<[1], [0], [0], [1], [0, 0, 1, 1], [], []>} : vector<256x4xf32>, vector<4x8xf32>, vector<256x8xf32> -> vector<256x8xf32>
    %126 = arith.addf %119, %125 : vector<256x8xf32>
    %c0_135 = arith.constant 0 : index
    %c0_136 = arith.constant 0 : index
    %127 = vector.load %arg5[%c0_135, %c0_136] : memref<1x8xf32, #tpu.memory_space<vmem>>, vector<1x8xf32>
    %128 = vector.broadcast %127 : vector<1x8xf32> to vector<256x8xf32>
    %129 = arith.mulf %126, %128 : vector<256x8xf32>
    %c0_137 = arith.constant 0 : index
    %c0_138 = arith.constant 0 : index
    %130 = vector.load %arg6[%c0_137, %c0_138] : memref<1x8xf32, #tpu.memory_space<vmem>>, vector<1x8xf32>
    %131 = vector.broadcast %130 : vector<1x8xf32> to vector<256x8xf32>
    %132 = arith.addf %129, %131 : vector<256x8xf32>
    %cst_139 = arith.constant 0.000000e+00 : f32
    %133 = vector.broadcast %cst_139 : f32 to vector<256x8xf32>
    %134 = arith.maximumf %132, %133 : vector<256x8xf32>
    %135 = vector.shape_cast %134 : vector<256x8xf32> to vector<16x16x8xf32>
    %c0_140 = arith.constant 0 : index
    %c0_141 = arith.constant 0 : index
    %c0_142 = arith.constant 0 : index
    %c0_143 = arith.constant 0 : index
    %136 = vector.load %arg7[%c0_140, %c0_141, %c0_142, %c0_143] : memref<1x16x16x8xf32, #tpu.memory_space<vmem>>, vector<1x16x16x8xf32>
    %137 = vector.shape_cast %136 : vector<1x16x16x8xf32> to vector<16x16x8xf32>
    %138 = vector.shape_cast %135 : vector<16x16x8xf32> to vector<1x16x16x8xf32>
    tpu.vector_store %arg7[%c0_140, %c0_141, %c0_142, %c0_143], %138 {strides = array<i32>} : memref<1x16x16x8xf32, #tpu.memory_space<vmem>>, vector<1x16x16x8xf32>,
    return
  }
  func.func @transform_0(%arg0: i32) -> (i32, i32, i32, i32) {
    %c0_i32 = arith.constant 0 : i32
    %c0_i32_0 = arith.constant 0 : i32
    %c0_i32_1 = arith.constant 0 : i32
    %c0_i32_2 = arith.constant 0 : i32
    return %arg0, %c0_i32, %c0_i32_0, %c0_i32_1 : i32, i32, i32, i32
  }
  func.func @transform_1(%arg0: i32) -> (i32, i32, i32, i32) {
    %c0_i32 = arith.constant 0 : i32
    %c0_i32_0 = arith.constant 0 : i32
    %c0_i32_1 = arith.constant 0 : i32
    %c0_i32_2 = arith.constant 0 : i32
    return %arg0, %c0_i32, %c0_i32_0, %c0_i32_1 : i32, i32, i32, i32
  }
  func.func @transform_2(%arg0: i32) -> (i32, i32, i32) {
    %c0_i32 = arith.constant 0 : i32
    %c0_i32_0 = arith.constant 0 : i32
    %c0_i32_1 = arith.constant 0 : i32
    %c0_i32_2 = arith.constant 0 : i32
    return %c0_i32, %c0_i32_0, %c0_i32_1 : i32, i32, i32
  }
  func.func @transform_3(%arg0: i32) -> (i32, i32, i32) {
    %c0_i32 = arith.constant 0 : i32
    %c0_i32_0 = arith.constant 0 : i32
    %c0_i32_1 = arith.constant 0 : i32
    %c0_i32_2 = arith.constant 0 : i32
    return %c0_i32, %c0_i32_0, %c0_i32_1 : i32, i32, i32
  }
  func.func @transform_4(%arg0: i32) -> (i32, i32) {
    %c0_i32 = arith.constant 0 : i32
    %c0_i32_0 = arith.constant 0 : i32
    %c0_i32_1 = arith.constant 0 : i32
    return %c0_i32, %c0_i32_0 : i32, i32
  }
  func.func @transform_5(%arg0: i32) -> (i32, i32) {
    %c0_i32 = arith.constant 0 : i32
    %c0_i32_0 = arith.constant 0 : i32
    %c0_i32_1 = arith.constant 0 : i32
    return %c0_i32, %c0_i32_0 : i32, i32
  }
  func.func @transform_6(%arg0: i32) -> (i32, i32, i32, i32) {
    %c0_i32 = arith.constant 0 : i32
    %c0_i32_0 = arith.constant 0 : i32
    %c0_i32_1 = arith.constant 0 : i32
    %c0_i32_2 = arith.constant 0 : i32
    return %arg0, %c0_i32, %c0_i32_0, %c0_i32_1 : i32, i32, i32, i32
  }
}

</mosaic_0001>

<bundles_post_ra>
// kernel: _upconv_block_forward.3
= control target key start
LH: loop header
LB: loop body
LE: loop exit
PB: predicated region body
PF: predicated region fallthrough
CT: control target
= control target key end

     0   :  { %s977_s15 = smov 0   ;;  %s1222_s0 = inlined_call_operand.vmem [shape: f32[2,64,8], index: 0, kind: input, shape index: {}]   ;;  %s1223_s1 = inlined_call_operand.vmem [shape: f32[8,4], index: 1, kind: input, shape index: {}]   ;;  %s1224_s2 = inlined_call_operand.vmem [shape: f32[1,4], index: 2, kind: input, shape index: {}]   ;;  %s1225_s3 = inlined_call_operand.vmem [shape: f32[1,4], index: 3, kind: input, shape index: {}]   ;;  %s1226_s4 = inlined_call_operand.vmem [shape: f32[2,4,8,8,4], index: 4, kind: output, shape index: {}]  }
   0x1 LB: > { %s864_s16 = sadd.s32 4294967295, %s950_s15   ;;  %p868_p0 = scmp.ge.s32.totalorder %s950_s15, 1  ;;  %s950_s15 = sphi %s977_s15, %s14_s15  }
   0x2   : > { %p162_p1 = scmp.lt.s32.totalorder %s950_s15, 3 }
   0x4   : > { %p163_p2 = pnand %p868_p0, %p162_p1 }
   0x5   : > { %v206_v0 = vld [vmem:[%s1223_s1] sm:$0xff] (!%p163_p2)  ;;  %p188_p3 = scmp.lt.s32.totalorder (!%p163_p2), %s864_s16, 1  ;;  %vm207_vm0 = vcmask (!%p163_p2), 64512   ;;  %vm368_vm1 = vcmask (!%p163_p2), 31744   ;;  %vm390_vm2 = vcmask (!%p163_p2), 24576  }
   0x6   : > { %166 = sbr.rel (%p163_p2) target bundleno = 308 (0x134), region = 36  ;;  %920 = vmatprep.subr.mxu0 (!%p163_p2), %v206_v0  ;;  %934 = vmatprep.subr.mxu1 (!%p163_p2), %v206_v0  ;;  %v881_v9 = vld [vmem:[%s1224_s2] ss:$0 sm:$0xff] (!%p163_p2) }
   0x7   : > { %921 = vmatpush3.msra.mxu0 (!%p163_p2), %v206_v0  ;;  %935 = vmatpush3.msra.mxu1 (!%p163_p2), %v206_v0  ;;  %v882_v11 = vld [vmem:[%s1225_s3] ss:$0 sm:$0xff] (!%p163_p2) }
   0xd   : > { %s1228_s16 = smov (!%p188_p3, %s864_s16), 1 }
   0xe   : > { %s909_s19 = sshll.u32 %s1228_s16, 6  ;;  %s910_s27 = sshll.u32 %s1228_s16, 8 }
   0xf   : > { %s192_s22 = scalar_lea.vmem %s1222_s0, %s909_s19  ;;  %s1090_s30 = scalar_lea.vmem %s1226_s4, %s910_s27 }
  0x10   : > { %v198_v1 = vld [vmem:[%s192_s22] sm:$0xff]  ;;  %v199_v3 = vld [vmem:[%s192_s22 + $0x8] sm:$0xff]  ;;  %v200_v5 = vld [vmem:[%s192_s22 + $0x10] sm:$0xff] }
  0x11   : > { %v202_v2 = vld [vmem:[%s192_s22 + $0x20] sm:$0xff]  ;;  %922 = vmatprep.mubr.msk.f32.mxu0 %vm207_vm0, %v198_v1  ;;  %v203_v4 = vld [vmem:[%s192_s22 + $0x28] sm:$0xff]  ;;  %v204_v6 = vld [vmem:[%s192_s22 + $0x30] sm:$0xff] }
  0x12   : > { %928 = vmatprep.mubr.msk.f32.mxu1 %vm207_vm0, %v202_v2  ;;  %923 = vmatmul.mubr.msk.f32.vlgmr.msra.gmra.mrb[0].mxu0 %vm207_vm0, %v199_v3  ;;  %v201_v7 = vld [vmem:[%s192_s22 + $0x18] sm:$0xff] }
  0x13   : > { %929 = vmatmul.mubr.msk.f32.vlgmr.msra.gmra.mrb[0].mxu1 %vm207_vm0, %v203_v4  ;;  %925 = vmatprep.mubr.msk.f32.mxu0 %vm207_vm0, %v200_v5  ;;  %v205_v8 = vld [vmem:[%s192_s22 + $0x38] sm:$0xff] }
  0x14   : > { %931 = vmatprep.mubr.msk.f32.mxu1 %vm207_vm0, %v204_v6 }
  0x16   : > { %926 = vmatmul.mubr.msk.f32.gmra.mrb[2].mxu0 %vm207_vm0, %v201_v7 }
  0x17   : > { %932 = vmatmul.mubr.msk.f32.gmra.mrb[2].mxu1 %vm207_vm0, %v205_v8 }
  0xe5   : > { %v924_v10 = vpop.f32.mrb[0].mxu0 }
  0xe6   : > { %v930_v12 = vpop.f32.mrb[0].mxu1  ;;  %v345_v13 = vmul.f32 %v924_v10, %v881_v9  ;;  %v298_v15 = vpop.f32.mrb[1].mxu0 }
  0xe7   : > { %v349_v14 = vmul.f32 %v930_v12, %v881_v9  ;;  %v318_v16 = vpop.f32.mrb[1].mxu1  ;;  %v344_v17 = vmul.f32 %v881_v9, %v298_v15 }
  0xe8   : > { %v348_v18 = vmul.f32 %v881_v9, %v318_v16  ;;  %v360_v19 = vadd.f32 %v882_v11, %v345_v13 }
  0xe9   : > { %v364_v20 = vadd.f32 %v882_v11, %v349_v14  ;;  %v359_v21 = vadd.f32 %v882_v11, %v344_v17  ;;  %v927_v23 = vpop.f32.mrb[2].mxu0 }
  0xea   : > { %v363_v22 = vadd.f32 %v882_v11, %v348_v18  ;;  %v933_v24 = vpop.f32.mrb[2].mxu1  ;;  %370 = vst.msk [vmem:[#allocation2 + $0x21] sm:$0xff] %vm368_vm1, %v360_v19  ;;  %v347_v25 = vmul.f32 %v927_v23, %v881_v9  ;;  %v308_v27 = vpop.f32.mrb[3].mxu0 }
  0xeb   : > { %374 = vst.msk [vmem:[#allocation2 + $0x61] sm:$0xff] %vm368_vm1, %v364_v20  ;;  %v351_v26 = vmul.f32 %v933_v24, %v881_v9  ;;  %v328_v28 = vpop.f32.mrb[3].mxu1  ;;  %369 = vst.msk [vmem:[#allocation2 + $0x11] sm:$0xff] %vm368_vm1, %v359_v21  ;;  %v346_v29 = vmul.f32 %v881_v9, %v308_v27 }
  0xec   : > { %377 = vst.msk [vmem:[#allocation2 + $0x1] sm:$0xff] %vm368_vm1, %v359_v21  ;;  %373 = vst.msk [vmem:[#allocation2 + $0x51] sm:$0xff] %vm368_vm1, %v363_v22  ;;  %v350_v30 = vmul.f32 %v881_v9, %v328_v28  ;;  %v362_v31 = vadd.f32 %v882_v11, %v347_v25 }
  0xed   : > { %v366_v32 = vadd.f32 %v882_v11, %v351_v26  ;;  %v361_v33 = vadd.f32 %v882_v11, %v346_v29 }
  0xee   : > { %v365_v34 = vadd.f32 %v882_v11, %v350_v30  ;;  %372 = vst.msk [vmem:[#allocation2 + $0x41] sm:$0xff] %vm368_vm1, %v362_v31 }
  0xef   : > { %376 = vst.msk [vmem:[#allocation2 + $0x81] sm:$0xff] %vm368_vm1, %v366_v32  ;;  %379 = vst.msk [vmem:[#allocation2 + $0x91] sm:$0xff] %vm368_vm1, %v366_v32 }
  0xf0   : > { %371 = vst.msk [vmem:[#allocation2 + $0x31] sm:$0xff] %vm368_vm1, %v361_v33  ;;  %375 = vst.msk [vmem:[#allocation2 + $0x71] sm:$0xff] %vm368_vm1, %v365_v34 }
  0xf1   : > { %v382_v35 = vld [vmem:[#allocation2 + $0x21] sm:$0x1]  ;;  %v403_v36 = vld [vmem:[#allocation2 + $0x28] sm:$0x1] }
  0xf2   : > { %v463_v37 = vld [vmem:[#allocation2 + $0x21] sm:$0xff]  ;;  %393 = vst.msk [vmem:[#allocation2 + $0x20] sm:$0x1] %vm390_vm2, %v382_v35  ;;  %413 = vst.msk [vmem:[#allocation2 + $0x29] sm:$0x1] %vm390_vm2, %v403_v36  ;;  %v462_v50 = vld [vmem:[#allocation2 + $0x11] sm:$0xff] }
  0xf3   : > { %v386_v38 = vld [vmem:[#allocation2 + $0x61] sm:$0x1]  ;;  %v407_v39 = vld [vmem:[#allocation2 + $0x68] sm:$0x1]  ;;  %v381_v42 = vld [vmem:[#allocation2 + $0x11] sm:$0x1] }
  0xf4   : > { %397 = vst.msk [vmem:[#allocation2 + $0x60] sm:$0x1] %vm390_vm2, %v386_v38  ;;  %417 = vst.msk [vmem:[#allocation2 + $0x69] sm:$0x1] %vm390_vm2, %v407_v39  ;;  %v467_v40 = vld [vmem:[#allocation2 + $0x61] sm:$0xff]  ;;  %v1022_v43 = vmul.f32 0.25, %v463_v37 }
  0xf5   : > { %v380_v41 = vld [vmem:[#allocation2 + $0x1] sm:$0x1]  ;;  %v1024_v44 = vmul.f32 0.75, %v463_v37  ;;  %392 = vst.msk [vmem:[#allocation2 + $0x10] sm:$0x1] %vm390_vm2, %v381_v42  ;;  %v1028_v47 = vmul.f32 0.25, %v467_v40 }
  0xf6   : > { %391 = vst.msk [vmem:[#allocation2] sm:$0x1] %vm390_vm2, %v380_v41  ;;  %v401_v45 = vld [vmem:[#allocation2 + $0x8] sm:$0x1]  ;;  %v402_v46 = vld [vmem:[#allocation2 + $0x18] sm:$0x1] }
  0xf7   : > { %v1030_v48 = vmul.f32 0.75, %v467_v40  ;;  %411 = vst.msk [vmem:[#allocation2 + $0x9] sm:$0x1] %vm390_vm2, %v401_v45  ;;  %412 = vst.msk [vmem:[#allocation2 + $0x19] sm:$0x1] %vm390_vm2, %v402_v46  ;;  %v461_v49 = vld [vmem:[#allocation2 + $0x1] sm:$0xff] }
  0xf8   : > { %v385_v51 = vld [vmem:[#allocation2 + $0x51] sm:$0x1]  ;;  %v469_v52 = vmul.f32 0.25, %v461_v49  ;;  %v470_v53 = vmul.f32 0.25, %v462_v50  ;;  %v485_v54 = vmul.f32 0.75, %v462_v50  ;;  %v465_v0 = vld [vmem:[#allocation2 + $0x41] sm:$0xff] }
  0xf9   : > { %396 = vst.msk [vmem:[#allocation2 + $0x50] sm:$0x1] %vm390_vm2, %v385_v51  ;;  %v406_v55 = vld [vmem:[#allocation2 + $0x58] sm:$0x1]  ;;  %v384_v59 = vld [vmem:[#allocation2 + $0x41] sm:$0x1] }
  0xfa   : > { %v466_v56 = vld [vmem:[#allocation2 + $0x51] sm:$0xff]  ;;  %416 = vst.msk [vmem:[#allocation2 + $0x59] sm:$0x1] %vm390_vm2, %v406_v55  ;;  %v405_v60 = vld [vmem:[#allocation2 + $0x48] sm:$0x1]  ;;  %v493_v61 = vadd.f32 %v485_v54, %v469_v52  ;;  %v494_v62 = vadd.f32 %v1024_v44, %v470_v53  ;;  %v687_v63 = vadd.f32 %v485_v54, %v1022_v43  ;;  %v423_v3 = vld [vmem:[#allocation2 + $0x20] sm:$0xff] }
  0xfb   : > { %v1036_v57 = vmul.f32 0.25, %v466_v56  ;;  %v1038_v58 = vmul.f32 0.75, %v466_v56  ;;  %395 = vst.msk [vmem:[#allocation2 + $0x40] sm:$0x1] %vm390_vm2, %v384_v59  ;;  %415 = vst.msk [vmem:[#allocation2 + $0x49] sm:$0x1] %vm390_vm2, %v405_v60 }
  0xfc   : > { %v388_v1 = vld [vmem:[#allocation2 + $0x81] sm:$0x1]  ;;  %v389_v2 = vld [vmem:[#allocation2 + $0x91] sm:$0x1]  ;;  %v503_v4 = vld [vmem:[#allocation2 + $0x22] sm:$0xff]  ;;  %v1052_v7 = vmul.f32 0.25, %v465_v0 }
  0xfd   : > { %v1046_v5 = vadd.f32 %v1030_v48, %v1036_v57  ;;  %v1050_v6 = vadd.f32 %v1038_v58, %v1028_v47  ;;  %v1054_v8 = vmul.f32 0.75, %v465_v0  ;;  %399 = vst.msk [vmem:[#allocation2 + $0x80] sm:$0x1] %vm390_vm2, %v388_v1  ;;  %400 = vst.msk [vmem:[#allocation2 + $0x90] sm:$0x1] %vm390_vm2, %v389_v2  ;;  %v1058_v10 = vmul.f32 0.25, %v423_v3 }
  0xfe   : > { %v409_v9 = vld [vmem:[#allocation2 + $0x88] sm:$0x1]  ;;  %v1060_v11 = vmul.f32 0.75, %v423_v3  ;;  %v1062_v12 = vmul.f32 0.25, %v503_v4  ;;  %v1064_v13 = vmul.f32 0.75, %v503_v4  ;;  %v427_v14 = vld [vmem:[#allocation2 + $0x60] sm:$0xff] }
  0xff   : > { %v507_v15 = vld [vmem:[#allocation2 + $0x62] sm:$0xff]  ;;  %419 = vst.msk [vmem:[#allocation2 + $0x89] sm:$0x1] %vm390_vm2, %v409_v9  ;;  %v1067_v16 = vmul.f32 0.25, %v427_v14  ;;  %v1069_v17 = vmul.f32 0.75, %v427_v14  ;;  %v422_v21 = vld [vmem:[#allocation2 + $0x10] sm:$0xff] }
 0x100   : > { %v1071_v18 = vmul.f32 0.25, %v507_v15  ;;  %v1073_v19 = vmul.f32 0.75, %v507_v15  ;;  %v421_v20 = vld [vmem:[#allocation2] sm:$0xff]  ;;  %v430_v23 = vmul.f32 0.25, %v422_v21  ;;  %v445_v24 = vmul.f32 0.75, %v422_v21  ;;  %v502_v26 = vld [vmem:[#allocation2 + $0x12] sm:$0xff] }
 0x101   : > { %v429_v22 = vmul.f32 0.25, %v421_v20  ;;  %v501_v25 = vld [vmem:[#allocation2 + $0x2] sm:$0xff]  ;;  %v549_v27 = vmul.f32 0.75, %v493_v61  ;;  %v510_v29 = vmul.f32 0.25, %v502_v26  ;;  %v525_v30 = vmul.f32 0.75, %v502_v26  ;;  %v426_v32 = vld [vmem:[#allocation2 + $0x50] sm:$0xff] }
 0x102   : > { %v509_v28 = vmul.f32 0.25, %v501_v25  ;;  %v550_v31 = vmul.f32 0.75, %v494_v62  ;;  %v454_v34 = vadd.f32 %v1060_v11, %v430_v23  ;;  %v647_v35 = vadd.f32 %v445_v24, %v1058_v10  ;;  %v410_v37 = vld [vmem:[#allocation2 + $0x98] sm:$0x1]  ;;  %v383_v45 = vld [vmem:[#allocation2 + $0x31] sm:$0x1] }
 0x103   : > { %v453_v33 = vadd.f32 %v445_v24, %v429_v22  ;;  %v743_v36 = vmul.f32 0.75, %v687_v63  ;;  %v534_v39 = vadd.f32 %v1064_v13, %v510_v29  ;;  %v727_v40 = vadd.f32 %v525_v30, %v1062_v12  ;;  %v506_v42 = vld [vmem:[#allocation2 + $0x52] sm:$0xff]  ;;  %420 = vst.msk [vmem:[#allocation2 + $0x99] sm:$0x1] %vm390_vm2, %v410_v37  ;;  %394 = vst.msk [vmem:[#allocation2 + $0x30] sm:$0x1] %vm390_vm2, %v383_v45 }
 0x104   : > { %v533_v38 = vadd.f32 %v525_v30, %v509_v28  ;;  %v1079_v41 = vmul.f32 0.25, %v426_v32  ;;  %v542_v49 = vmul.f32 0.25, %v454_v34  ;;  %v735_v50 = vmul.f32 0.25, %v647_v35  ;;  %v404_v56 = vld [vmem:[#allocation2 + $0x38] sm:$0x1]  ;;  %v425_v21 = vld [vmem:[#allocation2 + $0x40] sm:$0xff] }
 0x105   : > { %v541_v46 = vmul.f32 0.25, %v453_v33  ;;  %v449_v51 = vmul.f32 0.75, %v426_v32  ;;  %v566_v53 = vmul.f32 0.25, %v534_v39  ;;  %v759_v54 = vmul.f32 0.25, %v727_v40  ;;  %414 = vst.msk [vmem:[#allocation2 + $0x39] sm:$0x1] %vm390_vm2, %v404_v56 }
 0x106   : > { %v565_v52 = vmul.f32 0.25, %v533_v38  ;;  %v458_v55 = vadd.f32 %v1069_v17, %v1079_v41  ;;  %v558_v60 = vadd.f32 %v550_v31, %v542_v49  ;;  %v751_v61 = vadd.f32 %v743_v36, %v735_v50  ;;  %v387_v63 = vld [vmem:[#allocation2 + $0x71] sm:$0x1]  ;;  %v408_v0 = vld [vmem:[#allocation2 + $0x78] sm:$0x1]  ;;  %v505_v30 = vld [vmem:[#allocation2 + $0x42] sm:$0xff] }
 0x107   : > { %v557_v59 = vadd.f32 %v549_v27, %v541_v46  ;;  %v514_v62 = vmul.f32 0.25, %v506_v42  ;;  %v574_v2 = vadd.f32 %v566_v53, %v550_v31  ;;  %v767_v3 = vadd.f32 %v759_v54, %v743_v36  ;;  %398 = vst.msk [vmem:[#allocation2 + $0x70] sm:$0x1] %vm390_vm2, %v387_v63  ;;  %418 = vst.msk [vmem:[#allocation2 + $0x79] sm:$0x1] %vm390_vm2, %v408_v0  ;;  %v484_v54 = vld [vmem:[#allocation2 + $0x81] sm:$0xff] }
 0x108   : > { %v573_v1 = vadd.f32 %v565_v52, %v549_v27  ;;  %v529_v4 = vmul.f32 0.75, %v506_v42  ;;  %v582_v14 = vmax.f32 %v558_v60, 0.0  ;;  %v775_v15 = vmax.f32 %v751_v61, 0.0  ;;  %v444_v42 = vld [vmem:[#allocation2 + $0x80] sm:$0xff]  ;;  %v638_v63 = vld [vmem:[#allocation2 + $0x90] sm:$0xff] }
 0x109   : > { %v581_v9 = vmax.f32 %v557_v59, 0.0  ;;  %v538_v20 = vadd.f32 %v1073_v19, %v514_v62  ;;  %v598_v23 = vmax.f32 %v574_v2, 0.0  ;;  %v792_v24 = vmax.f32 %v767_v3, 0.0  ;;  %v678_v3 = vld [vmem:[#allocation2 + $0x91] sm:$0xff] }
 0x10a   : > { %v597_v22 = vmax.f32 %v573_v1, 0.0  ;;  %v546_v25 = vmul.f32 0.25, %v458_v55  ;;  %590 = vst.msk [vmem:[%s1090_s30 + $0x8] sm:$0xff] %vm368_vm1, %v582_v14  ;;  %891 = vst.msk [vmem:[%s1090_s30 + $0x80] sm:$0xff] %vm368_vm1, %v775_v15  ;;  %v554_v26 = vmul.f32 0.75, %v1046_v5  ;;  %v651_v28 = vadd.f32 %v449_v51, %v1067_v16  ;;  %v524_v55 = vld [vmem:[#allocation2 + $0x82] sm:$0xff] }
 0x10b   : > { %589 = vst.msk [vmem:[%s1090_s30] sm:$0xff] %vm368_vm1, %v581_v9  ;;  %v570_v27 = vmul.f32 0.25, %v538_v20  ;;  %v731_v29 = vadd.f32 %v529_v4, %v1071_v18  ;;  %884 = vst.msk [vmem:[%s1090_s30 + $0x48] sm:$0xff] %vm368_vm1, %v598_v23  ;;  %v747_v31 = vmul.f32 0.75, %v1050_v6  ;;  %v1111_v32 = vmul.f32 0.25, %v425_v21  ;;  %v424_v23 = vld [vmem:[#allocation2 + $0x30] sm:$0xff] }
 0x10c   : > { %883 = vst.msk [vmem:[%s1090_s30 + $0x40] sm:$0xff] %vm368_vm1, %v597_v22  ;;  %899 = vst.msk [vmem:[%s1090_s30 + $0xc0] sm:$0xff] %vm368_vm1, %v792_v24  ;;  %v1113_v33 = vmul.f32 0.75, %v425_v21  ;;  %v497_v5 = vadd.f32 %v1038_v58, %v1052_v7  ;;  %v562_v34 = vadd.f32 %v554_v26, %v546_v25  ;;  %v739_v36 = vmul.f32 0.25, %v651_v28  ;;  %v464_v28 = vld [vmem:[#allocation2 + $0x31] sm:$0xff] }
 0x10d   : > { %v578_v35 = vadd.f32 %v570_v27, %v554_v26  ;;  %v763_v37 = vmul.f32 0.25, %v731_v29  ;;  %v457_v38 = vadd.f32 %v449_v51, %v1111_v32  ;;  %v1118_v39 = vmul.f32 0.25, %v505_v30 }
 0x10e   : > { %v1120_v40 = vmul.f32 0.75, %v505_v30  ;;  %v553_v6 = vmul.f32 0.75, %v497_v5  ;;  %v586_v45 = vmax.f32 %v562_v34, 0.0  ;;  %v755_v49 = vadd.f32 %v747_v31, %v739_v36  ;;  %v504_v34 = vld [vmem:[#allocation2 + $0x32] sm:$0xff] }
 0x10f   : > { %v602_v46 = vmax.f32 %v578_v35, 0.0  ;;  %v771_v50 = vadd.f32 %v763_v37, %v747_v31  ;;  %v537_v58 = vadd.f32 %v529_v4, %v1118_v39  ;;  %v545_v52 = vmul.f32 0.25, %v457_v38 }
 0x110   : > { %v650_v53 = vadd.f32 %v1113_v33, %v1079_v41  ;;  %v690_v51 = vadd.f32 %v1054_v8, %v1036_v57  ;;  %594 = vst.msk [vmem:[%s1090_s30 + $0x28] sm:$0xff] %vm368_vm1, %v586_v45  ;;  %v779_v56 = vmax.f32 %v755_v49, 0.0  ;;  %v730_v60 = vadd.f32 %v1120_v40, %v514_v62  ;;  %v718_v62 = vld [vmem:[#allocation2 + $0x92] sm:$0xff] }
 0x111   : > { %888 = vst.msk [vmem:[%s1090_s30 + $0x68] sm:$0xff] %vm368_vm1, %v602_v46  ;;  %v796_v59 = vmax.f32 %v771_v50, 0.0  ;;  %v1132_v61 = vmul.f32 0.75, %v444_v42  ;;  %v561_v0 = vadd.f32 %v553_v6, %v545_v52  ;;  %v569_v41 = vmul.f32 0.25, %v537_v58 }
 0x112   : > { %v738_v1 = vmul.f32 0.25, %v650_v53  ;;  %v746_v2 = vmul.f32 0.75, %v690_v51  ;;  %895 = vst.msk [vmem:[%s1090_s30 + $0xa0] sm:$0xff] %vm368_vm1, %v779_v56  ;;  %v762_v57 = vmul.f32 0.25, %v730_v60  ;;  %v1138_v4 = vmul.f32 0.75, %v484_v54 }
 0x113   : > { %903 = vst.msk [vmem:[%s1090_s30 + $0xe0] sm:$0xff] %vm368_vm1, %v796_v59  ;;  %v1140_v9 = vmul.f32 0.75, %v524_v55  ;;  %v1142_v14 = vmul.f32 0.25, %v444_v42  ;;  %v577_v15 = vadd.f32 %v569_v41, %v553_v6  ;;  %v585_v20 = vmax.f32 %v561_v0, 0.0 }
 0x114   : > { %v754_v21 = vadd.f32 %v746_v2, %v738_v1  ;;  %v646_v22 = vmul.f32 0.25, %v638_v63  ;;  %v770_v24 = vadd.f32 %v762_v57, %v746_v2  ;;  %v1144_v25 = vmul.f32 0.25, %v484_v54 }
 0x115   : > { %v686_v26 = vmul.f32 0.25, %v678_v3  ;;  %v1146_v27 = vmul.f32 0.25, %v524_v55  ;;  %593 = vst.msk [vmem:[%s1090_s30 + $0x20] sm:$0xff] %vm368_vm1, %v585_v20  ;;  %v601_v29 = vmax.f32 %v577_v15, 0.0  ;;  %v726_v5 = vmul.f32 0.25, %v718_v62 }
 0x116   : > { %v778_v30 = vmax.f32 %v754_v21, 0.0  ;;  %v654_v31 = vadd.f32 %v646_v22, %v1132_v61  ;;  %v795_v35 = vmax.f32 %v770_v24, 0.0  ;;  %v432_v37 = vmul.f32 0.25, %v424_v23  ;;  %v428_v24 = vld [vmem:[#allocation2 + $0x70] sm:$0xff] }
 0x117   : > { %v694_v36 = vadd.f32 %v686_v26, %v1138_v4  ;;  %v447_v38 = vmul.f32 0.75, %v424_v23  ;;  %887 = vst.msk [vmem:[%s1090_s30 + $0x60] sm:$0xff] %vm368_vm1, %v601_v29  ;;  %v734_v6 = vadd.f32 %v726_v5, %v1140_v9  ;;  %v472_v45 = vmul.f32 0.25, %v464_v28  ;;  %v468_v26 = vld [vmem:[#allocation2 + $0x71] sm:$0xff] }
 0x118   : > { %894 = vst.msk [vmem:[%s1090_s30 + $0x98] sm:$0xff] %vm368_vm1, %v778_v30  ;;  %v742_v42 = vmul.f32 0.25, %v654_v31  ;;  %v487_v46 = vmul.f32 0.75, %v464_v28  ;;  %902 = vst.msk [vmem:[%s1090_s30 + $0xd8] sm:$0xff] %vm368_vm1, %v795_v35  ;;  %v456_v58 = vadd.f32 %v1113_v33, %v432_v37  ;;  %v512_v52 = vmul.f32 0.25, %v504_v34 }
 0x119   : > { %v750_v49 = vmul.f32 0.75, %v694_v36  ;;  %v455_v50 = vadd.f32 %v447_v38, %v1058_v10  ;;  %v766_v53 = vmul.f32 0.25, %v734_v6  ;;  %v496_v54 = vadd.f32 %v1054_v8, %v472_v45 }
 0x11a   : > { %v495_v51 = vadd.f32 %v487_v46, %v1022_v43  ;;  %v527_v55 = vmul.f32 0.75, %v504_v34  ;;  %v536_v59 = vadd.f32 %v1120_v40, %v512_v52  ;;  %v544_v63 = vmul.f32 0.25, %v456_v58 }
 0x11b   : > { %v758_v56 = vadd.f32 %v750_v49, %v742_v42  ;;  %v543_v60 = vmul.f32 0.25, %v455_v50  ;;  %v774_v0 = vadd.f32 %v766_v53, %v750_v49  ;;  %v552_v1 = vmul.f32 0.75, %v496_v54 }
 0x11c   : > { %v535_v41 = vadd.f32 %v527_v55, %v1062_v12  ;;  %v551_v10 = vmul.f32 0.75, %v495_v51  ;;  %v568_v2 = vmul.f32 0.25, %v536_v59  ;;  %v648_v3 = vadd.f32 %v1060_v11, %v432_v37 }
 0x11d   : > { %v782_v33 = vmax.f32 %v758_v56, 0.0  ;;  %v649_v43 = vadd.f32 %v447_v38, %v1111_v32  ;;  %v799_v8 = vmax.f32 %v774_v0, 0.0  ;;  %v560_v62 = vadd.f32 %v552_v1, %v544_v63 }
 0x11e   : > { %v559_v57 = vadd.f32 %v551_v10, %v543_v60  ;;  %v567_v15 = vmul.f32 0.25, %v535_v41  ;;  %v576_v40 = vadd.f32 %v568_v2, %v552_v1  ;;  %v688_v12 = vadd.f32 %v1024_v44, %v472_v45  ;;  %v508_v45 = vld [vmem:[#allocation2 + $0x72] sm:$0xff] }
 0x11f   : > { %898 = vst.msk [vmem:[%s1090_s30 + $0xb8] sm:$0xff] %vm368_vm1, %v782_v33  ;;  %v689_v20 = vadd.f32 %v487_v46, %v1052_v7  ;;  %v728_v21 = vadd.f32 %v1064_v13, %v512_v52  ;;  %906 = vst.msk [vmem:[%s1090_s30 + $0xf8] sm:$0xff] %vm368_vm1, %v799_v8  ;;  %v584_v22 = vmax.f32 %v560_v62, 0.0  ;;  %v729_v23 = vadd.f32 %v527_v55, %v1118_v39 }
 0x120   : > { %v575_v11 = vadd.f32 %v567_v15, %v551_v10  ;;  %v583_v32 = vmax.f32 %v559_v57, 0.0  ;;  %v600_v28 = vmax.f32 %v576_v40, 0.0  ;;  %v736_v29 = vmul.f32 0.25, %v648_v3 }
 0x121   : > { %v737_v30 = vmul.f32 0.25, %v649_v43  ;;  %v744_v31 = vmul.f32 0.75, %v688_v12  ;;  %592 = vst.msk [vmem:[%s1090_s30 + $0x18] sm:$0xff] %vm368_vm1, %v584_v22  ;;  %v745_v7 = vmul.f32 0.75, %v689_v20  ;;  %v760_v13 = vmul.f32 0.25, %v728_v21 }
 0x122   : > { %591 = vst.msk [vmem:[%s1090_s30 + $0x10] sm:$0xff] %vm368_vm1, %v583_v32  ;;  %v599_v44 = vmax.f32 %v575_v11, 0.0  ;;  %v761_v5 = vmul.f32 0.25, %v729_v23  ;;  %886 = vst.msk [vmem:[%s1090_s30 + $0x58] sm:$0xff] %vm368_vm1, %v600_v28  ;;  %v436_v35 = vmul.f32 0.25, %v428_v24  ;;  %v451_v39 = vmul.f32 0.75, %v428_v24 }
 0x123   : > { %v752_v34 = vadd.f32 %v744_v31, %v736_v29  ;;  %v476_v36 = vmul.f32 0.25, %v468_v26  ;;  %v753_v37 = vadd.f32 %v745_v7, %v737_v30  ;;  %v768_v38 = vadd.f32 %v760_v13, %v744_v31 }
 0x124   : > { %885 = vst.msk [vmem:[%s1090_s30 + $0x50] sm:$0xff] %vm368_vm1, %v599_v44  ;;  %v769_v6 = vadd.f32 %v761_v5, %v745_v7  ;;  %v491_v42 = vmul.f32 0.75, %v468_v26  ;;  %v459_v49 = vadd.f32 %v451_v39, %v1067_v16  ;;  %v460_v50 = vadd.f32 %v1132_v61, %v436_v35 }
 0x125   : > { %v776_v46 = vmax.f32 %v752_v34, 0.0  ;;  %v500_v58 = vadd.f32 %v1138_v4, %v476_v36  ;;  %v777_v52 = vmax.f32 %v753_v37, 0.0  ;;  %v793_v53 = vmax.f32 %v768_v38, 0.0 }
 0x126   : > { %v794_v51 = vmax.f32 %v769_v6, 0.0  ;;  %v499_v54 = vadd.f32 %v491_v42, %v1028_v47  ;;  %v516_v55 = vmul.f32 0.25, %v508_v45  ;;  %v531_v56 = vmul.f32 0.75, %v508_v45 }
 0x127   : > { %892 = vst.msk [vmem:[%s1090_s30 + $0x88] sm:$0xff] %vm368_vm1, %v776_v46  ;;  %v547_v59 = vmul.f32 0.25, %v459_v49  ;;  %v548_v60 = vmul.f32 0.25, %v460_v50  ;;  %893 = vst.msk [vmem:[%s1090_s30 + $0x90] sm:$0xff] %vm368_vm1, %v777_v52  ;;  %v556_v61 = vmul.f32 0.75, %v500_v58  ;;  %v652_v4 = vadd.f32 %v1069_v17, %v436_v35 }
 0x128   : > { %900 = vst.msk [vmem:[%s1090_s30 + $0xc8] sm:$0xff] %vm368_vm1, %v793_v53  ;;  %901 = vst.msk [vmem:[%s1090_s30 + $0xd0] sm:$0xff] %vm368_vm1, %v794_v51  ;;  %v555_v16 = vmul.f32 0.75, %v499_v54  ;;  %v653_v63 = vadd.f32 %v1142_v14, %v451_v39  ;;  %v539_v47 = vadd.f32 %v531_v56, %v1071_v18  ;;  %v540_v0 = vadd.f32 %v1140_v9, %v516_v55 }
 0x129   : > { %v692_v41 = vadd.f32 %v1030_v48, %v476_v36  ;;  %v693_v10 = vadd.f32 %v1144_v25, %v491_v42  ;;  %v564_v33 = vadd.f32 %v556_v61, %v548_v60  ;;  %v732_v2 = vadd.f32 %v1073_v19, %v516_v55 }
 0x12a   : > { %v563_v1 = vadd.f32 %v555_v16, %v547_v59  ;;  %v733_v3 = vadd.f32 %v1146_v27, %v531_v56  ;;  %v571_v43 = vmul.f32 0.25, %v539_v47  ;;  %v572_v17 = vmul.f32 0.25, %v540_v0 }
 0x12b   : > { %v740_v8 = vmul.f32 0.25, %v652_v4  ;;  %v741_v14 = vmul.f32 0.25, %v653_v63  ;;  %v588_v18 = vmax.f32 %v564_v33, 0.0  ;;  %v748_v62 = vmul.f32 0.75, %v692_v41 }
 0x12c   : > { %v587_v57 = vmax.f32 %v563_v1, 0.0  ;;  %v749_v9 = vmul.f32 0.75, %v693_v10  ;;  %v579_v48 = vadd.f32 %v571_v43, %v555_v16  ;;  %v580_v25 = vadd.f32 %v572_v17, %v556_v61 }
 0x12d   : > { %v764_v15 = vmul.f32 0.25, %v732_v2  ;;  %v765_v40 = vmul.f32 0.25, %v733_v3  ;;  %596 = vst.msk [vmem:[%s1090_s30 + $0x38] sm:$0xff] %vm368_vm1, %v588_v18  ;;  %v756_v19 = vadd.f32 %v748_v62, %v740_v8 }
 0x12e   : > { %595 = vst.msk [vmem:[%s1090_s30 + $0x30] sm:$0xff] %vm368_vm1, %v587_v57  ;;  %v757_v27 = vadd.f32 %v749_v9, %v741_v14  ;;  %v603_v12 = vmax.f32 %v579_v48, 0.0  ;;  %v604_v20 = vmax.f32 %v580_v25, 0.0 }
 0x12f   : > { %v772_v21 = vadd.f32 %v764_v15, %v748_v62  ;;  %v773_v11 = vadd.f32 %v765_v40, %v749_v9  ;;  %v780_v32 = vmax.f32 %v756_v19, 0.0 }
 0x130   : > { %v781_v22 = vmax.f32 %v757_v27, 0.0  ;;  %889 = vst.msk [vmem:[%s1090_s30 + $0x70] sm:$0xff] %vm368_vm1, %v603_v12  ;;  %890 = vst.msk [vmem:[%s1090_s30 + $0x78] sm:$0xff] %vm368_vm1, %v604_v20 }
 0x131   : > { %v797_v23 = vmax.f32 %v772_v21, 0.0  ;;  %v798_v24 = vmax.f32 %v773_v11, 0.0  ;;  %896 = vst.msk [vmem:[%s1090_s30 + $0xa8] sm:$0xff] %vm368_vm1, %v780_v32 }
 0x132   : > { %897 = vst.msk [vmem:[%s1090_s30 + $0xb0] sm:$0xff] %vm368_vm1, %v781_v22 }
 0x133   : > { %904 = vst.msk [vmem:[%s1090_s30 + $0xe8] sm:$0xff] %vm368_vm1, %v797_v23  ;;  %905 = vst.msk [vmem:[%s1090_s30 + $0xf0] sm:$0xff] %vm368_vm1, %v798_v24 }
 0x134 PF: > { %s14_s15 = sadd.s32 1, %s950_s15  }
 0x135   : > { %p11_p4 = scmp.ge.s32.totalorder %s14_s15, 4  }
 0x137   :  { %13 = sbr.rel (!%p11_p4) target bundleno = 1 (0x1), region = 72 }

// kernel: _upconv_block_forward.5
= control target key start
LH: loop header
LB: loop body
LE: loop exit
PB: predicated region body
PF: predicated region fallthrough
CT: control target
= control target key end

     0   :  { %s5364_s15 = smov 0   ;;  %s6450_s0 = inlined_call_operand.vmem [shape: f32[2,18,18,8], index: 0, kind: input, shape index: {}]   ;;  %s6451_s1 = inlined_call_operand.vmem [shape: f32[9,8,8], index: 1, kind: input, shape index: {}]   ;;  %s6452_s2 = inlined_call_operand.vmem [shape: f32[1,8], index: 2, kind: input, shape index: {}]   ;;  %s6453_s3 = inlined_call_operand.vmem [shape: f32[1,8], index: 3, kind: input, shape index: {}]   ;;  %s6454_s4 = inlined_call_operand.vmem [shape: f32[2,16,16,8], index: 4, kind: output, shape index: {}]  }
   0x1 LB: > { %s3816_s16 = sadd.s32 4294967295, %s5337_s15   ;;  %p3820_p0 = scmp.ge.s32.totalorder %s5337_s15, 1  ;;  %s5337_s15 = sphi %s5364_s15, %s14_s15  }
   0x2   : > { %p162_p1 = scmp.lt.s32.totalorder %s5337_s15, 3 }
   0x4   : > { %p163_p2 = pnand %p3820_p0, %p162_p1 }
   0x6   : > { %166 = sbr.rel (%p163_p2) target bundleno = 527 (0x20f), region = 36 }
   0xd   : > { %v3824_v0 = vld [vmem:[%s6451_s1 + $0x8] sm:$0xff]  ;;  %v5378_v1 = vld [vmem:[%s6451_s1 + $0x20] sm:$0xff]  ;;  %p188_p3 = scmp.lt.s32.totalorder %s3816_s16, 1  ;;  %vm265_vm0 = vcmask 64512   ;;  %v4149_v9 = vld [vmem:[%s6451_s1 + $0x30] sm:$0xff] }
   0xe   : > { %v230_v2 = vld [vmem:[%s6451_s1] sm:$0xff]  ;;  %4614 = vmatprep.subr.mxu1 %v3824_v0  ;;  %4814 = vmatprep.subr.mxu0 %v5378_v1  ;;  %v4084_v3 = vld [vmem:[%s6451_s1 + $0x28] sm:$0xff]  ;;  %v5413_v10 = vld [vmem:[%s6451_s1 + $0x10] sm:$0xff] }
   0xf   : > { %4615 = vmatpush3.msra.mxu1 %v3824_v0  ;;  %4815 = vmatpush3.msra.mxu0 %v5378_v1  ;;  %s6565_s16 = smov (!%p188_p3, %s3816_s16), 1  ;;  %v5528_v28 = vld [vmem:[%s6451_s1 + $0x38] sm:$0xff] }
  0x10   : > { %4664 = vmatprep.subr.mxu1 %v230_v2  ;;  %4864 = vmatprep.subr.mxu0 %v4084_v3  ;;  %s5322_s25 = smul.u32 432, %s6565_s16  ;;  %v5689_v61 = vld [vmem:[%s6451_s1 + $0x18] sm:$0xff]  ;;  %s4316_s19 = sshll.u32 %s6565_s16, 8 }
  0x11   : > { %s6314_s22 = scalar_lea.vmem %s6454_s4, %s4316_s19 }
  0x12   : > { %s5394_s28 = scalar_lea.vmem %s6450_s0, %s5322_s25 }
  0x13   : > { %v231_v4 = vld [vmem:[%s5394_s28 + $0x1] sm:$0xff]  ;;  %v3987_v5 = vld [vmem:[%s5394_s28 + $0x19] sm:$0xff]  ;;  %v232_v6 = vld [vmem:[%s5394_s28 + $0x9] sm:$0xff] }
  0x14   : > { %4616 = vmatprep.mubr.msk.f32.mxu1 %vm265_vm0, %v231_v4  ;;  %4816 = vmatprep.mubr.msk.f32.mxu0 %vm265_vm0, %v3987_v5  ;;  %v3988_v7 = vld [vmem:[%s5394_s28 + $0x21] sm:$0xff]  ;;  %v5403_v8 = vld [vmem:[%s5394_s28 + $0x31] sm:$0xff]  ;;  %v5416_v11 = vld [vmem:[%s5394_s28 + $0x39] sm:$0xff] }
  0x15   : > { %4617 = vmatmul.mubr.msk.f32.vlgmr.msra.gmra.mrb[0].mxu1 %vm265_vm0, %v232_v6  ;;  %4817 = vmatmul.mubr.msk.f32.vlgmr.msra.gmra.mrb[0].mxu0 %vm265_vm0, %v3988_v7  ;;  %v5422_v12 = vld [vmem:[%s5394_s28 + $0x49] sm:$0xff]  ;;  %v5433_v13 = vld [vmem:[%s5394_s28 + $0x51] sm:$0xff]  ;;  %v5436_v14 = vld [vmem:[%s5394_s28 + $0x61] sm:$0xff] }
  0x16   : > { %4665 = vmatpush3.msra.mxu1 %v230_v2  ;;  %4865 = vmatpush3.msra.mxu0 %v4084_v3  ;;  %v5447_v15 = vld [vmem:[%s5394_s28 + $0x69] sm:$0xff]  ;;  %v5450_v16 = vld [vmem:[%s5394_s28 + $0x79] sm:$0xff]  ;;  %v5461_v17 = vld [vmem:[%s5394_s28 + $0x81] sm:$0xff] }
  0x17   : > { %4619 = vmatprep.mubr.msk.f32.mxu1 %vm265_vm0, %v3987_v5  ;;  %4819 = vmatprep.mubr.msk.f32.mxu0 %vm265_vm0, %v5403_v8  ;;  %v5464_v18 = vld [vmem:[%s5394_s28 + $0x91] sm:$0xff]  ;;  %v5475_v19 = vld [vmem:[%s5394_s28 + $0x99] sm:$0xff]  ;;  %v5478_v20 = vld [vmem:[%s5394_s28 + $0xa9] sm:$0xff] }
  0x18   : > { %4914 = vmatprep.subr.mxu0 %v4149_v9  ;;  %4714 = vmatprep.subr.mxu1 %v5413_v10  ;;  %v5489_v21 = vld [vmem:[%s5394_s28 + $0xb1] sm:$0xff]  ;;  %v5492_v22 = vld [vmem:[%s5394_s28 + $0xc1] sm:$0xff]  ;;  %v5503_v23 = vld [vmem:[%s5394_s28 + $0xc9] sm:$0xff] }
  0x19   : > { %4620 = vmatmul.mubr.msk.f32.gmra.mrb[2].mxu1 %vm265_vm0, %v3988_v7  ;;  %4820 = vmatmul.mubr.msk.f32.gmra.mrb[2].mxu0 %vm265_vm0, %v5416_v11  ;;  %v5506_v24 = vld [vmem:[%s5394_s28 + $0x1a] sm:$0xff]  ;;  %v5517_v25 = vld [vmem:[%s5394_s28 + $0x22] sm:$0xff]  ;;  %v5523_v27 = vld [vmem:[%s5394_s28 + $0x32] sm:$0xff] }
  0x1a   : > { %4622 = vmatprep.mubr.msk.f32.mxu1 %vm265_vm0, %v5403_v8  ;;  %4822 = vmatprep.mubr.msk.f32.mxu0 %vm265_vm0, %v5422_v12  ;;  %v5520_v26 = vld [vmem:[%s5394_s28 + $0xd9] sm:$0xff]  ;;  %v5537_v29 = vld [vmem:[%s5394_s28 + $0xe1] sm:$0xff]  ;;  %v5545_v31 = vld [vmem:[%s5394_s28 + $0xf1] sm:$0xff] }
  0x1b   : > { %6500 = vst [vmem:[#allocation2_spill] sm:$0xff] %v5537_v29  ;;  %v5540_v30 = vld [vmem:[%s5394_s28 + $0x3a] sm:$0xff]  ;;  %6501 = vst [vmem:[#allocation3_spill] sm:$0xff] %v5545_v31  ;;  %v5548_v32 = vld [vmem:[%s5394_s28 + $0x4a] sm:$0xff] }
  0x1c   : > { %v5560_v33 = vld [vmem:[%s5394_s28 + $0xf9] sm:$0xff]  ;;  %v5566_v35 = vld [vmem:[%s5394_s28 + $0x109] sm:$0xff]  ;;  %v5580_v37 = vld [vmem:[%s5394_s28 + $0x111] sm:$0xff] }
  0x1d   : > { %4623 = vmatmul.mubr.msk.f32.gmra.mrb[4].mxu1 %vm265_vm0, %v5416_v11  ;;  %4823 = vmatmul.mubr.msk.f32.gmra.mrb[4].mxu0 %vm265_vm0, %v5433_v13  ;;  %6502 = vst [vmem:[#allocation4_spill] sm:$0xff] %v5560_v33  ;;  %v5563_v34 = vld [vmem:[%s5394_s28 + $0x52] sm:$0xff]  ;;  %6503 = vst [vmem:[#allocation5_spill] sm:$0xff] %v5566_v35  ;;  %v5569_v36 = vld [vmem:[%s5394_s28 + $0x62] sm:$0xff] }
  0x1e   : > { %4625 = vmatprep.mubr.msk.f32.mxu1 %vm265_vm0, %v5422_v12  ;;  %4825 = vmatprep.mubr.msk.f32.mxu0 %vm265_vm0, %v5436_v14  ;;  %6504 = vst [vmem:[#allocation6_spill] sm:$0xff] %v5580_v37  ;;  %v5583_v38 = vld [vmem:[%s5394_s28 + $0x6a] sm:$0xff]  ;;  %v5586_v39 = vld [vmem:[%s5394_s28 + $0x121] sm:$0xff]  ;;  %v5606_v43 = vld [vmem:[%s5394_s28 + $0x139] sm:$0xff] }
  0x1f   : > { %6505 = vst [vmem:[#allocation7_spill] sm:$0xff] %v5586_v39  ;;  %v5589_v40 = vld [vmem:[%s5394_s28 + $0x7a] sm:$0xff]  ;;  %v5600_v41 = vld [vmem:[%s5394_s28 + $0x129] sm:$0xff]  ;;  %6507 = vst [vmem:[#allocation9_spill] sm:$0xff] %v5606_v43 }
  0x20   : > { %6506 = vst [vmem:[#allocation8_spill] sm:$0xff] %v5600_v41  ;;  %v5603_v42 = vld [vmem:[%s5394_s28 + $0x82] sm:$0xff]  ;;  %v5609_v44 = vld [vmem:[%s5394_s28 + $0x92] sm:$0xff]  ;;  %v5623_v46 = vld [vmem:[%s5394_s28 + $0x9a] sm:$0xff] }
  0x21   : > { %4626 = vmatmul.mubr.msk.f32.gmra.mrb[6].mxu1 %vm265_vm0, %v5433_v13  ;;  %4826 = vmatmul.mubr.msk.f32.gmra.mrb[6].mxu0 %vm265_vm0, %v5447_v15  ;;  %v5620_v45 = vld [vmem:[%s5394_s28 + $0x141] sm:$0xff]  ;;  %v5626_v47 = vld [vmem:[%s5394_s28 + $0x151] sm:$0xff]  ;;  %v5640_v49 = vld [vmem:[%s5394_s28 + $0x159] sm:$0xff] }
  0x22   : > { %4628 = vmatprep.mubr.msk.f32.mxu1 %vm265_vm0, %v5436_v14  ;;  %4828 = vmatprep.mubr.msk.f32.mxu0 %vm265_vm0, %v5450_v16  ;;  %6508 = vst [vmem:[#allocation10_spill] sm:$0xff] %v5620_v45  ;;  %6509 = vst [vmem:[#allocation11_spill] sm:$0xff] %v5626_v47  ;;  %v5629_v48 = vld [vmem:[%s5394_s28 + $0xaa] sm:$0xff]  ;;  %v5643_v50 = vld [vmem:[%s5394_s28 + $0xb2] sm:$0xff] }
  0x23   : > { %6510 = vst [vmem:[#allocation12_spill] sm:$0xff] %v5640_v49  ;;  %v5646_v51 = vld [vmem:[%s5394_s28 + $0x169] sm:$0xff]  ;;  %v5660_v53 = vld [vmem:[%s5394_s28 + $0x171] sm:$0xff]  ;;  %v198_v55 = vld [vmem:[%s5394_s28] sm:$0xff] }
  0x24   : > { %6511 = vst [vmem:[#allocation13_spill] sm:$0xff] %v5646_v51  ;;  %v5649_v52 = vld [vmem:[%s5394_s28 + $0xc2] sm:$0xff]  ;;  %6512 = vst [vmem:[#allocation14_spill] sm:$0xff] %v5660_v53  ;;  %v5663_v54 = vld [vmem:[%s5394_s28 + $0xca] sm:$0xff] }
  0x25   : > { %4629 = vmatmul.mubr.msk.f32.gmra.mrb[8].mxu1 %vm265_vm0, %v5447_v15  ;;  %4829 = vmatmul.mubr.msk.f32.gmra.mrb[8].mxu0 %vm265_vm0, %v5461_v17  ;;  %v5667_v56 = vld [vmem:[%s5394_s28 + $0xda] sm:$0xff]  ;;  %v199_v57 = vld [vmem:[%s5394_s28 + $0x8] sm:$0xff]  ;;  %v5684_v60 = vld [vmem:[%s5394_s28 + $0xf2] sm:$0xff] }
  0x26   : > { %4631 = vmatprep.mubr.msk.f32.mxu1 %vm265_vm0, %v5450_v16  ;;  %4831 = vmatprep.mubr.msk.f32.mxu0 %vm265_vm0, %v5464_v18  ;;  %v5678_v58 = vld [vmem:[%s5394_s28 + $0xe2] sm:$0xff]  ;;  %v5681_v59 = vld [vmem:[%s5394_s28 + $0x18] sm:$0xff]  ;;  %v5706_v0 = vld [vmem:[%s5394_s28 + $0x30] sm:$0xff] }
  0x27   : > { %6513 = vst [vmem:[#allocation15_spill] sm:$0xff] %v5681_v59  ;;  %v5698_v62 = vld [vmem:[%s5394_s28 + $0x20] sm:$0xff]  ;;  %6515 = vst [vmem:[#allocation17_spill] sm:$0xff] %v5706_v0  ;;  %v5709_v2 = vld [vmem:[%s5394_s28 + $0x10a] sm:$0xff] }
  0x28   : > { %6514 = vst [vmem:[#allocation16_spill] sm:$0xff] %v5698_v62  ;;  %v5701_v63 = vld [vmem:[%s5394_s28 + $0xfa] sm:$0xff]  ;;  %v5724_v4 = vld [vmem:[%s5394_s28 + $0x112] sm:$0xff]  ;;  %v5727_v5 = vld [vmem:[%s5394_s28 + $0x48] sm:$0xff] }
  0x29   : > { %4632 = vmatmul.mubr.msk.f32.gmra.mrb[10].mxu1 %vm265_vm0, %v5461_v17  ;;  %4832 = vmatmul.mubr.msk.f32.gmra.mrb[10].mxu0 %vm265_vm0, %v5475_v19  ;;  %v5721_v3 = vld [vmem:[%s5394_s28 + $0x38] sm:$0xff]  ;;  %6517 = vst [vmem:[#allocation19_spill] sm:$0xff] %v5727_v5  ;;  %v5730_v6 = vld [vmem:[%s5394_s28 + $0x122] sm:$0xff]  ;;  %v5741_v7 = vld [vmem:[%s5394_s28 + $0x50] sm:$0xff] }
  0x2a   : > { %4634 = vmatprep.mubr.msk.f32.mxu1 %vm265_vm0, %v5464_v18  ;;  %4834 = vmatprep.mubr.msk.f32.mxu0 %vm265_vm0, %v5478_v20  ;;  %6516 = vst [vmem:[#allocation18_spill] sm:$0xff] %v5721_v3  ;;  %6518 = vst [vmem:[#allocation20_spill] sm:$0xff] %v5741_v7 }
  0x2d   : > { %4635 = vmatmul.mubr.msk.f32.gmra.mrb[12].mxu1 %vm265_vm0, %v5475_v19  ;;  %4835 = vmatmul.mubr.msk.f32.gmra.mrb[12].mxu0 %vm265_vm0, %v5489_v21 }
  0x2e   : > { %4637 = vmatprep.mubr.msk.f32.mxu1 %vm265_vm0, %v5478_v20  ;;  %4837 = vmatprep.mubr.msk.f32.mxu0 %vm265_vm0, %v5492_v22 }
  0x31   : > { %4638 = vmatmul.mubr.msk.f32.gmra.mrb[14].mxu1 %vm265_vm0, %v5489_v21  ;;  %4838 = vmatmul.mubr.msk.f32.gmra.mrb[14].mxu0 %vm265_vm0, %v5503_v23 }
  0x32   : > { %4640 = vmatprep.mubr.msk.f32.mxu1 %vm265_vm0, %v5492_v22  ;;  %4866 = vmatprep.mubr.msk.f32.mxu0 %vm265_vm0, %v5506_v24 }
  0x35   : > { %4641 = vmatmul.mubr.msk.f32.gmra.mrb[16].mxu1 %vm265_vm0, %v5503_v23  ;;  %4867 = vmatmul.mubr.msk.f32.vlgmr.msra.gmra.mrb[0].mxu0 %vm265_vm0, %v5517_v25 }
  0x36   : > { %4915 = vmatpush3.msra.mxu0 %v4149_v9  ;;  %4643 = vmatprep.mubr.msk.f32.mxu1 %vm265_vm0, %v5520_v26  ;;  %v5744_v9 = vld [vmem:[%s5394_s28 + $0x12a] sm:$0xff] }
  0x37   : > { %4869 = vmatprep.mubr.msk.f32.mxu0 %vm265_vm0, %v5523_v27  ;;  %4964 = vmatprep.subr.mxu0 %v5528_v28 }
  0x39   : > { %4644 = vmatmul.mubr.msk.f32.gmra.mrb[18].mxu1 %vm265_vm0, %v5537_v29  ;;  %4870 = vmatmul.mubr.msk.f32.gmra.mrb[2].mxu0 %vm265_vm0, %v5540_v30  ;;  %v5841_v29 = vld [vmem:[%s5394_s28 + $0xd8] sm:$0xff] }
  0x3a   : > { %4646 = vmatprep.mubr.msk.f32.mxu1 %vm265_vm0, %v5545_v31  ;;  %4872 = vmatprep.mubr.msk.f32.mxu0 %vm265_vm0, %v5548_v32  ;;  %v5824_v31 = vld [vmem:[%s5394_s28 + $0x18a] sm:$0xff] }
  0x3b   : > { %6529 = vst [vmem:[#allocation31_spill] sm:$0xff] %v5824_v31 }
  0x3d   : > { %4647 = vmatmul.mubr.msk.f32.gmra.mrb[20].mxu1 %vm265_vm0, %v5560_v33  ;;  %4873 = vmatmul.mubr.msk.f32.gmra.mrb[4].mxu0 %vm265_vm0, %v5563_v34  ;;  %v5810_v33 = vld [vmem:[%s5394_s28 + $0x182] sm:$0xff] }
  0x3e   : > { %4649 = vmatprep.mubr.msk.f32.mxu1 %vm265_vm0, %v5566_v35  ;;  %4875 = vmatprep.mubr.msk.f32.mxu0 %vm265_vm0, %v5569_v36  ;;  %v5807_v35 = vld [vmem:[%s5394_s28 + $0xa8] sm:$0xff]  ;;  %6527 = vst [vmem:[#allocation29_spill] sm:$0xff] %v5810_v33 }
  0x3f   : > { %6526 = vst [vmem:[#allocation28_spill] sm:$0xff] %v5807_v35 }
  0x41   : > { %4650 = vmatmul.mubr.msk.f32.gmra.mrb[22].mxu1 %vm265_vm0, %v5580_v37  ;;  %4876 = vmatmul.mubr.msk.f32.gmra.mrb[6].mxu0 %vm265_vm0, %v5583_v38  ;;  %v5804_v37 = vld [vmem:[%s5394_s28 + $0x172] sm:$0xff] }
  0x42   : > { %4652 = vmatprep.mubr.msk.f32.mxu1 %vm265_vm0, %v5586_v39  ;;  %4878 = vmatprep.mubr.msk.f32.mxu0 %vm265_vm0, %v5589_v40  ;;  %v5801_v39 = vld [vmem:[%s5394_s28 + $0x98] sm:$0xff]  ;;  %6525 = vst [vmem:[#allocation27_spill] sm:$0xff] %v5804_v37 }
  0x43   : > { %6524 = vst [vmem:[#allocation26_spill] sm:$0xff] %v5801_v39 }
  0x45   : > { %4653 = vmatmul.mubr.msk.f32.gmra.mrb[24].mxu1 %vm265_vm0, %v5600_v41  ;;  %4879 = vmatmul.mubr.msk.f32.gmra.mrb[8].mxu0 %vm265_vm0, %v5603_v42  ;;  %v5790_v41 = vld [vmem:[%s5394_s28 + $0x16a] sm:$0xff] }
  0x46   : > { %4655 = vmatprep.mubr.msk.f32.mxu1 %vm265_vm0, %v5606_v43  ;;  %4881 = vmatprep.mubr.msk.f32.mxu0 %vm265_vm0, %v5609_v44  ;;  %v5787_v43 = vld [vmem:[%s5394_s28 + $0x90] sm:$0xff] }
  0x47   : > { %6523 = vst [vmem:[#allocation25_spill] sm:$0xff] %v5787_v43 }
  0x49   : > { %4656 = vmatmul.mubr.msk.f32.gmra.mrb[26].mxu1 %vm265_vm0, %v5620_v45  ;;  %4882 = vmatmul.mubr.msk.f32.gmra.mrb[10].mxu0 %vm265_vm0, %v5623_v46  ;;  %v5784_v45 = vld [vmem:[%s5394_s28 + $0x15a] sm:$0xff] }
  0x4a   : > { %4658 = vmatprep.mubr.msk.f32.mxu1 %vm265_vm0, %v5626_v47  ;;  %4884 = vmatprep.mubr.msk.f32.mxu0 %vm265_vm0, %v5629_v48  ;;  %v5781_v47 = vld [vmem:[%s5394_s28 + $0x80] sm:$0xff] }
  0x4b   : > { %6522 = vst [vmem:[#allocation24_spill] sm:$0xff] %v5781_v47 }
  0x4d   : > { %4659 = vmatmul.mubr.msk.f32.gmra.mrb[28].mxu1 %vm265_vm0, %v5640_v49  ;;  %4885 = vmatmul.mubr.msk.f32.gmra.mrb[12].mxu0 %vm265_vm0, %v5643_v50  ;;  %v5770_v49 = vld [vmem:[%s5394_s28 + $0x152] sm:$0xff] }
  0x4e   : > { %4661 = vmatprep.mubr.msk.f32.mxu1 %vm265_vm0, %v5646_v51  ;;  %4887 = vmatprep.mubr.msk.f32.mxu0 %vm265_vm0, %v5649_v52  ;;  %v5767_v51 = vld [vmem:[%s5394_s28 + $0x78] sm:$0xff] }
  0x4f   : > { %6521 = vst [vmem:[#allocation23_spill] sm:$0xff] %v5767_v51 }
  0x51   : > { %4662 = vmatmul.mubr.msk.f32.gmra.mrb[30].mxu1 %vm265_vm0, %v5660_v53  ;;  %4888 = vmatmul.mubr.msk.f32.gmra.mrb[14].mxu0 %vm265_vm0, %v5663_v54  ;;  %v5764_v53 = vld [vmem:[%s5394_s28 + $0x142] sm:$0xff] }
  0x52   : > { %4666 = vmatprep.mubr.msk.f32.mxu1 %vm265_vm0, %v198_v55  ;;  %4890 = vmatprep.mubr.msk.f32.mxu0 %vm265_vm0, %v5667_v56  ;;  %v5750_v55 = vld [vmem:[%s5394_s28 + $0x13a] sm:$0xff] }
  0x55   : > { %4667 = vmatmul.mubr.msk.f32.vlgmr.msra.gmra.mrb[0].mxu1 %vm265_vm0, %v199_v57  ;;  %4891 = vmatmul.mubr.msk.f32.gmra.mrb[16].mxu0 %vm265_vm0, %v5678_v58  ;;  %v5761_v57 = vld [vmem:[%s5394_s28 + $0x68] sm:$0xff] }
  0x56   : > { %4715 = vmatpush3.msra.mxu1 %v5413_v10  ;;  %4669 = vmatprep.mubr.msk.f32.mxu1 %vm265_vm0, %v5681_v59  ;;  %v5747_v10 = vld [vmem:[%s5394_s28 + $0x60] sm:$0xff]  ;;  %6520 = vst [vmem:[#allocation22_spill] sm:$0xff] %v5761_v57 }
  0x57   : > { %4893 = vmatprep.mubr.msk.f32.mxu0 %vm265_vm0, %v5684_v60  ;;  %4764 = vmatprep.subr.mxu1 %v5689_v61  ;;  %6519 = vst [vmem:[#allocation21_spill] sm:$0xff] %v5747_v10  ;;  %v5827_v59 = vld [vmem:[%s5394_s28 + $0xc0] sm:$0xff] }
  0x59   : > { %4670 = vmatmul.mubr.msk.f32.gmra.mrb[2].mxu1 %vm265_vm0, %v5698_v62  ;;  %4894 = vmatmul.mubr.msk.f32.gmra.mrb[18].mxu0 %vm265_vm0, %v5701_v63  ;;  %v5821_v62 = vld [vmem:[%s5394_s28 + $0xb0] sm:$0xff] }
  0x5a   : > { %4672 = vmatprep.mubr.msk.f32.mxu1 %vm265_vm0, %v5706_v0  ;;  %4896 = vmatprep.mubr.msk.f32.mxu0 %vm265_vm0, %v5709_v2  ;;  %6528 = vst [vmem:[#allocation30_spill] sm:$0xff] %v5821_v62 }
  0x5d   : > { %4673 = vmatmul.mubr.msk.f32.gmra.mrb[4].mxu1 %vm265_vm0, %v5721_v3  ;;  %4897 = vmatmul.mubr.msk.f32.gmra.mrb[20].mxu0 %vm265_vm0, %v5724_v4 }
  0x5e   : > { %4675 = vmatprep.mubr.msk.f32.mxu1 %vm265_vm0, %v5727_v5  ;;  %4899 = vmatprep.mubr.msk.f32.mxu0 %vm265_vm0, %v5730_v6 }
  0x61   : > { %4676 = vmatmul.mubr.msk.f32.gmra.mrb[6].mxu1 %vm265_vm0, %v5741_v7  ;;  %4900 = vmatmul.mubr.msk.f32.gmra.mrb[22].mxu0 %vm265_vm0, %v5744_v9 }
  0x62   : > { %4678 = vmatprep.mubr.msk.f32.mxu1 %vm265_vm0, %v5747_v10  ;;  %4902 = vmatprep.mubr.msk.f32.mxu0 %vm265_vm0, %v5750_v55 }
  0x65   : > { %4679 = vmatmul.mubr.msk.f32.gmra.mrb[8].mxu1 %vm265_vm0, %v5761_v57  ;;  %4903 = vmatmul.mubr.msk.f32.gmra.mrb[24].mxu0 %vm265_vm0, %v5764_v53 }
  0x66   : > { %4681 = vmatprep.mubr.msk.f32.mxu1 %vm265_vm0, %v5767_v51  ;;  %4905 = vmatprep.mubr.msk.f32.mxu0 %vm265_vm0, %v5770_v49 }
  0x69   : > { %4682 = vmatmul.mubr.msk.f32.gmra.mrb[10].mxu1 %vm265_vm0, %v5781_v47  ;;  %4906 = vmatmul.mubr.msk.f32.gmra.mrb[26].mxu0 %vm265_vm0, %v5784_v45 }
  0x6a   : > { %4684 = vmatprep.mubr.msk.f32.mxu1 %vm265_vm0, %v5787_v43  ;;  %4908 = vmatprep.mubr.msk.f32.mxu0 %vm265_vm0, %v5790_v41 }
  0x6d   : > { %4685 = vmatmul.mubr.msk.f32.gmra.mrb[12].mxu1 %vm265_vm0, %v5801_v39  ;;  %4909 = vmatmul.mubr.msk.f32.gmra.mrb[28].mxu0 %vm265_vm0, %v5804_v37  ;;  %v5846_v37 = vld [vmem:[%s6451_s1 + $0x40] sm:$0xff] }
  0x6e   : > { %4687 = vmatprep.mubr.msk.f32.mxu1 %vm265_vm0, %v5807_v35  ;;  %4911 = vmatprep.mubr.msk.f32.mxu0 %vm265_vm0, %v5810_v33  ;;  %v5838_v33 = vld [vmem:[%s5394_s28 + $0xc8] sm:$0xff] }
  0x6f   : > { %6530 = vst [vmem:[#allocation32_spill] sm:$0xff] %v5838_v33 }
  0x71   : > { %4688 = vmatmul.mubr.msk.f32.gmra.mrb[14].mxu1 %vm265_vm0, %v5821_v62  ;;  %4912 = vmatmul.mubr.msk.f32.gmra.mrb[30].mxu0 %vm265_vm0, %v5824_v31  ;;  %v5856_v31 = vld [vmem:[%s5394_s28 + $0xe0] sm:$0xff] }
  0x72   : > { %4690 = vmatprep.mubr.msk.f32.mxu1 %vm265_vm0, %v5827_v59  ;;  %4916 = vmatprep.mubr.msk.f32.mxu0 %vm265_vm0, %v5706_v0  ;;  %v5861_v0 = vld [vmem:[%s5394_s28 + $0xf0] sm:$0xff] }
  0x75   : > { %4691 = vmatmul.mubr.msk.f32.gmra.mrb[16].mxu1 %vm265_vm0, %v5838_v33  ;;  %4917 = vmatmul.mubr.msk.f32.vlgmr.msra.gmra.mrb[0].mxu0 %vm265_vm0, %v5721_v3  ;;  %v908_v3 = vld [vmem:[%s5394_s28 + $0x2] sm:$0xff] }
  0x76   : > { %4965 = vmatpush3.msra.mxu0 %v5528_v28  ;;  %4693 = vmatprep.mubr.msk.f32.mxu1 %vm265_vm0, %v5841_v29  ;;  %v5873_v28 = vld [vmem:[%s5394_s28 + $0xf8] sm:$0xff] }
  0x77   : > { %4919 = vmatprep.mubr.msk.f32.mxu0 %vm265_vm0, %v5727_v5  ;;  %5014 = vmatprep.subr.mxu0 %v5846_v37  ;;  %v5876_v5 = vld [vmem:[%s5394_s28 + $0x108] sm:$0xff] }
  0x79   : > { %4694 = vmatmul.mubr.msk.f32.gmra.mrb[18].mxu1 %vm265_vm0, %v5856_v31  ;;  %4920 = vmatmul.mubr.msk.f32.gmra.mrb[2].mxu0 %vm265_vm0, %v5741_v7  ;;  %v5887_v7 = vld [vmem:[%s5394_s28 + $0x110] sm:$0xff] }
  0x7a   : > { %4696 = vmatprep.mubr.msk.f32.mxu1 %vm265_vm0, %v5861_v0  ;;  %4922 = vmatprep.mubr.msk.f32.mxu0 %vm265_vm0, %v5747_v10  ;;  %v5890_v10 = vld [vmem:[%s5394_s28 + $0x120] sm:$0xff] }
  0x7d   : > { %4697 = vmatmul.mubr.msk.f32.gmra.mrb[20].mxu1 %vm265_vm0, %v5873_v28  ;;  %4923 = vmatmul.mubr.msk.f32.gmra.mrb[4].mxu0 %vm265_vm0, %v5761_v57  ;;  %v5901_v57 = vld [vmem:[%s5394_s28 + $0x128] sm:$0xff] }
  0x7e   : > { %4699 = vmatprep.mubr.msk.f32.mxu1 %vm265_vm0, %v5876_v5  ;;  %4925 = vmatprep.mubr.msk.f32.mxu0 %vm265_vm0, %v5767_v51  ;;  %v5904_v51 = vld [vmem:[%s5394_s28 + $0x138] sm:$0xff] }
  0x81   : > { %4700 = vmatmul.mubr.msk.f32.gmra.mrb[22].mxu1 %vm265_vm0, %v5887_v7  ;;  %4926 = vmatmul.mubr.msk.f32.gmra.mrb[6].mxu0 %vm265_vm0, %v5781_v47  ;;  %v5915_v47 = vld [vmem:[%s5394_s28 + $0x140] sm:$0xff] }
  0x82   : > { %4702 = vmatprep.mubr.msk.f32.mxu1 %vm265_vm0, %v5890_v10  ;;  %4928 = vmatprep.mubr.msk.f32.mxu0 %vm265_vm0, %v5787_v43  ;;  %v5918_v43 = vld [vmem:[%s5394_s28 + $0x150] sm:$0xff] }
  0x85   : > { %4703 = vmatmul.mubr.msk.f32.gmra.mrb[24].mxu1 %vm265_vm0, %v5901_v57  ;;  %4929 = vmatmul.mubr.msk.f32.gmra.mrb[8].mxu0 %vm265_vm0, %v5801_v39  ;;  %v5929_v39 = vld [vmem:[%s5394_s28 + $0x158] sm:$0xff] }
  0x86   : > { %4705 = vmatprep.mubr.msk.f32.mxu1 %vm265_vm0, %v5904_v51  ;;  %4931 = vmatprep.mubr.msk.f32.mxu0 %vm265_vm0, %v5807_v35  ;;  %v5932_v35 = vld [vmem:[%s5394_s28 + $0x168] sm:$0xff] }
  0x89   : > { %4706 = vmatmul.mubr.msk.f32.gmra.mrb[26].mxu1 %vm265_vm0, %v5915_v47  ;;  %4932 = vmatmul.mubr.msk.f32.gmra.mrb[10].mxu0 %vm265_vm0, %v5821_v62  ;;  %v5943_v62 = vld [vmem:[%s5394_s28 + $0x170] sm:$0xff] }
  0x8a   : > { %4708 = vmatprep.mubr.msk.f32.mxu1 %vm265_vm0, %v5918_v43  ;;  %4934 = vmatprep.mubr.msk.f32.mxu0 %vm265_vm0, %v5827_v59 }
  0x8d   : > { %4709 = vmatmul.mubr.msk.f32.gmra.mrb[28].mxu1 %vm265_vm0, %v5929_v39  ;;  %4935 = vmatmul.mubr.msk.f32.gmra.mrb[12].mxu0 %vm265_vm0, %v5838_v33  ;;  %v909_v33 = vld [vmem:[%s5394_s28 + $0xa] sm:$0xff] }
  0x8e   : > { %4711 = vmatprep.mubr.msk.f32.mxu1 %vm265_vm0, %v5932_v35  ;;  %4937 = vmatprep.mubr.msk.f32.mxu0 %vm265_vm0, %v5841_v29 }
  0x91   : > { %4712 = vmatmul.mubr.msk.f32.gmra.mrb[30].mxu1 %vm265_vm0, %v5943_v62  ;;  %4938 = vmatmul.mubr.msk.f32.gmra.mrb[14].mxu0 %vm265_vm0, %v5856_v31 }
  0x92   : > { %4716 = vmatprep.mubr.msk.f32.mxu1 %vm265_vm0, %v908_v3  ;;  %4940 = vmatprep.mubr.msk.f32.mxu0 %vm265_vm0, %v5861_v0  ;;  %v6547_v3 = vld [vmem:[#allocation22_spill] sm:$0xff] }
  0x95   : > { %4717 = vmatmul.mubr.msk.f32.vlgmr.msra.gmra.mrb[0].mxu1 %vm265_vm0, %v909_v33  ;;  %4941 = vmatmul.mubr.msk.f32.gmra.mrb[16].mxu0 %vm265_vm0, %v5873_v28  ;;  %v4147_v33 = vld [vmem:[%s5394_s28 + $0x198] sm:$0xff] }
  0x96   : > { %4765 = vmatpush3.msra.mxu1 %v5689_v61  ;;  %4719 = vmatprep.mubr.msk.f32.mxu1 %vm265_vm0, %v5506_v24  ;;  %v5996_v24 = vld [vmem:[%s5394_s28 + $0x180] sm:$0xff] }
  0x97   : > { %4943 = vmatprep.mubr.msk.f32.mxu0 %vm265_vm0, %v5876_v5  ;;  %5064 = vmatprep.subr.mxu1 %v5378_v1  ;;  %v4148_v61 = vld [vmem:[%s5394_s28 + $0x1a0] sm:$0xff] }
  0x99   : > { %4720 = vmatmul.mubr.msk.f32.gmra.mrb[2].mxu1 %vm265_vm0, %v5517_v25  ;;  %4944 = vmatmul.mubr.msk.f32.gmra.mrb[18].mxu0 %vm265_vm0, %v5887_v7  ;;  %v6007_v25 = vld [vmem:[%s5394_s28 + $0x188] sm:$0xff] }
  0x9a   : > { %4722 = vmatprep.mubr.msk.f32.mxu1 %vm265_vm0, %v5523_v27  ;;  %4946 = vmatprep.mubr.msk.f32.mxu0 %vm265_vm0, %v5890_v10 }
  0x9d   : > { %4723 = vmatmul.mubr.msk.f32.gmra.mrb[4].mxu1 %vm265_vm0, %v5540_v30  ;;  %4947 = vmatmul.mubr.msk.f32.gmra.mrb[20].mxu0 %vm265_vm0, %v5901_v57 }
  0x9e   : > { %4725 = vmatprep.mubr.msk.f32.mxu1 %vm265_vm0, %v5548_v32  ;;  %4949 = vmatprep.mubr.msk.f32.mxu0 %vm265_vm0, %v5904_v51 }
  0xa1   : > { %4726 = vmatmul.mubr.msk.f32.gmra.mrb[6].mxu1 %vm265_vm0, %v5563_v34  ;;  %4950 = vmatmul.mubr.msk.f32.gmra.mrb[22].mxu0 %vm265_vm0, %v5915_v47 }
  0xa2   : > { %4728 = vmatprep.mubr.msk.f32.mxu1 %vm265_vm0, %v5569_v36  ;;  %4952 = vmatprep.mubr.msk.f32.mxu0 %vm265_vm0, %v5918_v43 }
  0xa5   : > { %4729 = vmatmul.mubr.msk.f32.gmra.mrb[8].mxu1 %vm265_vm0, %v5583_v38  ;;  %4953 = vmatmul.mubr.msk.f32.gmra.mrb[24].mxu0 %vm265_vm0, %v5929_v39 }
  0xa6   : > { %4731 = vmatprep.mubr.msk.f32.mxu1 %vm265_vm0, %v5589_v40  ;;  %4955 = vmatprep.mubr.msk.f32.mxu0 %vm265_vm0, %v5932_v35 }
  0xa9   : > { %4732 = vmatmul.mubr.msk.f32.gmra.mrb[10].mxu1 %vm265_vm0, %v5603_v42  ;;  %4956 = vmatmul.mubr.msk.f32.gmra.mrb[26].mxu0 %vm265_vm0, %v5943_v62 }
  0xaa   : > { %4734 = vmatprep.mubr.msk.f32.mxu1 %vm265_vm0, %v5609_v44  ;;  %4958 = vmatprep.mubr.msk.f32.mxu0 %vm265_vm0, %v5996_v24 }
  0xad   : > { %4735 = vmatmul.mubr.msk.f32.gmra.mrb[12].mxu1 %vm265_vm0, %v5623_v46  ;;  %4959 = vmatmul.mubr.msk.f32.gmra.mrb[28].mxu0 %vm265_vm0, %v6007_v25 }
  0xae   : > { %4737 = vmatprep.mubr.msk.f32.mxu1 %vm265_vm0, %v5629_v48  ;;  %4961 = vmatprep.mubr.msk.f32.mxu0 %vm265_vm0, %v4147_v33  ;;  %v6548_v33 = vld [vmem:[#allocation10_spill] sm:$0xff] }
  0xb1   : > { %4738 = vmatmul.mubr.msk.f32.gmra.mrb[14].mxu1 %vm265_vm0, %v5643_v50  ;;  %4962 = vmatmul.mubr.msk.f32.gmra.mrb[30].mxu0 %vm265_vm0, %v4148_v61  ;;  %v6549_v61 = vld [vmem:[#allocation23_spill] sm:$0xff] }
  0xb2   : > { %4740 = vmatprep.mubr.msk.f32.mxu1 %vm265_vm0, %v5649_v52  ;;  %4966 = vmatprep.mubr.msk.f32.mxu0 %vm265_vm0, %v5403_v8  ;;  %v6531_v8 = vld [vmem:[#allocation27_spill] sm:$0xff] }
  0xb5   : > { %4741 = vmatmul.mubr.msk.f32.gmra.mrb[16].mxu1 %vm265_vm0, %v5663_v54  ;;  %4967 = vmatmul.mubr.msk.f32.vlgmr.msra.gmra.mrb[0].mxu0 %vm265_vm0, %v5416_v11  ;;  %v6532_v11 = vld [vmem:[#allocation2_spill] sm:$0xff] }
  0xb6   : > { %5015 = vmatpush3.msra.mxu0 %v5846_v37  ;;  %4743 = vmatprep.mubr.msk.f32.mxu1 %vm265_vm0, %v5667_v56  ;;  %v6546_v37 = vld [vmem:[#allocation9_spill] sm:$0xff] }
  0xb7   : > { %4969 = vmatprep.mubr.msk.f32.mxu0 %vm265_vm0, %v5422_v12  ;;  %v6533_v12 = vld [vmem:[#allocation15_spill] sm:$0xff] }
  0xb9   : > { %4744 = vmatmul.mubr.msk.f32.gmra.mrb[18].mxu1 %vm265_vm0, %v5678_v58  ;;  %4970 = vmatmul.mubr.msk.f32.gmra.mrb[2].mxu0 %vm265_vm0, %v5433_v13  ;;  %v6534_v13 = vld [vmem:[#allocation3_spill] sm:$0xff] }
  0xba   : > { %4746 = vmatprep.mubr.msk.f32.mxu1 %vm265_vm0, %v5684_v60  ;;  %4972 = vmatprep.mubr.msk.f32.mxu0 %vm265_vm0, %v5436_v14  ;;  %v6535_v14 = vld [vmem:[#allocation16_spill] sm:$0xff] }
  0xbd   : > { %4747 = vmatmul.mubr.msk.f32.gmra.mrb[20].mxu1 %vm265_vm0, %v5701_v63  ;;  %4973 = vmatmul.mubr.msk.f32.gmra.mrb[4].mxu0 %vm265_vm0, %v5447_v15  ;;  %v6536_v15 = vld [vmem:[#allocation4_spill] sm:$0xff] }
  0xbe   : > { %4749 = vmatprep.mubr.msk.f32.mxu1 %vm265_vm0, %v5709_v2  ;;  %4975 = vmatprep.mubr.msk.f32.mxu0 %vm265_vm0, %v5450_v16  ;;  %v6537_v16 = vld [vmem:[#allocation17_spill] sm:$0xff] }
  0xc1   : > { %4750 = vmatmul.mubr.msk.f32.gmra.mrb[22].mxu1 %vm265_vm0, %v5724_v4  ;;  %4976 = vmatmul.mubr.msk.f32.gmra.mrb[6].mxu0 %vm265_vm0, %v5461_v17  ;;  %v6538_v17 = vld [vmem:[#allocation5_spill] sm:$0xff] }
  0xc2   : > { %4752 = vmatprep.mubr.msk.f32.mxu1 %vm265_vm0, %v5730_v6  ;;  %4978 = vmatprep.mubr.msk.f32.mxu0 %vm265_vm0, %v5464_v18  ;;  %v6539_v18 = vld [vmem:[#allocation18_spill] sm:$0xff] }
  0xc5   : > { %4753 = vmatmul.mubr.msk.f32.gmra.mrb[24].mxu1 %vm265_vm0, %v5744_v9  ;;  %4979 = vmatmul.mubr.msk.f32.gmra.mrb[8].mxu0 %vm265_vm0, %v5475_v19  ;;  %v6540_v19 = vld [vmem:[#allocation6_spill] sm:$0xff] }
  0xc6   : > { %4755 = vmatprep.mubr.msk.f32.mxu1 %vm265_vm0, %v5750_v55  ;;  %4981 = vmatprep.mubr.msk.f32.mxu0 %vm265_vm0, %v5478_v20  ;;  %v6541_v20 = vld [vmem:[#allocation19_spill] sm:$0xff] }
  0xc9   : > { %4756 = vmatmul.mubr.msk.f32.gmra.mrb[26].mxu1 %vm265_vm0, %v5764_v53  ;;  %4982 = vmatmul.mubr.msk.f32.gmra.mrb[10].mxu0 %vm265_vm0, %v5489_v21  ;;  %v6542_v21 = vld [vmem:[#allocation7_spill] sm:$0xff] }
  0xca   : > { %4758 = vmatprep.mubr.msk.f32.mxu1 %vm265_vm0, %v5770_v49  ;;  %4984 = vmatprep.mubr.msk.f32.mxu0 %vm265_vm0, %v5492_v22  ;;  %v6544_v22 = vld [vmem:[#allocation8_spill] sm:$0xff] }
  0xcd   : > { %4759 = vmatmul.mubr.msk.f32.gmra.mrb[28].mxu1 %vm265_vm0, %v5784_v45  ;;  %4985 = vmatmul.mubr.msk.f32.gmra.mrb[12].mxu0 %vm265_vm0, %v5503_v23  ;;  %v6545_v23 = vld [vmem:[#allocation21_spill] sm:$0xff] }
  0xce   : > { %4761 = vmatprep.mubr.msk.f32.mxu1 %vm265_vm0, %v5790_v41  ;;  %4987 = vmatprep.mubr.msk.f32.mxu0 %vm265_vm0, %v5520_v26 }
  0xd1   : > { %4762 = vmatmul.mubr.msk.f32.gmra.mrb[30].mxu1 %vm265_vm0, %v6531_v8  ;;  %4988 = vmatmul.mubr.msk.f32.gmra.mrb[14].mxu0 %vm265_vm0, %v6532_v11  ;;  %v6558_v8 = vld [vmem:[#allocation30_spill] sm:$0xff] }
  0xd2   : > { %4766 = vmatprep.mubr.msk.f32.mxu1 %vm265_vm0, %v6533_v12  ;;  %4990 = vmatprep.mubr.msk.f32.mxu0 %vm265_vm0, %v6534_v13  ;;  %v6550_v12 = vld [vmem:[#allocation11_spill] sm:$0xff] }
  0xd5   : > { %4767 = vmatmul.mubr.msk.f32.vlgmr.msra.gmra.mrb[0].mxu1 %vm265_vm0, %v6535_v14  ;;  %4991 = vmatmul.mubr.msk.f32.gmra.mrb[16].mxu0 %vm265_vm0, %v6536_v15  ;;  %v6551_v14 = vld [vmem:[#allocation24_spill] sm:$0xff] }
  0xd6   : > { %5065 = vmatpush3.msra.mxu1 %v5378_v1  ;;  %4769 = vmatprep.mubr.msk.f32.mxu1 %vm265_vm0, %v6537_v16  ;;  %v6543_v1 = vld [vmem:[#allocation20_spill] sm:$0xff] }
  0xd7   : > { %4993 = vmatprep.mubr.msk.f32.mxu0 %vm265_vm0, %v6538_v17  ;;  %v6552_v16 = vld [vmem:[#allocation12_spill] sm:$0xff] }
  0xd9   : > { %4770 = vmatmul.mubr.msk.f32.gmra.mrb[2].mxu1 %vm265_vm0, %v6539_v18  ;;  %4994 = vmatmul.mubr.msk.f32.gmra.mrb[18].mxu0 %vm265_vm0, %v6540_v19  ;;  %v6553_v18 = vld [vmem:[#allocation25_spill] sm:$0xff] }
  0xda   : > { %4772 = vmatprep.mubr.msk.f32.mxu1 %vm265_vm0, %v6541_v20  ;;  %4996 = vmatprep.mubr.msk.f32.mxu0 %vm265_vm0, %v6542_v21  ;;  %v6554_v20 = vld [vmem:[#allocation13_spill] sm:$0xff] }
  0xdd   : > { %4773 = vmatmul.mubr.msk.f32.gmra.mrb[4].mxu1 %vm265_vm0, %v6543_v1  ;;  %4997 = vmatmul.mubr.msk.f32.gmra.mrb[20].mxu0 %vm265_vm0, %v6544_v22  ;;  %v6132_v1 = vld [vmem:[%s5394_s28 + $0x181] sm:$0xff] }
  0xde   : > { %4775 = vmatprep.mubr.msk.f32.mxu1 %vm265_vm0, %v6545_v23  ;;  %4999 = vmatprep.mubr.msk.f32.mxu0 %vm265_vm0, %v6546_v37  ;;  %v6555_v23 = vld [vmem:[#allocation26_spill] sm:$0xff] }
  0xe1   : > { %4776 = vmatmul.mubr.msk.f32.gmra.mrb[6].mxu1 %vm265_vm0, %v6547_v3  ;;  %5000 = vmatmul.mubr.msk.f32.gmra.mrb[22].mxu0 %vm265_vm0, %v6548_v33  ;;  %v6556_v3 = vld [vmem:[#allocation14_spill] sm:$0xff] }
  0xe2   : > { %4778 = vmatprep.mubr.msk.f32.mxu1 %vm265_vm0, %v6549_v61  ;;  %5002 = vmatprep.mubr.msk.f32.mxu0 %vm265_vm0, %v6550_v12  ;;  %v6557_v61 = vld [vmem:[#allocation28_spill] sm:$0xff] }
  0xe5   : > { %4779 = vmatmul.mubr.msk.f32.gmra.mrb[8].mxu1 %vm265_vm0, %v6551_v14  ;;  %5003 = vmatmul.mubr.msk.f32.gmra.mrb[24].mxu0 %vm265_vm0, %v6552_v16  ;;  %v6143_v14 = vld [vmem:[%s5394_s28 + $0x189] sm:$0xff] }
  0xe6   : > { %4781 = vmatprep.mubr.msk.f32.mxu1 %vm265_vm0, %v6553_v18  ;;  %5005 = vmatprep.mubr.msk.f32.mxu0 %vm265_vm0, %v6554_v20  ;;  %v4212_v18 = vld [vmem:[%s5394_s28 + $0x199] sm:$0xff] }
  0xe9   : > { %4782 = vmatmul.mubr.msk.f32.gmra.mrb[10].mxu1 %vm265_vm0, %v6555_v23  ;;  %5006 = vmatmul.mubr.msk.f32.gmra.mrb[26].mxu0 %vm265_vm0, %v6556_v3  ;;  %v4213_v23 = vld [vmem:[%s5394_s28 + $0x1a1] sm:$0xff]  ;;  %v6559_v3 = vld [vmem:[#allocation32_spill] sm:$0xff] }
  0xea   : > { %4784 = vmatprep.mubr.msk.f32.mxu1 %vm265_vm0, %v6557_v61  ;;  %5008 = vmatprep.mubr.msk.f32.mxu0 %vm265_vm0, %v6132_v1 }
  0xed   : > { %4785 = vmatmul.mubr.msk.f32.gmra.mrb[12].mxu1 %vm265_vm0, %v6558_v8  ;;  %5009 = vmatmul.mubr.msk.f32.gmra.mrb[28].mxu0 %vm265_vm0, %v6143_v14 }
  0xee   : > { %4787 = vmatprep.mubr.msk.f32.mxu1 %vm265_vm0, %v5827_v59  ;;  %5011 = vmatprep.mubr.msk.f32.mxu0 %vm265_vm0, %v4212_v18 }
  0xf1   : > { %4788 = vmatmul.mubr.msk.f32.gmra.mrb[14].mxu1 %vm265_vm0, %v6559_v3  ;;  %5012 = vmatmul.mubr.msk.f32.gmra.mrb[30].mxu0 %vm265_vm0, %v4213_v23 }
  0xf2   : > { %4790 = vmatprep.mubr.msk.f32.mxu1 %vm265_vm0, %v5841_v29  ;;  %5016 = vmatprep.mubr.msk.f32.mxu0 %vm265_vm0, %v5523_v27  ;;  %v6561_v27 = vld [vmem:[#allocation29_spill] sm:$0xff] }
  0xf3   : > { %v4277_v29 = vld [vmem:[%s5394_s28 + $0x19a] sm:$0xff] }
  0xf5   : > { %4791 = vmatmul.mubr.msk.f32.gmra.mrb[16].mxu1 %vm265_vm0, %v5856_v31  ;;  %5017 = vmatmul.mubr.msk.f32.vlgmr.msra.gmra.mrb[0].mxu0 %vm265_vm0, %v5540_v30  ;;  %v6562_v30 = vld [vmem:[#allocation14_spill] sm:$0xff]  ;;  %v6563_v31 = vld [vmem:[#allocation31_spill] sm:$0xff] }
  0xf6   : > { %4793 = vmatprep.mubr.msk.f32.mxu1 %vm265_vm0, %v5861_v0  ;;  %5019 = vmatprep.mubr.msk.f32.mxu0 %vm265_vm0, %v5548_v32  ;;  %v4278_v32 = vld [vmem:[%s5394_s28 + $0x1a2] sm:$0xff] }
  0xf9   : > { %4794 = vmatmul.mubr.msk.f32.gmra.mrb[18].mxu1 %vm265_vm0, %v5873_v28  ;;  %5020 = vmatmul.mubr.msk.f32.gmra.mrb[2].mxu0 %vm265_vm0, %v5563_v34 }
  0xfa   : > { %4796 = vmatprep.mubr.msk.f32.mxu1 %vm265_vm0, %v5876_v5  ;;  %5022 = vmatprep.mubr.msk.f32.mxu0 %vm265_vm0, %v5569_v36 }
  0xfd   : > { %4797 = vmatmul.mubr.msk.f32.gmra.mrb[20].mxu1 %vm265_vm0, %v5887_v7  ;;  %5023 = vmatmul.mubr.msk.f32.gmra.mrb[4].mxu0 %vm265_vm0, %v5583_v38 }
  0xfe   : > { %4799 = vmatprep.mubr.msk.f32.mxu1 %vm265_vm0, %v5890_v10  ;;  %5025 = vmatprep.mubr.msk.f32.mxu0 %vm265_vm0, %v5589_v40 }
 0x101   : > { %4800 = vmatmul.mubr.msk.f32.gmra.mrb[22].mxu1 %vm265_vm0, %v5901_v57  ;;  %5026 = vmatmul.mubr.msk.f32.gmra.mrb[6].mxu0 %vm265_vm0, %v5603_v42 }
 0x102   : > { %4802 = vmatprep.mubr.msk.f32.mxu1 %vm265_vm0, %v5904_v51  ;;  %5028 = vmatprep.mubr.msk.f32.mxu0 %vm265_vm0, %v5609_v44 }
 0x105   : > { %4803 = vmatmul.mubr.msk.f32.gmra.mrb[24].mxu1 %vm265_vm0, %v5915_v47  ;;  %5029 = vmatmul.mubr.msk.f32.gmra.mrb[8].mxu0 %vm265_vm0, %v5623_v46 }
 0x106   : > { %4805 = vmatprep.mubr.msk.f32.mxu1 %vm265_vm0, %v5918_v43  ;;  %5031 = vmatprep.mubr.msk.f32.mxu0 %vm265_vm0, %v5629_v48 }
 0x109   : > { %4806 = vmatmul.mubr.msk.f32.gmra.mrb[26].mxu1 %vm265_vm0, %v5929_v39  ;;  %5032 = vmatmul.mubr.msk.f32.gmra.mrb[10].mxu0 %vm265_vm0, %v5643_v50 }
 0x10a   : > { %4808 = vmatprep.mubr.msk.f32.mxu1 %vm265_vm0, %v5932_v35  ;;  %5034 = vmatprep.mubr.msk.f32.mxu0 %vm265_vm0, %v5649_v52  ;;  %v6300_v52 = vld [vmem:[%s6452_s2] ss:$0 sm:$0xff] }
 0x10d   : > { %4809 = vmatmul.mubr.msk.f32.gmra.mrb[28].mxu1 %vm265_vm0, %v5943_v62  ;;  %5035 = vmatmul.mubr.msk.f32.gmra.mrb[12].mxu0 %vm265_vm0, %v5663_v54 }
 0x10e   : > { %4811 = vmatprep.mubr.msk.f32.mxu1 %vm265_vm0, %v5996_v24  ;;  %5037 = vmatprep.mubr.msk.f32.mxu0 %vm265_vm0, %v5667_v56  ;;  %v6305_v56 = vld [vmem:[%s6453_s3] ss:$0 sm:$0xff] }
 0x111   : > { %4812 = vmatmul.mubr.msk.f32.gmra.mrb[30].mxu1 %vm265_vm0, %v6007_v25  ;;  %5038 = vmatmul.mubr.msk.f32.gmra.mrb[14].mxu0 %vm265_vm0, %v5678_v58 }
 0x112   : > { %4840 = vmatprep.mubr.msk.f32.mxu1 %vm265_vm0, %v5520_v26  ;;  %5040 = vmatprep.mubr.msk.f32.mxu0 %vm265_vm0, %v5684_v60  ;;  %v6560_v26 = vld [vmem:[#allocation27_spill] sm:$0xff] }
 0x115   : > { %4841 = vmatmul.mubr.msk.f32.vlgmr.msra.gmra.mrb[16].mxu1 %vm265_vm0, %v6532_v11  ;;  %5041 = vmatmul.mubr.msk.f32.gmra.mrb[16].mxu0 %vm265_vm0, %v5701_v63 }
 0x116   : > { %4843 = vmatprep.mubr.msk.f32.mxu1 %vm265_vm0, %v6534_v13  ;;  %5043 = vmatprep.mubr.msk.f32.mxu0 %vm265_vm0, %v5709_v2 }
 0x119   : > { %4844 = vmatmul.mubr.msk.f32.gmra.mrb[18].mxu1 %vm265_vm0, %v6536_v15  ;;  %5044 = vmatmul.mubr.msk.f32.gmra.mrb[18].mxu0 %vm265_vm0, %v5724_v4 }
 0x11a   : > { %4846 = vmatprep.mubr.msk.f32.mxu1 %vm265_vm0, %v6538_v17  ;;  %5046 = vmatprep.mubr.msk.f32.mxu0 %vm265_vm0, %v5730_v6 }
 0x11d   : > { %4847 = vmatmul.mubr.msk.f32.gmra.mrb[20].mxu1 %vm265_vm0, %v6540_v19  ;;  %5047 = vmatmul.mubr.msk.f32.gmra.mrb[20].mxu0 %vm265_vm0, %v5744_v9 }
 0x11e   : > { %4849 = vmatprep.mubr.msk.f32.mxu1 %vm265_vm0, %v6542_v21  ;;  %5049 = vmatprep.mubr.msk.f32.mxu0 %vm265_vm0, %v5750_v55 }
 0x121   : > { %4850 = vmatmul.mubr.msk.f32.gmra.mrb[22].mxu1 %vm265_vm0, %v6544_v22  ;;  %5050 = vmatmul.mubr.msk.f32.gmra.mrb[22].mxu0 %vm265_vm0, %v5764_v53 }
 0x122   : > { %4852 = vmatprep.mubr.msk.f32.mxu1 %vm265_vm0, %v6546_v37  ;;  %5052 = vmatprep.mubr.msk.f32.mxu0 %vm265_vm0, %v5770_v49 }
 0x125   : > { %4853 = vmatmul.mubr.msk.f32.gmra.mrb[24].mxu1 %vm265_vm0, %v6548_v33  ;;  %5053 = vmatmul.mubr.msk.f32.gmra.mrb[24].mxu0 %vm265_vm0, %v5784_v45 }
 0x126   : > { %4855 = vmatprep.mubr.msk.f32.mxu1 %vm265_vm0, %v6550_v12  ;;  %5055 = vmatprep.mubr.msk.f32.mxu0 %vm265_vm0, %v5790_v41 }
 0x129   : > { %4856 = vmatmul.mubr.msk.f32.gmra.mrb[26].mxu1 %vm265_vm0, %v6552_v16  ;;  %5056 = vmatmul.mubr.msk.f32.gmra.mrb[26].mxu0 %vm265_vm0, %v6560_v26 }
 0x12a   : > { %4858 = vmatprep.mubr.msk.f32.mxu1 %vm265_vm0, %v6554_v20  ;;  %5058 = vmatprep.mubr.msk.f32.mxu0 %vm265_vm0, %v6561_v27 }
 0x12d   : > { %4859 = vmatmul.mubr.msk.f32.gmra.mrb[28].mxu1 %vm265_vm0, %v6562_v30  ;;  %5059 = vmatmul.mubr.msk.f32.gmra.mrb[28].mxu0 %vm265_vm0, %v6563_v31 }
 0x12e   : > { %4861 = vmatprep.mubr.msk.f32.mxu1 %vm265_vm0, %v6132_v1  ;;  %5061 = vmatprep.mubr.msk.f32.mxu0 %vm265_vm0, %v4277_v29 }
 0x131   : > { %4862 = vmatmul.mubr.msk.f32.gmra.mrb[30].mxu1 %vm265_vm0, %v6143_v14  ;;  %5062 = vmatmul.mubr.msk.f32.gmra.mrb[30].mxu0 %vm265_vm0, %v4278_v32 }
 0x1a8   : > { %v4768_v34 = vpop.f32.mrb[0].mxu1 }
 0x1a9   : > { %v1492_v35 = vpop.f32.mrb[1].mxu1 }
 0x1ac   : > { %v4771_v36 = vpop.f32.mrb[2].mxu1 }
 0x1ad   : > { %v1502_v38 = vpop.f32.mrb[3].mxu1 }
 0x1b0   : > { %v4774_v39 = vpop.f32.mrb[4].mxu1 }
 0x1b1   : > { %v1512_v40 = vpop.f32.mrb[5].mxu1 }
 0x1b4   : > { %v4777_v41 = vpop.f32.mrb[6].mxu1 }
 0x1b5   : > { %v1522_v42 = vpop.f32.mrb[7].mxu1 }
 0x1b8   : > { %v4780_v43 = vpop.f32.mrb[8].mxu1 }
 0x1b9   : > { %v1532_v44 = vpop.f32.mrb[9].mxu1 }
 0x1bc   : > { %v6285_v45 = vpop.f32.mrb[10].mxu1 }
 0x1bd   : > { %v6287_v46 = vpop.f32.mrb[11].mxu1 }
 0x1c0   : > { %v6289_v47 = vpop.f32.mrb[12].mxu1 }
 0x1c1   : > { %v6291_v48 = vpop.f32.mrb[13].mxu1 }
 0x1c4   : > { %v6293_v49 = vpop.f32.mrb[14].mxu1 }
 0x1c5   : > { %v6295_v50 = vpop.f32.mrb[15].mxu1 }
 0x1c8   : > { %v5018_v51 = vpop.f32.mrb[0].mxu0 }
 0x1c9   : > { %v5066_v53 = vadd.f32 %v5018_v51, %v4768_v34  ;;  %v3428_v54 = vpop.f32.mrb[1].mxu0 }
 0x1ca   : > { %v5067_v58 = vadd.f32 %v3428_v54, %v1492_v35 }
 0x1cb   : > { %v3627_v59 = vmul.f32 %v5066_v53, %v6300_v52 }
 0x1cc   : > { %v3626_v60 = vmul.f32 %v5067_v58, %v6300_v52  ;;  %v5021_v62 = vpop.f32.mrb[2].mxu0 }
 0x1cd   : > { %v3666_v63 = vadd.f32 %v6305_v56, %v3627_v59  ;;  %v5068_v0 = vadd.f32 %v5021_v62, %v4771_v36  ;;  %v3438_v2 = vpop.f32.mrb[3].mxu0 }
 0x1ce   : > { %v3665_v4 = vadd.f32 %v6305_v56, %v3626_v60  ;;  %v5069_v5 = vadd.f32 %v3438_v2, %v1502_v38 }
 0x1cf   : > { %v3698_v6 = vmax.f32 %v3666_v63, 0.0  ;;  %v3629_v7 = vmul.f32 %v5068_v0, %v6300_v52 }
 0x1d0   : > { %v3697_v9 = vmax.f32 %v3665_v4, 0.0  ;;  %v3628_v10 = vmul.f32 %v5069_v5, %v6300_v52  ;;  %v5024_v55 = vpop.f32.mrb[4].mxu0 }
 0x1d1   : > { %3730 = vst.msk [vmem:[%s6314_s22 + $0x8] sm:$0xff] %vm265_vm0, %v3698_v6  ;;  %v3668_v57 = vadd.f32 %v6305_v56, %v3629_v7  ;;  %v5070_v28 = vadd.f32 %v5024_v55, %v4774_v39  ;;  %v3448_v24 = vpop.f32.mrb[5].mxu0 }
 0x1d2   : > { %3729 = vst.msk [vmem:[%s6314_s22] sm:$0xff] %vm265_vm0, %v3697_v9  ;;  %v3667_v25 = vadd.f32 %v6305_v56, %v3628_v10  ;;  %v5071_v8 = vadd.f32 %v3448_v24, %v1512_v40 }
 0x1d3   : > { %v3700_v11 = vmax.f32 %v3668_v57, 0.0  ;;  %v3631_v13 = vmul.f32 %v5070_v28, %v6300_v52 }
 0x1d4   : > { %v3699_v15 = vmax.f32 %v3667_v25, 0.0  ;;  %v3630_v17 = vmul.f32 %v5071_v8, %v6300_v52  ;;  %v5027_v19 = vpop.f32.mrb[6].mxu0 }
 0x1d5   : > { %3732 = vst.msk [vmem:[%s6314_s22 + $0x18] sm:$0xff] %vm265_vm0, %v3700_v11  ;;  %v3670_v21 = vadd.f32 %v6305_v56, %v3631_v13  ;;  %v5072_v22 = vadd.f32 %v5027_v19, %v4777_v41  ;;  %v3458_v37 = vpop.f32.mrb[7].mxu0 }
 0x1d6   : > { %3731 = vst.msk [vmem:[%s6314_s22 + $0x10] sm:$0xff] %vm265_vm0, %v3699_v15  ;;  %v3669_v33 = vadd.f32 %v6305_v56, %v3630_v17  ;;  %v5073_v12 = vadd.f32 %v3458_v37, %v1522_v42 }
 0x1d7   : > { %v3702_v16 = vmax.f32 %v3670_v21, 0.0  ;;  %v3633_v20 = vmul.f32 %v5072_v22, %v6300_v52 }
 0x1d8   : > { %v3701_v1 = vmax.f32 %v3669_v33, 0.0  ;;  %v3632_v3 = vmul.f32 %v5073_v12, %v6300_v52  ;;  %v5030_v61 = vpop.f32.mrb[8].mxu0 }
 0x1d9   : > { %3734 = vst.msk [vmem:[%s6314_s22 + $0x28] sm:$0xff] %vm265_vm0, %v3702_v16  ;;  %v3672_v14 = vadd.f32 %v6305_v56, %v3633_v20  ;;  %v5074_v18 = vadd.f32 %v5030_v61, %v4780_v43  ;;  %v3468_v23 = vpop.f32.mrb[9].mxu0 }
 0x1da   : > { %3733 = vst.msk [vmem:[%s6314_s22 + $0x20] sm:$0xff] %vm265_vm0, %v3701_v1  ;;  %v3671_v26 = vadd.f32 %v6305_v56, %v3632_v3  ;;  %v5075_v27 = vadd.f32 %v3468_v23, %v1532_v44 }
 0x1db   : > { %v3704_v29 = vmax.f32 %v3672_v14, 0.0  ;;  %v3635_v30 = vmul.f32 %v5074_v18, %v6300_v52 }
 0x1dc   : > { %v3703_v31 = vmax.f32 %v3671_v26, 0.0  ;;  %v3634_v32 = vmul.f32 %v5075_v27, %v6300_v52  ;;  %v5033_v34 = vpop.f32.mrb[10].mxu0 }
 0x1dd   : > { %3736 = vst.msk [vmem:[%s6314_s22 + $0x38] sm:$0xff] %vm265_vm0, %v3704_v29  ;;  %v3674_v35 = vadd.f32 %v6305_v56, %v3635_v30  ;;  %v5076_v36 = vadd.f32 %v5033_v34, %v6285_v45  ;;  %v3478_v38 = vpop.f32.mrb[11].mxu0 }
 0x1de   : > { %3735 = vst.msk [vmem:[%s6314_s22 + $0x30] sm:$0xff] %vm265_vm0, %v3703_v31  ;;  %v3673_v39 = vadd.f32 %v6305_v56, %v3634_v32  ;;  %v5077_v40 = vadd.f32 %v3478_v38, %v6287_v46 }
 0x1df   : > { %v3706_v41 = vmax.f32 %v3674_v35, 0.0  ;;  %v3637_v42 = vmul.f32 %v5076_v36, %v6300_v52 }
 0x1e0   : > { %v3705_v43 = vmax.f32 %v3673_v39, 0.0  ;;  %v3636_v44 = vmul.f32 %v5077_v40, %v6300_v52  ;;  %v5036_v51 = vpop.f32.mrb[12].mxu0 }
 0x1e1   : > { %3738 = vst.msk [vmem:[%s6314_s22 + $0x48] sm:$0xff] %vm265_vm0, %v3706_v41  ;;  %v3676_v45 = vadd.f32 %v6305_v56, %v3637_v42  ;;  %v5078_v53 = vadd.f32 %v5036_v51, %v6289_v47  ;;  %v3488_v54 = vpop.f32.mrb[13].mxu0 }
 0x1e2   : > { %3737 = vst.msk [vmem:[%s6314_s22 + $0x40] sm:$0xff] %vm265_vm0, %v3705_v43  ;;  %v3675_v46 = vadd.f32 %v6305_v56, %v3636_v44  ;;  %v5079_v58 = vadd.f32 %v3488_v54, %v6291_v48 }
 0x1e3   : > { %v3708_v59 = vmax.f32 %v3676_v45, 0.0  ;;  %v3639_v60 = vmul.f32 %v5078_v53, %v6300_v52 }
 0x1e4   : > { %v3707_v62 = vmax.f32 %v3675_v46, 0.0  ;;  %v3638_v63 = vmul.f32 %v5079_v58, %v6300_v52  ;;  %v5039_v0 = vpop.f32.mrb[14].mxu0 }
 0x1e5   : > { %3740 = vst.msk [vmem:[%s6314_s22 + $0x58] sm:$0xff] %vm265_vm0, %v3708_v59  ;;  %v3678_v2 = vadd.f32 %v6305_v56, %v3639_v60  ;;  %v5080_v47 = vadd.f32 %v5039_v0, %v6293_v49  ;;  %v3498_v4 = vpop.f32.mrb[15].mxu0 }
 0x1e6   : > { %3739 = vst.msk [vmem:[%s6314_s22 + $0x50] sm:$0xff] %vm265_vm0, %v3707_v62  ;;  %v3677_v48 = vadd.f32 %v6305_v56, %v3638_v63  ;;  %v5081_v5 = vadd.f32 %v3498_v4, %v6295_v50 }
 0x1e7   : > { %v3710_v6 = vmax.f32 %v3678_v2, 0.0  ;;  %v3641_v7 = vmul.f32 %v5080_v47, %v6300_v52 }
 0x1e8   : > { %v3709_v9 = vmax.f32 %v3677_v48, 0.0  ;;  %v3640_v10 = vmul.f32 %v5081_v5, %v6300_v52  ;;  %v4842_v55 = vpop.f32.mrb[16].mxu1  ;;  %v5042_v57 = vpop.f32.mrb[16].mxu0 }
 0x1e9   : > { %3742 = vst.msk [vmem:[%s6314_s22 + $0x68] sm:$0xff] %vm265_vm0, %v3710_v6  ;;  %v3680_v49 = vadd.f32 %v6305_v56, %v3641_v7  ;;  %v5082_v28 = vadd.f32 %v5042_v57, %v4842_v55  ;;  %v1959_v24 = vpop.f32.mrb[17].mxu1  ;;  %v3508_v25 = vpop.f32.mrb[17].mxu0 }
 0x1ea   : > { %3741 = vst.msk [vmem:[%s6314_s22 + $0x60] sm:$0xff] %vm265_vm0, %v3709_v9  ;;  %v3679_v50 = vadd.f32 %v6305_v56, %v3640_v10  ;;  %v5083_v8 = vadd.f32 %v3508_v25, %v1959_v24 }
 0x1eb   : > { %v3712_v11 = vmax.f32 %v3680_v49, 0.0  ;;  %v3643_v13 = vmul.f32 %v5082_v28, %v6300_v52 }
 0x1ec   : > { %v3711_v15 = vmax.f32 %v3679_v50, 0.0  ;;  %v3642_v17 = vmul.f32 %v5083_v8, %v6300_v52  ;;  %v4845_v19 = vpop.f32.mrb[18].mxu1  ;;  %v5045_v21 = vpop.f32.mrb[18].mxu0 }
 0x1ed   : > { %3744 = vst.msk [vmem:[%s6314_s22 + $0x78] sm:$0xff] %vm265_vm0, %v3712_v11  ;;  %v3682_v22 = vadd.f32 %v6305_v56, %v3643_v13  ;;  %v5084_v37 = vadd.f32 %v5045_v21, %v4845_v19  ;;  %v1969_v33 = vpop.f32.mrb[19].mxu1  ;;  %v3518_v12 = vpop.f32.mrb[19].mxu0 }
 0x1ee   : > { %3743 = vst.msk [vmem:[%s6314_s22 + $0x70] sm:$0xff] %vm265_vm0, %v3711_v15  ;;  %v3681_v16 = vadd.f32 %v6305_v56, %v3642_v17  ;;  %v5085_v20 = vadd.f32 %v3518_v12, %v1969_v33 }
 0x1ef   : > { %v3714_v1 = vmax.f32 %v3682_v22, 0.0  ;;  %v3645_v3 = vmul.f32 %v5084_v37, %v6300_v52 }
 0x1f0   : > { %v3713_v61 = vmax.f32 %v3681_v16, 0.0  ;;  %v3644_v14 = vmul.f32 %v5085_v20, %v6300_v52  ;;  %v4848_v18 = vpop.f32.mrb[20].mxu1  ;;  %v5048_v23 = vpop.f32.mrb[20].mxu0 }
 0x1f1   : > { %3746 = vst.msk [vmem:[%s6314_s22 + $0x88] sm:$0xff] %vm265_vm0, %v3714_v1  ;;  %v3684_v26 = vadd.f32 %v6305_v56, %v3645_v3  ;;  %v5086_v27 = vadd.f32 %v5048_v23, %v4848_v18  ;;  %v1979_v29 = vpop.f32.mrb[21].mxu1  ;;  %v3528_v30 = vpop.f32.mrb[21].mxu0 }
 0x1f2   : > { %3745 = vst.msk [vmem:[%s6314_s22 + $0x80] sm:$0xff] %vm265_vm0, %v3713_v61  ;;  %v3683_v31 = vadd.f32 %v6305_v56, %v3644_v14  ;;  %v5087_v32 = vadd.f32 %v3528_v30, %v1979_v29 }
 0x1f3   : > { %v3716_v34 = vmax.f32 %v3684_v26, 0.0  ;;  %v3647_v35 = vmul.f32 %v5086_v27, %v6300_v52 }
 0x1f4   : > { %v3715_v36 = vmax.f32 %v3683_v31, 0.0  ;;  %v3646_v38 = vmul.f32 %v5087_v32, %v6300_v52  ;;  %v4851_v39 = vpop.f32.mrb[22].mxu1  ;;  %v5051_v40 = vpop.f32.mrb[22].mxu0 }
 0x1f5   : > { %3748 = vst.msk [vmem:[%s6314_s22 + $0x98] sm:$0xff] %vm265_vm0, %v3716_v34  ;;  %v3686_v41 = vadd.f32 %v6305_v56, %v3647_v35  ;;  %v5088_v42 = vadd.f32 %v5051_v40, %v4851_v39  ;;  %v1989_v43 = vpop.f32.mrb[23].mxu1  ;;  %v3538_v44 = vpop.f32.mrb[23].mxu0 }
 0x1f6   : > { %3747 = vst.msk [vmem:[%s6314_s22 + $0x90] sm:$0xff] %vm265_vm0, %v3715_v36  ;;  %v3685_v51 = vadd.f32 %v6305_v56, %v3646_v38  ;;  %v5089_v45 = vadd.f32 %v3538_v44, %v1989_v43 }
 0x1f7   : > { %v3718_v53 = vmax.f32 %v3686_v41, 0.0  ;;  %v3649_v54 = vmul.f32 %v5088_v42, %v6300_v52 }
 0x1f8   : > { %v3717_v46 = vmax.f32 %v3685_v51, 0.0  ;;  %v3648_v58 = vmul.f32 %v5089_v45, %v6300_v52  ;;  %v4854_v59 = vpop.f32.mrb[24].mxu1  ;;  %v5054_v60 = vpop.f32.mrb[24].mxu0 }
 0x1f9   : > { %3750 = vst.msk [vmem:[%s6314_s22 + $0xa8] sm:$0xff] %vm265_vm0, %v3718_v53  ;;  %v3688_v62 = vadd.f32 %v6305_v56, %v3649_v54  ;;  %v5090_v63 = vadd.f32 %v5054_v60, %v4854_v59  ;;  %v1999_v0 = vpop.f32.mrb[25].mxu1  ;;  %v3548_v2 = vpop.f32.mrb[25].mxu0 }
 0x1fa   : > { %3749 = vst.msk [vmem:[%s6314_s22 + $0xa0] sm:$0xff] %vm265_vm0, %v3717_v46  ;;  %v3687_v47 = vadd.f32 %v6305_v56, %v3648_v58  ;;  %v5091_v4 = vadd.f32 %v3548_v2, %v1999_v0 }
 0x1fb   : > { %v3720_v48 = vmax.f32 %v3688_v62, 0.0  ;;  %v3651_v5 = vmul.f32 %v5090_v63, %v6300_v52 }
 0x1fc   : > { %v3719_v6 = vmax.f32 %v3687_v47, 0.0  ;;  %v3650_v7 = vmul.f32 %v5091_v4, %v6300_v52  ;;  %v4857_v9 = vpop.f32.mrb[26].mxu1  ;;  %v5057_v10 = vpop.f32.mrb[26].mxu0 }
 0x1fd   : > { %3752 = vst.msk [vmem:[%s6314_s22 + $0xb8] sm:$0xff] %vm265_vm0, %v3720_v48  ;;  %v3690_v55 = vadd.f32 %v6305_v56, %v3651_v5  ;;  %v5092_v57 = vadd.f32 %v5057_v10, %v4857_v9  ;;  %v2009_v49 = vpop.f32.mrb[27].mxu1  ;;  %v3558_v28 = vpop.f32.mrb[27].mxu0 }
 0x1fe   : > { %3751 = vst.msk [vmem:[%s6314_s22 + $0xb0] sm:$0xff] %vm265_vm0, %v3719_v6  ;;  %v3689_v24 = vadd.f32 %v6305_v56, %v3650_v7  ;;  %v5093_v25 = vadd.f32 %v3558_v28, %v2009_v49 }
 0x1ff   : > { %v3722_v50 = vmax.f32 %v3690_v55, 0.0  ;;  %v3653_v8 = vmul.f32 %v5092_v57, %v6300_v52 }
 0x200   : > { %v3721_v11 = vmax.f32 %v3689_v24, 0.0  ;;  %v3652_v13 = vmul.f32 %v5093_v25, %v6300_v52  ;;  %v4860_v15 = vpop.f32.mrb[28].mxu1  ;;  %v5060_v17 = vpop.f32.mrb[28].mxu0 }
 0x201   : > { %3754 = vst.msk [vmem:[%s6314_s22 + $0xc8] sm:$0xff] %vm265_vm0, %v3722_v50  ;;  %v3692_v19 = vadd.f32 %v6305_v56, %v3653_v8  ;;  %v5094_v21 = vadd.f32 %v5060_v17, %v4860_v15  ;;  %v2019_v22 = vpop.f32.mrb[29].mxu1  ;;  %v3568_v37 = vpop.f32.mrb[29].mxu0 }
 0x202   : > { %3753 = vst.msk [vmem:[%s6314_s22 + $0xc0] sm:$0xff] %vm265_vm0, %v3721_v11  ;;  %v3691_v33 = vadd.f32 %v6305_v56, %v3652_v13  ;;  %v5095_v12 = vadd.f32 %v3568_v37, %v2019_v22 }
 0x203   : > { %v3724_v16 = vmax.f32 %v3692_v19, 0.0  ;;  %v3655_v20 = vmul.f32 %v5094_v21, %v6300_v52 }
 0x204   : > { %v3723_v1 = vmax.f32 %v3691_v33, 0.0  ;;  %v3654_v3 = vmul.f32 %v5095_v12, %v6300_v52  ;;  %v4863_v61 = vpop.f32.mrb[30].mxu1  ;;  %v5063_v14 = vpop.f32.mrb[30].mxu0 }
 0x205   : > { %3756 = vst.msk [vmem:[%s6314_s22 + $0xd8] sm:$0xff] %vm265_vm0, %v3724_v16  ;;  %v3694_v18 = vadd.f32 %v6305_v56, %v3655_v20  ;;  %v5096_v23 = vadd.f32 %v5063_v14, %v4863_v61  ;;  %v2029_v26 = vpop.f32.mrb[31].mxu1  ;;  %v3578_v27 = vpop.f32.mrb[31].mxu0 }
 0x206   : > { %3755 = vst.msk [vmem:[%s6314_s22 + $0xd0] sm:$0xff] %vm265_vm0, %v3723_v1  ;;  %v3693_v29 = vadd.f32 %v6305_v56, %v3654_v3  ;;  %v5097_v30 = vadd.f32 %v3578_v27, %v2029_v26 }
 0x207   : > { %v3726_v31 = vmax.f32 %v3694_v18, 0.0  ;;  %v3657_v32 = vmul.f32 %v5096_v23, %v6300_v52 }
 0x208   : > { %v3725_v34 = vmax.f32 %v3693_v29, 0.0  ;;  %v3656_v35 = vmul.f32 %v5097_v30, %v6300_v52 }
 0x209   : > { %3758 = vst.msk [vmem:[%s6314_s22 + $0xe8] sm:$0xff] %vm265_vm0, %v3726_v31  ;;  %v3696_v36 = vadd.f32 %v6305_v56, %v3657_v32 }
 0x20a   : > { %3757 = vst.msk [vmem:[%s6314_s22 + $0xe0] sm:$0xff] %vm265_vm0, %v3725_v34  ;;  %v3695_v38 = vadd.f32 %v6305_v56, %v3656_v35 }
 0x20b   : > { %v3728_v39 = vmax.f32 %v3696_v36, 0.0 }
 0x20c   : > { %v3727_v40 = vmax.f32 %v3695_v38, 0.0 }
 0x20d   : > { %3760 = vst.msk [vmem:[%s6314_s22 + $0xf8] sm:$0xff] %vm265_vm0, %v3728_v39 }
 0x20e   : > { %3759 = vst.msk [vmem:[%s6314_s22 + $0xf0] sm:$0xff] %vm265_vm0, %v3727_v40 }
 0x20f PF: > { %s14_s15 = sadd.s32 1, %s5337_s15  }
 0x210   : > { %p11_p4 = scmp.ge.s32.totalorder %s14_s15, 4  }
 0x212   :  { %13 = sbr.rel (!%p11_p4) target bundleno = 1 (0x1), region = 76 }

// kernel: _upconv_block_forward.4
= control target key start
LH: loop header
LB: loop body
LE: loop exit
PB: predicated region body
PF: predicated region fallthrough
CT: control target
= control target key end

     0   :  { %s10540_s21 = smov 0   ;;  %s12576_s0 = inlined_call_operand.vmem [shape: f32[2,18,18,4], index: 0, kind: input, shape index: {}]   ;;  %s12577_s1 = inlined_call_operand.vmem [shape: f32[2,18,18,4], index: 1, kind: input, shape index: {}]   ;;  %s12578_s2 = inlined_call_operand.vmem [shape: f32[9,4,8], index: 2, kind: input, shape index: {}]   ;;  %s12579_s3 = inlined_call_operand.vmem [shape: f32[9,4,8], index: 3, kind: input, shape index: {}]   ;;  %s12580_s4 = inlined_call_operand.vmem [shape: f32[1,8], index: 4, kind: input, shape index: {}]   ;;  %s12581_s5 = inlined_call_operand.vmem [shape: f32[1,8], index: 5, kind: input, shape index: {}]   ;;  %s12582_s6 = inlined_call_operand.vmem [shape: f32[2,16,16,8], index: 6, kind: output, shape index: {}]  }
   0x1 LB: > { %s7442_s22 = sadd.s32 4294967295, %s10503_s21   ;;  %p7446_p0 = scmp.ge.s32.totalorder %s10503_s21, 1  ;;  %s10503_s21 = sphi %s10540_s21, %s16_s21  }
   0x2   : > { %p222_p1 = scmp.lt.s32.totalorder %s10503_s21, 3 }
   0x4   : > { %p223_p2 = pnand %p7446_p0, %p222_p1 }
   0x6   : > { %226 = sbr.rel (%p223_p2) target bundleno = 816 (0x330), region = 44 }
   0xd   : > { %v7451_v0 = vld [vmem:[%s12578_s2 + $0x4] sm:$0xf]  ;;  %vm436_vm0 = vcmask 1043456   ;;  %v3753_v1 = vld [vmem:[%s12579_s3] sm:$0xf]  ;;  %p257_p3 = scmp.lt.s32.totalorder %s7442_s22, 1 }
   0xe   : > { %9044 = vmatprep.subr.msk.mxu1 %vm436_vm0, %v7451_v0  ;;  %9494 = vmatprep.subr.msk.mxu0 %vm436_vm0, %v3753_v1  ;;  %v304_v2 = vld [vmem:[%s12578_s2] sm:$0xf]  ;;  %v7981_v3 = vld [vmem:[%s12579_s3 + $0x4] sm:$0xf]  ;;  %vm339_vm1 = vcmask 31744   ;;  %vm7342_vm2 = vcmask 64512  }
   0xf   : > { %9045 = vmatpush3.msk.msra.mxu1 %vm436_vm0, %v7451_v0  ;;  %9495 = vmatpush3.msk.msra.mxu0 %vm436_vm0, %v3753_v1  ;;  %s12854_s22 = smov (!%p257_p3, %s7442_s22), 1  ;;  %v10594_v10 = vld [vmem:[%s12578_s2 + $0x8] sm:$0xf] }
  0x10   : > { %9094 = vmatprep.subr.msk.mxu1 %vm436_vm0, %v304_v2  ;;  %9544 = vmatprep.subr.msk.mxu0 %vm436_vm0, %v7981_v3  ;;  %s10488_s7 = smul.u32 432, %s12854_s22  ;;  %v10599_v11 = vld [vmem:[%s12579_s3 + $0x8] sm:$0xf] }
  0x12   : > { %s10572_s10 = scalar_lea.vmem %s12576_s0, %s10488_s7  ;;  %s10577_s13 = scalar_lea.vmem %s12577_s1, %s10488_s7 }
  0x13   : > { %v305_v4 = vld [vmem:[%s10572_s10 + $0x1] sm:$0xff]  ;;  %v306_v6 = vld [vmem:[%s10572_s10 + $0x9] sm:$0xff]  ;;  %v307_v8 = vld [vmem:[%s10572_s10 + $0x19] sm:$0xff] }
  0x14   : > { %v3721_v5 = vld [vmem:[%s10577_s13] sm:$0xff]  ;;  %9046 = vmatprep.mubr.msk.f32.mxu1 %vm339_vm1, %v305_v4  ;;  %v3722_v7 = vld [vmem:[%s10577_s13 + $0x8] sm:$0xff]  ;;  %v10587_v9 = vld [vmem:[%s10577_s13 + $0x18] sm:$0xff] }
  0x15   : > { %9496 = vmatprep.mubr.msk.f32.mxu0 %vm339_vm1, %v3721_v5  ;;  %9047 = vmatmul.mubr.msk.f32.vlgmr.msra.gmra.mrb[0].mxu1 %vm339_vm1, %v306_v6  ;;  %v308_v12 = vld [vmem:[%s10572_s10 + $0x21] sm:$0xff]  ;;  %v309_v14 = vld [vmem:[%s10572_s10 + $0x31] sm:$0xff]  ;;  %v310_v16 = vld [vmem:[%s10572_s10 + $0x39] sm:$0xff] }
  0x16   : > { %9497 = vmatmul.mubr.msk.f32.vlgmr.msra.gmra.mrb[0].mxu0 %vm339_vm1, %v3722_v7  ;;  %9095 = vmatpush3.msk.msra.mxu1 %vm436_vm0, %v304_v2  ;;  %v10605_v13 = vld [vmem:[%s10577_s13 + $0x20] sm:$0xff]  ;;  %v10612_v15 = vld [vmem:[%s10577_s13 + $0x30] sm:$0xff]  ;;  %v10626_v17 = vld [vmem:[%s10577_s13 + $0x38] sm:$0xff] }
  0x17   : > { %9545 = vmatpush3.msk.msra.mxu0 %vm436_vm0, %v7981_v3  ;;  %9049 = vmatprep.mubr.msk.f32.mxu1 %vm339_vm1, %v307_v8  ;;  %v311_v18 = vld [vmem:[%s10572_s10 + $0x49] sm:$0xff]  ;;  %v312_v20 = vld [vmem:[%s10572_s10 + $0x51] sm:$0xff]  ;;  %v313_v22 = vld [vmem:[%s10572_s10 + $0x61] sm:$0xff] }
  0x18   : > { %9499 = vmatprep.mubr.msk.f32.mxu0 %vm339_vm1, %v10587_v9  ;;  %9144 = vmatprep.subr.msk.mxu1 %vm436_vm0, %v10594_v10  ;;  %v10630_v19 = vld [vmem:[%s10577_s13 + $0x48] sm:$0xff]  ;;  %v10640_v21 = vld [vmem:[%s10577_s13 + $0x50] sm:$0xff]  ;;  %v10644_v23 = vld [vmem:[%s10577_s13 + $0x60] sm:$0xff] }
  0x19   : > { %9594 = vmatprep.subr.msk.mxu0 %vm436_vm0, %v10599_v11  ;;  %9050 = vmatmul.mubr.msk.f32.gmra.mrb[2].mxu1 %vm339_vm1, %v308_v12  ;;  %v314_v24 = vld [vmem:[%s10572_s10 + $0x69] sm:$0xff]  ;;  %v315_v26 = vld [vmem:[%s10572_s10 + $0x79] sm:$0xff]  ;;  %v316_v28 = vld [vmem:[%s10572_s10 + $0x81] sm:$0xff] }
  0x1a   : > { %9500 = vmatmul.mubr.msk.f32.gmra.mrb[2].mxu0 %vm339_vm1, %v10605_v13  ;;  %9052 = vmatprep.mubr.msk.f32.mxu1 %vm339_vm1, %v309_v14  ;;  %v10654_v25 = vld [vmem:[%s10577_s13 + $0x68] sm:$0xff]  ;;  %v10658_v27 = vld [vmem:[%s10577_s13 + $0x78] sm:$0xff]  ;;  %v10668_v29 = vld [vmem:[%s10577_s13 + $0x80] sm:$0xff] }
  0x1b   : > { %9502 = vmatprep.mubr.msk.f32.mxu0 %vm339_vm1, %v10612_v15  ;;  %v317_v30 = vld [vmem:[%s10572_s10 + $0x91] sm:$0xff]  ;;  %v318_v32 = vld [vmem:[%s10572_s10 + $0x99] sm:$0xff]  ;;  %v319_v34 = vld [vmem:[%s10572_s10 + $0xa9] sm:$0xff] }
  0x1c   : > { %v10672_v31 = vld [vmem:[%s10577_s13 + $0x90] sm:$0xff]  ;;  %v10682_v33 = vld [vmem:[%s10577_s13 + $0x98] sm:$0xff]  ;;  %v10686_v35 = vld [vmem:[%s10577_s13 + $0xa8] sm:$0xff] }
  0x1d   : > { %9053 = vmatmul.mubr.msk.f32.gmra.mrb[4].mxu1 %vm339_vm1, %v310_v16  ;;  %v320_v36 = vld [vmem:[%s10572_s10 + $0xb1] sm:$0xff]  ;;  %v321_v38 = vld [vmem:[%s10572_s10 + $0xc1] sm:$0xff]  ;;  %v322_v40 = vld [vmem:[%s10572_s10 + $0xc9] sm:$0xff] }
  0x1e   : > { %9503 = vmatmul.mubr.msk.f32.gmra.mrb[4].mxu0 %vm339_vm1, %v10626_v17  ;;  %9055 = vmatprep.mubr.msk.f32.mxu1 %vm339_vm1, %v311_v18  ;;  %v10696_v37 = vld [vmem:[%s10577_s13 + $0xb0] sm:$0xff]  ;;  %v10700_v39 = vld [vmem:[%s10577_s13 + $0xc0] sm:$0xff]  ;;  %v10710_v41 = vld [vmem:[%s10577_s13 + $0xc8] sm:$0xff] }
  0x1f   : > { %9505 = vmatprep.mubr.msk.f32.mxu0 %vm339_vm1, %v10630_v19  ;;  %v323_v42 = vld [vmem:[%s10572_s10 + $0xd9] sm:$0xff]  ;;  %v324_v44 = vld [vmem:[%s10572_s10 + $0xe1] sm:$0xff]  ;;  %v325_v46 = vld [vmem:[%s10572_s10 + $0xf1] sm:$0xff] }
  0x20   : > { %v10714_v43 = vld [vmem:[%s10577_s13 + $0xd8] sm:$0xff]  ;;  %v10724_v45 = vld [vmem:[%s10577_s13 + $0xe0] sm:$0xff]  ;;  %v10728_v47 = vld [vmem:[%s10577_s13 + $0xf0] sm:$0xff] }
  0x21   : > { %9056 = vmatmul.mubr.msk.f32.gmra.mrb[6].mxu1 %vm339_vm1, %v312_v20  ;;  %v326_v48 = vld [vmem:[%s10572_s10 + $0xf9] sm:$0xff]  ;;  %v327_v50 = vld [vmem:[%s10572_s10 + $0x109] sm:$0xff]  ;;  %v328_v52 = vld [vmem:[%s10572_s10 + $0x111] sm:$0xff] }
  0x22   : > { %9506 = vmatmul.mubr.msk.f32.gmra.mrb[6].mxu0 %vm339_vm1, %v10640_v21  ;;  %9058 = vmatprep.mubr.msk.f32.mxu1 %vm339_vm1, %v313_v22  ;;  %v10738_v49 = vld [vmem:[%s10577_s13 + $0xf8] sm:$0xff]  ;;  %v10742_v51 = vld [vmem:[%s10577_s13 + $0x108] sm:$0xff]  ;;  %v10752_v53 = vld [vmem:[%s10577_s13 + $0x110] sm:$0xff] }
  0x23   : > { %9508 = vmatprep.mubr.msk.f32.mxu0 %vm339_vm1, %v10644_v23  ;;  %v329_v54 = vld [vmem:[%s10572_s10 + $0x121] sm:$0xff]  ;;  %v330_v56 = vld [vmem:[%s10572_s10 + $0x129] sm:$0xff]  ;;  %v331_v58 = vld [vmem:[%s10572_s10 + $0x139] sm:$0xff] }
  0x24   : > { %v10756_v55 = vld [vmem:[%s10577_s13 + $0x120] sm:$0xff]  ;;  %v10766_v57 = vld [vmem:[%s10577_s13 + $0x128] sm:$0xff]  ;;  %v10770_v59 = vld [vmem:[%s10577_s13 + $0x138] sm:$0xff] }
  0x25   : > { %9059 = vmatmul.mubr.msk.f32.gmra.mrb[8].mxu1 %vm339_vm1, %v314_v24  ;;  %v332_v60 = vld [vmem:[%s10572_s10 + $0x141] sm:$0xff]  ;;  %v333_v62 = vld [vmem:[%s10572_s10 + $0x151] sm:$0xff]  ;;  %v334_v0 = vld [vmem:[%s10572_s10 + $0x159] sm:$0xff] }
  0x26   : > { %9509 = vmatmul.mubr.msk.f32.gmra.mrb[8].mxu0 %vm339_vm1, %v10654_v25  ;;  %9061 = vmatprep.mubr.msk.f32.mxu1 %vm339_vm1, %v315_v26  ;;  %v10780_v61 = vld [vmem:[%s10577_s13 + $0x140] sm:$0xff]  ;;  %v10784_v63 = vld [vmem:[%s10577_s13 + $0x150] sm:$0xff]  ;;  %v10794_v1 = vld [vmem:[%s10577_s13 + $0x158] sm:$0xff] }
  0x27   : > { %9511 = vmatprep.mubr.msk.f32.mxu0 %vm339_vm1, %v10658_v27  ;;  %12673 = vst [vmem:[#allocation2_spill] sm:$0xff] %v10794_v1  ;;  %v335_v2 = vld [vmem:[%s10572_s10 + $0x169] sm:$0xff]  ;;  %v336_v4 = vld [vmem:[%s10572_s10 + $0x171] sm:$0xff]  ;;  %v272_v6 = vld [vmem:[%s10572_s10] sm:$0xff] }
  0x28   : > { %v10798_v3 = vld [vmem:[%s10577_s13 + $0x168] sm:$0xff]  ;;  %v10808_v5 = vld [vmem:[%s10577_s13 + $0x170] sm:$0xff]  ;;  %v10820_v14 = vld [vmem:[%s10572_s10 + $0x18] sm:$0xff] }
  0x29   : > { %9062 = vmatmul.mubr.msk.f32.gmra.mrb[10].mxu1 %vm339_vm1, %v316_v28  ;;  %12674 = vst [vmem:[#allocation3_spill] sm:$0xff] %v10798_v3  ;;  %12675 = vst [vmem:[#allocation4_spill] sm:$0xff] %v10808_v5  ;;  %v4110_v7 = vld [vmem:[%s10577_s13 + $0x1] sm:$0xff]  ;;  %v4111_v12 = vld [vmem:[%s10577_s13 + $0x9] sm:$0xff] }
  0x2a   : > { %9512 = vmatmul.mubr.msk.f32.gmra.mrb[10].mxu0 %vm339_vm1, %v10668_v29  ;;  %9064 = vmatprep.mubr.msk.f32.mxu1 %vm339_vm1, %v317_v30  ;;  %v273_v8 = vld [vmem:[%s10572_s10 + $0x8] sm:$0xff]  ;;  %v10823_v16 = vld [vmem:[%s10577_s13 + $0x19] sm:$0xff]  ;;  %v10852_v26 = vld [vmem:[%s10572_s10 + $0x30] sm:$0xff] }
  0x2b   : > { %9514 = vmatprep.mubr.msk.f32.mxu0 %vm339_vm1, %v10672_v31  ;;  %12676 = vst [vmem:[#allocation5_spill] sm:$0xff] %v10823_v16  ;;  %v10830_v18 = vld [vmem:[%s12578_s2 + $0xc] sm:$0xf]  ;;  %v10842_v22 = vld [vmem:[%s10572_s10 + $0x20] sm:$0xff]  ;;  %v10855_v28 = vld [vmem:[%s10577_s13 + $0x31] sm:$0xff] }
  0x2c   : > { %v10835_v20 = vld [vmem:[%s12579_s3 + $0xc] sm:$0xf]  ;;  %v10845_v24 = vld [vmem:[%s10577_s13 + $0x21] sm:$0xff]  ;;  %12678 = vst [vmem:[#allocation7_spill] sm:$0xff] %v10855_v28 }
  0x2d   : > { %9065 = vmatmul.mubr.msk.f32.gmra.mrb[12].mxu1 %vm339_vm1, %v318_v32  ;;  %12677 = vst [vmem:[#allocation6_spill] sm:$0xff] %v10845_v24  ;;  %v10876_v30 = vld [vmem:[%s10572_s10 + $0x48] sm:$0xff] }
  0x2e   : > { %9515 = vmatmul.mubr.msk.f32.gmra.mrb[12].mxu0 %vm339_vm1, %v10682_v33  ;;  %9067 = vmatprep.mubr.msk.f32.mxu1 %vm339_vm1, %v319_v34  ;;  %v10879_v32 = vld [vmem:[%s10577_s13 + $0x49] sm:$0xff] }
  0x2f   : > { %9517 = vmatprep.mubr.msk.f32.mxu0 %vm339_vm1, %v10686_v35  ;;  %12680 = vst [vmem:[#allocation9_spill] sm:$0xff] %v10879_v32  ;;  %v10890_v34 = vld [vmem:[%s10572_s10 + $0x50] sm:$0xff] }
  0x31   : > { %9068 = vmatmul.mubr.msk.f32.gmra.mrb[14].mxu1 %vm339_vm1, %v320_v36  ;;  %v10893_v36 = vld [vmem:[%s10577_s13 + $0x51] sm:$0xff] }
  0x32   : > { %9518 = vmatmul.mubr.msk.f32.gmra.mrb[14].mxu0 %vm339_vm1, %v10696_v37  ;;  %9070 = vmatprep.mubr.msk.f32.mxu1 %vm339_vm1, %v321_v38  ;;  %12681 = vst [vmem:[#allocation10_spill] sm:$0xff] %v10893_v36  ;;  %v10896_v38 = vld [vmem:[%s10572_s10 + $0x60] sm:$0xff] }
  0x33   : > { %9520 = vmatprep.mubr.msk.f32.mxu0 %vm339_vm1, %v10700_v39 }
  0x35   : > { %9071 = vmatmul.mubr.msk.f32.gmra.mrb[16].mxu1 %vm339_vm1, %v322_v40  ;;  %v10899_v40 = vld [vmem:[%s10577_s13 + $0x61] sm:$0xff] }
  0x36   : > { %9521 = vmatmul.mubr.msk.f32.gmra.mrb[16].mxu0 %vm339_vm1, %v10710_v41  ;;  %9073 = vmatprep.mubr.msk.f32.mxu1 %vm339_vm1, %v323_v42  ;;  %12682 = vst [vmem:[#allocation11_spill] sm:$0xff] %v10899_v40  ;;  %v10910_v42 = vld [vmem:[%s10572_s10 + $0x68] sm:$0xff] }
  0x37   : > { %9523 = vmatprep.mubr.msk.f32.mxu0 %vm339_vm1, %v10714_v43 }
  0x39   : > { %9074 = vmatmul.mubr.msk.f32.gmra.mrb[18].mxu1 %vm339_vm1, %v324_v44  ;;  %v10913_v44 = vld [vmem:[%s10577_s13 + $0x69] sm:$0xff] }
  0x3a   : > { %9524 = vmatmul.mubr.msk.f32.gmra.mrb[18].mxu0 %vm339_vm1, %v10724_v45  ;;  %9076 = vmatprep.mubr.msk.f32.mxu1 %vm339_vm1, %v325_v46  ;;  %12683 = vst [vmem:[#allocation12_spill] sm:$0xff] %v10913_v44  ;;  %v10916_v46 = vld [vmem:[%s10572_s10 + $0x78] sm:$0xff] }
  0x3b   : > { %9526 = vmatprep.mubr.msk.f32.mxu0 %vm339_vm1, %v10728_v47 }
  0x3d   : > { %9077 = vmatmul.mubr.msk.f32.gmra.mrb[20].mxu1 %vm339_vm1, %v326_v48  ;;  %v10919_v48 = vld [vmem:[%s10577_s13 + $0x79] sm:$0xff] }
  0x3e   : > { %9527 = vmatmul.mubr.msk.f32.gmra.mrb[20].mxu0 %vm339_vm1, %v10738_v49  ;;  %9079 = vmatprep.mubr.msk.f32.mxu1 %vm339_vm1, %v327_v50  ;;  %12684 = vst [vmem:[#allocation13_spill] sm:$0xff] %v10919_v48  ;;  %v10930_v50 = vld [vmem:[%s10572_s10 + $0x80] sm:$0xff] }
  0x3f   : > { %9529 = vmatprep.mubr.msk.f32.mxu0 %vm339_vm1, %v10742_v51 }
  0x41   : > { %9080 = vmatmul.mubr.msk.f32.gmra.mrb[22].mxu1 %vm339_vm1, %v328_v52  ;;  %v10933_v52 = vld [vmem:[%s10577_s13 + $0x81] sm:$0xff] }
  0x42   : > { %9530 = vmatmul.mubr.msk.f32.gmra.mrb[22].mxu0 %vm339_vm1, %v10752_v53  ;;  %9082 = vmatprep.mubr.msk.f32.mxu1 %vm339_vm1, %v329_v54  ;;  %12685 = vst [vmem:[#allocation14_spill] sm:$0xff] %v10933_v52  ;;  %v10936_v54 = vld [vmem:[%s10572_s10 + $0x90] sm:$0xff] }
  0x43   : > { %9532 = vmatprep.mubr.msk.f32.mxu0 %vm339_vm1, %v10756_v55 }
  0x45   : > { %9083 = vmatmul.mubr.msk.f32.gmra.mrb[24].mxu1 %vm339_vm1, %v330_v56  ;;  %v10939_v56 = vld [vmem:[%s10577_s13 + $0x91] sm:$0xff] }
  0x46   : > { %9533 = vmatmul.mubr.msk.f32.gmra.mrb[24].mxu0 %vm339_vm1, %v10766_v57  ;;  %9085 = vmatprep.mubr.msk.f32.mxu1 %vm339_vm1, %v331_v58  ;;  %12686 = vst [vmem:[#allocation15_spill] sm:$0xff] %v10939_v56  ;;  %v10950_v58 = vld [vmem:[%s10572_s10 + $0x98] sm:$0xff] }
  0x47   : > { %9535 = vmatprep.mubr.msk.f32.mxu0 %vm339_vm1, %v10770_v59 }
  0x49   : > { %9086 = vmatmul.mubr.msk.f32.gmra.mrb[26].mxu1 %vm339_vm1, %v332_v60  ;;  %v10953_v60 = vld [vmem:[%s10577_s13 + $0x99] sm:$0xff] }
  0x4a   : > { %9536 = vmatmul.mubr.msk.f32.gmra.mrb[26].mxu0 %vm339_vm1, %v10780_v61  ;;  %9088 = vmatprep.mubr.msk.f32.mxu1 %vm339_vm1, %v333_v62  ;;  %12687 = vst [vmem:[#allocation16_spill] sm:$0xff] %v10953_v60  ;;  %v10956_v62 = vld [vmem:[%s10572_s10 + $0xa8] sm:$0xff] }
  0x4b   : > { %9538 = vmatprep.mubr.msk.f32.mxu0 %vm339_vm1, %v10784_v63 }
  0x4d   : > { %9089 = vmatmul.mubr.msk.f32.gmra.mrb[28].mxu1 %vm339_vm1, %v334_v0  ;;  %v10959_v0 = vld [vmem:[%s10577_s13 + $0xa9] sm:$0xff] }
  0x4e   : > { %9539 = vmatmul.mubr.msk.f32.gmra.mrb[28].mxu0 %vm339_vm1, %v10794_v1  ;;  %9091 = vmatprep.mubr.msk.f32.mxu1 %vm339_vm1, %v335_v2  ;;  %12688 = vst [vmem:[#allocation17_spill] sm:$0xff] %v10959_v0  ;;  %v10970_v2 = vld [vmem:[%s10572_s10 + $0xb0] sm:$0xff]  ;;  %v4500_v1 = vld [vmem:[%s10577_s13 + $0x2] sm:$0xff] }
  0x4f   : > { %9541 = vmatprep.mubr.msk.f32.mxu0 %vm339_vm1, %v10798_v3  ;;  %v989_v3 = vld [vmem:[%s10572_s10 + $0x2] sm:$0xff] }
  0x51   : > { %9092 = vmatmul.mubr.msk.f32.gmra.mrb[30].mxu1 %vm339_vm1, %v336_v4  ;;  %v10973_v4 = vld [vmem:[%s10577_s13 + $0xb1] sm:$0xff] }
  0x52   : > { %9542 = vmatmul.mubr.msk.f32.gmra.mrb[30].mxu0 %vm339_vm1, %v10808_v5  ;;  %9096 = vmatprep.mubr.msk.f32.mxu1 %vm339_vm1, %v272_v6  ;;  %12689 = vst [vmem:[#allocation18_spill] sm:$0xff] %v10973_v4  ;;  %v10976_v6 = vld [vmem:[%s10572_s10 + $0xc0] sm:$0xff]  ;;  %v11119_v5 = vld [vmem:[%s10577_s13 + $0x169] sm:$0xff] }
  0x53   : > { %9546 = vmatprep.mubr.msk.f32.mxu0 %vm339_vm1, %v4110_v7  ;;  %v10979_v7 = vld [vmem:[%s10577_s13 + $0xc1] sm:$0xff]  ;;  %12706 = vst [vmem:[#allocation35_spill] sm:$0xff] %v11119_v5 }
  0x54   : > { %12690 = vst [vmem:[#allocation19_spill] sm:$0xff] %v10979_v7 }
  0x55   : > { %9097 = vmatmul.mubr.msk.f32.vlgmr.msra.gmra.mrb[0].mxu1 %vm339_vm1, %v273_v8  ;;  %v10990_v8 = vld [vmem:[%s10572_s10 + $0xc8] sm:$0xff] }
  0x56   : > { %9547 = vmatmul.mubr.msk.f32.vlgmr.msra.gmra.mrb[0].mxu0 %vm339_vm1, %v4111_v12  ;;  %9145 = vmatpush3.msk.msra.mxu1 %vm436_vm0, %v10594_v10  ;;  %v10870_v10 = vld [vmem:[%s10572_s10 + $0x38] sm:$0xff]  ;;  %v10993_v12 = vld [vmem:[%s10577_s13 + $0xc9] sm:$0xff] }
  0x57   : > { %9595 = vmatpush3.msk.msra.mxu0 %vm436_vm0, %v10599_v11  ;;  %9099 = vmatprep.mubr.msk.f32.mxu1 %vm339_vm1, %v10820_v14  ;;  %v10873_v11 = vld [vmem:[%s10577_s13 + $0x39] sm:$0xff]  ;;  %12691 = vst [vmem:[#allocation20_spill] sm:$0xff] %v10993_v12 }
  0x58   : > { %9549 = vmatprep.mubr.msk.f32.mxu0 %vm339_vm1, %v10823_v16  ;;  %9194 = vmatprep.subr.msk.mxu1 %vm436_vm0, %v10830_v18  ;;  %12679 = vst [vmem:[#allocation8_spill] sm:$0xff] %v10873_v11  ;;  %v11116_v16 = vld [vmem:[%s10572_s10 + $0x168] sm:$0xff] }
  0x59   : > { %9644 = vmatprep.subr.msk.mxu0 %vm436_vm0, %v10835_v20  ;;  %9100 = vmatmul.mubr.msk.f32.gmra.mrb[2].mxu1 %vm339_vm1, %v10842_v22  ;;  %12705 = vst [vmem:[#allocation34_spill] sm:$0xff] %v11116_v16 }
  0x5a   : > { %9550 = vmatmul.mubr.msk.f32.gmra.mrb[2].mxu0 %vm339_vm1, %v10845_v24  ;;  %9102 = vmatprep.mubr.msk.f32.mxu1 %vm339_vm1, %v10852_v26  ;;  %v11099_v24 = vld [vmem:[%s10577_s13 + $0x151] sm:$0xff] }
  0x5b   : > { %9552 = vmatprep.mubr.msk.f32.mxu0 %vm339_vm1, %v10855_v28  ;;  %v11096_v28 = vld [vmem:[%s10572_s10 + $0x150] sm:$0xff]  ;;  %12702 = vst [vmem:[#allocation31_spill] sm:$0xff] %v11099_v24 }
  0x5d   : > { %9103 = vmatmul.mubr.msk.f32.gmra.mrb[4].mxu1 %vm339_vm1, %v10870_v10 }
  0x5e   : > { %9553 = vmatmul.mubr.msk.f32.gmra.mrb[4].mxu0 %vm339_vm1, %v10873_v11  ;;  %9105 = vmatprep.mubr.msk.f32.mxu1 %vm339_vm1, %v10876_v30  ;;  %v11079_v11 = vld [vmem:[%s10577_s13 + $0x139] sm:$0xff] }
  0x5f   : > { %9555 = vmatprep.mubr.msk.f32.mxu0 %vm339_vm1, %v10879_v32  ;;  %v11076_v32 = vld [vmem:[%s10572_s10 + $0x138] sm:$0xff]  ;;  %12700 = vst [vmem:[#allocation29_spill] sm:$0xff] %v11079_v11 }
  0x61   : > { %9106 = vmatmul.mubr.msk.f32.gmra.mrb[6].mxu1 %vm339_vm1, %v10890_v34 }
  0x62   : > { %9556 = vmatmul.mubr.msk.f32.gmra.mrb[6].mxu0 %vm339_vm1, %v10893_v36  ;;  %9108 = vmatprep.mubr.msk.f32.mxu1 %vm339_vm1, %v10896_v38  ;;  %v11059_v36 = vld [vmem:[%s10577_s13 + $0x121] sm:$0xff] }
  0x63   : > { %9558 = vmatprep.mubr.msk.f32.mxu0 %vm339_vm1, %v10899_v40  ;;  %v11056_v40 = vld [vmem:[%s10572_s10 + $0x120] sm:$0xff]  ;;  %12698 = vst [vmem:[#allocation27_spill] sm:$0xff] %v11059_v36 }
  0x65   : > { %9109 = vmatmul.mubr.msk.f32.gmra.mrb[8].mxu1 %vm339_vm1, %v10910_v42 }
  0x66   : > { %9559 = vmatmul.mubr.msk.f32.gmra.mrb[8].mxu0 %vm339_vm1, %v10913_v44  ;;  %9111 = vmatprep.mubr.msk.f32.mxu1 %vm339_vm1, %v10916_v46  ;;  %v11039_v44 = vld [vmem:[%s10577_s13 + $0x109] sm:$0xff] }
  0x67   : > { %9561 = vmatprep.mubr.msk.f32.mxu0 %vm339_vm1, %v10919_v48  ;;  %v11036_v48 = vld [vmem:[%s10572_s10 + $0x108] sm:$0xff]  ;;  %12696 = vst [vmem:[#allocation25_spill] sm:$0xff] %v11039_v44 }
  0x69   : > { %9112 = vmatmul.mubr.msk.f32.gmra.mrb[10].mxu1 %vm339_vm1, %v10930_v50 }
  0x6a   : > { %9562 = vmatmul.mubr.msk.f32.gmra.mrb[10].mxu0 %vm339_vm1, %v10933_v52  ;;  %9114 = vmatprep.mubr.msk.f32.mxu1 %vm339_vm1, %v10936_v54  ;;  %v11019_v52 = vld [vmem:[%s10577_s13 + $0xf1] sm:$0xff] }
  0x6b   : > { %9564 = vmatprep.mubr.msk.f32.mxu0 %vm339_vm1, %v10939_v56  ;;  %v11016_v56 = vld [vmem:[%s10572_s10 + $0xf0] sm:$0xff]  ;;  %12694 = vst [vmem:[#allocation23_spill] sm:$0xff] %v11019_v52 }
  0x6d   : > { %9115 = vmatmul.mubr.msk.f32.gmra.mrb[12].mxu1 %vm339_vm1, %v10950_v58 }
  0x6e   : > { %9565 = vmatmul.mubr.msk.f32.gmra.mrb[12].mxu0 %vm339_vm1, %v10953_v60  ;;  %9117 = vmatprep.mubr.msk.f32.mxu1 %vm339_vm1, %v10956_v62  ;;  %v10999_v60 = vld [vmem:[%s10577_s13 + $0xd9] sm:$0xff] }
  0x6f   : > { %9567 = vmatprep.mubr.msk.f32.mxu0 %vm339_vm1, %v10959_v0  ;;  %v10996_v0 = vld [vmem:[%s10572_s10 + $0xd8] sm:$0xff]  ;;  %12692 = vst [vmem:[#allocation21_spill] sm:$0xff] %v10999_v60 }
  0x71   : > { %9118 = vmatmul.mubr.msk.f32.gmra.mrb[14].mxu1 %vm339_vm1, %v10970_v2 }
  0x72   : > { %9568 = vmatmul.mubr.msk.f32.gmra.mrb[14].mxu0 %vm339_vm1, %v10973_v4  ;;  %9120 = vmatprep.mubr.msk.f32.mxu1 %vm339_vm1, %v10976_v6  ;;  %v11013_v4 = vld [vmem:[%s10577_s13 + $0xe1] sm:$0xff] }
  0x73   : > { %9570 = vmatprep.mubr.msk.f32.mxu0 %vm339_vm1, %v10979_v7  ;;  %v11010_v7 = vld [vmem:[%s10572_s10 + $0xe0] sm:$0xff]  ;;  %12693 = vst [vmem:[#allocation22_spill] sm:$0xff] %v11013_v4 }
  0x75   : > { %9121 = vmatmul.mubr.msk.f32.gmra.mrb[16].mxu1 %vm339_vm1, %v10990_v8 }
  0x76   : > { %9571 = vmatmul.mubr.msk.f32.gmra.mrb[16].mxu0 %vm339_vm1, %v10993_v12  ;;  %9123 = vmatprep.mubr.msk.f32.mxu1 %vm339_vm1, %v10996_v0  ;;  %v11033_v12 = vld [vmem:[%s10577_s13 + $0xf9] sm:$0xff] }
  0x77   : > { %9573 = vmatprep.mubr.msk.f32.mxu0 %vm339_vm1, %v10999_v60  ;;  %v11030_v60 = vld [vmem:[%s10572_s10 + $0xf8] sm:$0xff]  ;;  %12695 = vst [vmem:[#allocation24_spill] sm:$0xff] %v11033_v12 }
  0x79   : > { %9124 = vmatmul.mubr.msk.f32.gmra.mrb[18].mxu1 %vm339_vm1, %v11010_v7 }
  0x7a   : > { %9574 = vmatmul.mubr.msk.f32.gmra.mrb[18].mxu0 %vm339_vm1, %v11013_v4  ;;  %9126 = vmatprep.mubr.msk.f32.mxu1 %vm339_vm1, %v11016_v56  ;;  %v11053_v4 = vld [vmem:[%s10577_s13 + $0x111] sm:$0xff] }
  0x7b   : > { %9576 = vmatprep.mubr.msk.f32.mxu0 %vm339_vm1, %v11019_v52  ;;  %v11050_v52 = vld [vmem:[%s10572_s10 + $0x110] sm:$0xff]  ;;  %12697 = vst [vmem:[#allocation26_spill] sm:$0xff] %v11053_v4 }
  0x7d   : > { %9127 = vmatmul.mubr.msk.f32.gmra.mrb[20].mxu1 %vm339_vm1, %v11030_v60 }
  0x7e   : > { %9577 = vmatmul.mubr.msk.f32.gmra.mrb[20].mxu0 %vm339_vm1, %v11033_v12  ;;  %9129 = vmatprep.mubr.msk.f32.mxu1 %vm339_vm1, %v11036_v48  ;;  %v11073_v12 = vld [vmem:[%s10577_s13 + $0x129] sm:$0xff] }
  0x7f   : > { %9579 = vmatprep.mubr.msk.f32.mxu0 %vm339_vm1, %v11039_v44  ;;  %v11070_v44 = vld [vmem:[%s10572_s10 + $0x128] sm:$0xff]  ;;  %12699 = vst [vmem:[#allocation28_spill] sm:$0xff] %v11073_v12 }
  0x81   : > { %9130 = vmatmul.mubr.msk.f32.gmra.mrb[22].mxu1 %vm339_vm1, %v11050_v52 }
  0x82   : > { %9580 = vmatmul.mubr.msk.f32.gmra.mrb[22].mxu0 %vm339_vm1, %v11053_v4  ;;  %9132 = vmatprep.mubr.msk.f32.mxu1 %vm339_vm1, %v11056_v40  ;;  %v11093_v4 = vld [vmem:[%s10577_s13 + $0x141] sm:$0xff] }
  0x83   : > { %9582 = vmatprep.mubr.msk.f32.mxu0 %vm339_vm1, %v11059_v36  ;;  %v11090_v36 = vld [vmem:[%s10572_s10 + $0x140] sm:$0xff]  ;;  %12701 = vst [vmem:[#allocation30_spill] sm:$0xff] %v11093_v4 }
  0x85   : > { %9133 = vmatmul.mubr.msk.f32.gmra.mrb[24].mxu1 %vm339_vm1, %v11070_v44 }
  0x86   : > { %9583 = vmatmul.mubr.msk.f32.gmra.mrb[24].mxu0 %vm339_vm1, %v11073_v12  ;;  %9135 = vmatprep.mubr.msk.f32.mxu1 %vm339_vm1, %v11076_v32  ;;  %v11113_v12 = vld [vmem:[%s10577_s13 + $0x159] sm:$0xff] }
  0x87   : > { %9585 = vmatprep.mubr.msk.f32.mxu0 %vm339_vm1, %v11079_v11  ;;  %v11110_v11 = vld [vmem:[%s10572_s10 + $0x158] sm:$0xff]  ;;  %12704 = vst [vmem:[#allocation33_spill] sm:$0xff] %v11113_v12 }
  0x88   : > { %12703 = vst [vmem:[#allocation32_spill] sm:$0xff] %v11110_v11 }
  0x89   : > { %9136 = vmatmul.mubr.msk.f32.gmra.mrb[26].mxu1 %vm339_vm1, %v11090_v36 }
  0x8a   : > { %9586 = vmatmul.mubr.msk.f32.gmra.mrb[26].mxu0 %vm339_vm1, %v11093_v4  ;;  %9138 = vmatprep.mubr.msk.f32.mxu1 %vm339_vm1, %v11096_v28  ;;  %v11133_v4 = vld [vmem:[%s10577_s13 + $0x171] sm:$0xff] }
  0x8b   : > { %9588 = vmatprep.mubr.msk.f32.mxu0 %vm339_vm1, %v11099_v24  ;;  %v11130_v24 = vld [vmem:[%s10572_s10 + $0x170] sm:$0xff]  ;;  %12708 = vst [vmem:[#allocation37_spill] sm:$0xff] %v11133_v4 }
  0x8c   : > { %12707 = vst [vmem:[#allocation36_spill] sm:$0xff] %v11130_v24 }
  0x8d   : > { %9139 = vmatmul.mubr.msk.f32.gmra.mrb[28].mxu1 %vm339_vm1, %v11110_v11  ;;  %v11149_v11 = vld [vmem:[%s10577_s13 + $0x1a] sm:$0xff] }
  0x8e   : > { %9589 = vmatmul.mubr.msk.f32.gmra.mrb[28].mxu0 %vm339_vm1, %v11113_v12  ;;  %9141 = vmatprep.mubr.msk.f32.mxu1 %vm339_vm1, %v11116_v16  ;;  %v4501_v12 = vld [vmem:[%s10577_s13 + $0xa] sm:$0xff]  ;;  %v11146_v16 = vld [vmem:[%s10572_s10 + $0x1a] sm:$0xff]  ;;  %12710 = vst [vmem:[#allocation39_spill] sm:$0xff] %v11149_v11 }
  0x8f   : > { %9591 = vmatprep.mubr.msk.f32.mxu0 %vm339_vm1, %v11119_v5  ;;  %v990_v5 = vld [vmem:[%s10572_s10 + $0xa] sm:$0xff]  ;;  %12709 = vst [vmem:[#allocation38_spill] sm:$0xff] %v11146_v16 }
  0x91   : > { %9142 = vmatmul.mubr.msk.f32.gmra.mrb[30].mxu1 %vm339_vm1, %v11130_v24  ;;  %v11181_v24 = vld [vmem:[%s10577_s13 + $0x32] sm:$0xff] }
  0x92   : > { %9592 = vmatmul.mubr.msk.f32.gmra.mrb[30].mxu0 %vm339_vm1, %v11133_v4  ;;  %9146 = vmatprep.mubr.msk.f32.mxu1 %vm339_vm1, %v989_v3  ;;  %v11156_v4 = vld [vmem:[%s12578_s2 + $0x10] sm:$0xf]  ;;  %v11168_v3 = vld [vmem:[%s10572_s10 + $0x22] sm:$0xff]  ;;  %12714 = vst [vmem:[#allocation43_spill] sm:$0xff] %v11181_v24 }
  0x93   : > { %9596 = vmatprep.mubr.msk.f32.mxu0 %vm339_vm1, %v4500_v1  ;;  %v11161_v1 = vld [vmem:[%s12579_s3 + $0x10] sm:$0xf]  ;;  %12711 = vst [vmem:[#allocation40_spill] sm:$0xff] %v11168_v3 }
  0x95   : > { %9147 = vmatmul.mubr.msk.f32.vlgmr.msra.gmra.mrb[0].mxu1 %vm339_vm1, %v990_v5  ;;  %v11171_v5 = vld [vmem:[%s10577_s13 + $0x22] sm:$0xff] }
  0x96   : > { %9597 = vmatmul.mubr.msk.f32.vlgmr.msra.gmra.mrb[0].mxu0 %vm339_vm1, %v4501_v12  ;;  %9195 = vmatpush3.msk.msra.mxu1 %vm436_vm0, %v10830_v18  ;;  %12712 = vst [vmem:[#allocation41_spill] sm:$0xff] %v11171_v5  ;;  %v11178_v12 = vld [vmem:[%s10572_s10 + $0x32] sm:$0xff]  ;;  %v11196_v18 = vld [vmem:[%s10572_s10 + $0x3a] sm:$0xff] }
  0x97   : > { %9645 = vmatpush3.msk.msra.mxu0 %vm436_vm0, %v10835_v20  ;;  %9149 = vmatprep.mubr.msk.f32.mxu1 %vm339_vm1, %v11146_v16  ;;  %12713 = vst [vmem:[#allocation42_spill] sm:$0xff] %v11178_v12  ;;  %12715 = vst [vmem:[#allocation44_spill] sm:$0xff] %v11196_v18  ;;  %v11199_v20 = vld [vmem:[%s10577_s13 + $0x3a] sm:$0xff]  ;;  %v11205_v16 = vld [vmem:[%s10577_s13 + $0x4a] sm:$0xff] }
  0x98   : > { %9599 = vmatprep.mubr.msk.f32.mxu0 %vm339_vm1, %v11149_v11  ;;  %9244 = vmatprep.subr.msk.mxu1 %vm436_vm0, %v11156_v4  ;;  %12716 = vst [vmem:[#allocation45_spill] sm:$0xff] %v11199_v20  ;;  %v11202_v11 = vld [vmem:[%s10572_s10 + $0x4a] sm:$0xff]  ;;  %12718 = vst [vmem:[#allocation47_spill] sm:$0xff] %v11205_v16 }
  0x99   : > { %9694 = vmatprep.subr.msk.mxu0 %vm436_vm0, %v11161_v1  ;;  %9150 = vmatmul.mubr.msk.f32.gmra.mrb[2].mxu1 %vm339_vm1, %v11168_v3  ;;  %12717 = vst [vmem:[#allocation46_spill] sm:$0xff] %v11202_v11  ;;  %v11225_v3 = vld [vmem:[%s10577_s13 + $0x62] sm:$0xff] }
  0x9a   : > { %9600 = vmatmul.mubr.msk.f32.gmra.mrb[2].mxu0 %vm339_vm1, %v11171_v5  ;;  %9152 = vmatprep.mubr.msk.f32.mxu1 %vm339_vm1, %v11178_v12  ;;  %v11219_v12 = vld [vmem:[%s10577_s13 + $0x52] sm:$0xff]  ;;  %v11222_v5 = vld [vmem:[%s10572_s10 + $0x62] sm:$0xff]  ;;  %12722 = vst [vmem:[#allocation51_spill] sm:$0xff] %v11225_v3 }
  0x9b   : > { %9602 = vmatprep.mubr.msk.f32.mxu0 %vm339_vm1, %v11181_v24  ;;  %v11216_v24 = vld [vmem:[%s10572_s10 + $0x52] sm:$0xff]  ;;  %12720 = vst [vmem:[#allocation49_spill] sm:$0xff] %v11219_v12  ;;  %12721 = vst [vmem:[#allocation50_spill] sm:$0xff] %v11222_v5 }
  0x9c   : > { %12719 = vst [vmem:[#allocation48_spill] sm:$0xff] %v11216_v24 }
  0x9d   : > { %9153 = vmatmul.mubr.msk.f32.gmra.mrb[4].mxu1 %vm339_vm1, %v11196_v18  ;;  %v11245_v18 = vld [vmem:[%s10577_s13 + $0x7a] sm:$0xff] }
  0x9e   : > { %9603 = vmatmul.mubr.msk.f32.gmra.mrb[4].mxu0 %vm339_vm1, %v11199_v20  ;;  %9155 = vmatprep.mubr.msk.f32.mxu1 %vm339_vm1, %v11202_v11  ;;  %v11239_v11 = vld [vmem:[%s10577_s13 + $0x6a] sm:$0xff]  ;;  %v11242_v20 = vld [vmem:[%s10572_s10 + $0x7a] sm:$0xff]  ;;  %12726 = vst [vmem:[#allocation55_spill] sm:$0xff] %v11245_v18 }
  0x9f   : > { %9605 = vmatprep.mubr.msk.f32.mxu0 %vm339_vm1, %v11205_v16  ;;  %v11236_v16 = vld [vmem:[%s10572_s10 + $0x6a] sm:$0xff]  ;;  %12724 = vst [vmem:[#allocation53_spill] sm:$0xff] %v11239_v11  ;;  %12725 = vst [vmem:[#allocation54_spill] sm:$0xff] %v11242_v20 }
  0xa0   : > { %12723 = vst [vmem:[#allocation52_spill] sm:$0xff] %v11236_v16 }
  0xa1   : > { %9156 = vmatmul.mubr.msk.f32.gmra.mrb[6].mxu1 %vm339_vm1, %v11216_v24  ;;  %v11265_v24 = vld [vmem:[%s10577_s13 + $0x92] sm:$0xff] }
  0xa2   : > { %9606 = vmatmul.mubr.msk.f32.gmra.mrb[6].mxu0 %vm339_vm1, %v11219_v12  ;;  %9158 = vmatprep.mubr.msk.f32.mxu1 %vm339_vm1, %v11222_v5  ;;  %v11259_v5 = vld [vmem:[%s10577_s13 + $0x82] sm:$0xff]  ;;  %v11262_v12 = vld [vmem:[%s10572_s10 + $0x92] sm:$0xff]  ;;  %12730 = vst [vmem:[#allocation59_spill] sm:$0xff] %v11265_v24 }
  0xa3   : > { %9608 = vmatprep.mubr.msk.f32.mxu0 %vm339_vm1, %v11225_v3  ;;  %v11256_v3 = vld [vmem:[%s10572_s10 + $0x82] sm:$0xff]  ;;  %12728 = vst [vmem:[#allocation57_spill] sm:$0xff] %v11259_v5  ;;  %12729 = vst [vmem:[#allocation58_spill] sm:$0xff] %v11262_v12 }
  0xa4   : > { %12727 = vst [vmem:[#allocation56_spill] sm:$0xff] %v11256_v3 }
  0xa5   : > { %9159 = vmatmul.mubr.msk.f32.gmra.mrb[8].mxu1 %vm339_vm1, %v11236_v16  ;;  %v11285_v16 = vld [vmem:[%s10577_s13 + $0xaa] sm:$0xff] }
  0xa6   : > { %9609 = vmatmul.mubr.msk.f32.gmra.mrb[8].mxu0 %vm339_vm1, %v11239_v11  ;;  %9161 = vmatprep.mubr.msk.f32.mxu1 %vm339_vm1, %v11242_v20  ;;  %v11279_v20 = vld [vmem:[%s10577_s13 + $0x9a] sm:$0xff]  ;;  %v11282_v11 = vld [vmem:[%s10572_s10 + $0xaa] sm:$0xff]  ;;  %12734 = vst [vmem:[#allocation63_spill] sm:$0xff] %v11285_v16 }
  0xa7   : > { %9611 = vmatprep.mubr.msk.f32.mxu0 %vm339_vm1, %v11245_v18  ;;  %v11276_v18 = vld [vmem:[%s10572_s10 + $0x9a] sm:$0xff]  ;;  %12732 = vst [vmem:[#allocation61_spill] sm:$0xff] %v11279_v20  ;;  %12733 = vst [vmem:[#allocation62_spill] sm:$0xff] %v11282_v11 }
  0xa8   : > { %12731 = vst [vmem:[#allocation60_spill] sm:$0xff] %v11276_v18 }
  0xa9   : > { %9162 = vmatmul.mubr.msk.f32.gmra.mrb[10].mxu1 %vm339_vm1, %v11256_v3  ;;  %v11305_v3 = vld [vmem:[%s10577_s13 + $0xc2] sm:$0xff] }
  0xaa   : > { %9612 = vmatmul.mubr.msk.f32.gmra.mrb[10].mxu0 %vm339_vm1, %v11259_v5  ;;  %9164 = vmatprep.mubr.msk.f32.mxu1 %vm339_vm1, %v11262_v12  ;;  %v11299_v12 = vld [vmem:[%s10577_s13 + $0xb2] sm:$0xff]  ;;  %v11302_v5 = vld [vmem:[%s10572_s10 + $0xc2] sm:$0xff]  ;;  %12738 = vst [vmem:[#allocation67_spill] sm:$0xff] %v11305_v3 }
  0xab   : > { %9614 = vmatprep.mubr.msk.f32.mxu0 %vm339_vm1, %v11265_v24  ;;  %v11296_v24 = vld [vmem:[%s10572_s10 + $0xb2] sm:$0xff]  ;;  %12736 = vst [vmem:[#allocation65_spill] sm:$0xff] %v11299_v12  ;;  %12737 = vst [vmem:[#allocation66_spill] sm:$0xff] %v11302_v5 }
  0xac   : > { %12735 = vst [vmem:[#allocation64_spill] sm:$0xff] %v11296_v24 }
  0xad   : > { %9165 = vmatmul.mubr.msk.f32.gmra.mrb[12].mxu1 %vm339_vm1, %v11276_v18  ;;  %v11325_v18 = vld [vmem:[%s10577_s13 + $0xda] sm:$0xff] }
  0xae   : > { %9615 = vmatmul.mubr.msk.f32.gmra.mrb[12].mxu0 %vm339_vm1, %v11279_v20  ;;  %9167 = vmatprep.mubr.msk.f32.mxu1 %vm339_vm1, %v11282_v11  ;;  %v11319_v11 = vld [vmem:[%s10577_s13 + $0xca] sm:$0xff]  ;;  %v11322_v20 = vld [vmem:[%s10572_s10 + $0xda] sm:$0xff]  ;;  %12742 = vst [vmem:[#allocation71_spill] sm:$0xff] %v11325_v18 }
  0xaf   : > { %9617 = vmatprep.mubr.msk.f32.mxu0 %vm339_vm1, %v11285_v16  ;;  %v11316_v16 = vld [vmem:[%s10572_s10 + $0xca] sm:$0xff]  ;;  %12740 = vst [vmem:[#allocation69_spill] sm:$0xff] %v11319_v11  ;;  %12741 = vst [vmem:[#allocation70_spill] sm:$0xff] %v11322_v20 }
  0xb0   : > { %12739 = vst [vmem:[#allocation68_spill] sm:$0xff] %v11316_v16 }
  0xb1   : > { %9168 = vmatmul.mubr.msk.f32.gmra.mrb[14].mxu1 %vm339_vm1, %v11296_v24  ;;  %v11345_v24 = vld [vmem:[%s10577_s13 + $0xf2] sm:$0xff] }
  0xb2   : > { %9618 = vmatmul.mubr.msk.f32.gmra.mrb[14].mxu0 %vm339_vm1, %v11299_v12  ;;  %9170 = vmatprep.mubr.msk.f32.mxu1 %vm339_vm1, %v11302_v5  ;;  %v11339_v5 = vld [vmem:[%s10577_s13 + $0xe2] sm:$0xff]  ;;  %v11342_v12 = vld [vmem:[%s10572_s10 + $0xf2] sm:$0xff]  ;;  %12746 = vst [vmem:[#allocation75_spill] sm:$0xff] %v11345_v24 }
  0xb3   : > { %9620 = vmatprep.mubr.msk.f32.mxu0 %vm339_vm1, %v11305_v3  ;;  %v11336_v3 = vld [vmem:[%s10572_s10 + $0xe2] sm:$0xff]  ;;  %12744 = vst [vmem:[#allocation73_spill] sm:$0xff] %v11339_v5  ;;  %12745 = vst [vmem:[#allocation74_spill] sm:$0xff] %v11342_v12 }
  0xb4   : > { %12743 = vst [vmem:[#allocation72_spill] sm:$0xff] %v11336_v3 }
  0xb5   : > { %9171 = vmatmul.mubr.msk.f32.gmra.mrb[16].mxu1 %vm339_vm1, %v11316_v16  ;;  %v11365_v16 = vld [vmem:[%s10577_s13 + $0x10a] sm:$0xff] }
  0xb6   : > { %9621 = vmatmul.mubr.msk.f32.gmra.mrb[16].mxu0 %vm339_vm1, %v11319_v11  ;;  %9173 = vmatprep.mubr.msk.f32.mxu1 %vm339_vm1, %v11322_v20  ;;  %v11359_v20 = vld [vmem:[%s10577_s13 + $0xfa] sm:$0xff]  ;;  %v11362_v11 = vld [vmem:[%s10572_s10 + $0x10a] sm:$0xff]  ;;  %12750 = vst [vmem:[#allocation79_spill] sm:$0xff] %v11365_v16 }
  0xb7   : > { %9623 = vmatprep.mubr.msk.f32.mxu0 %vm339_vm1, %v11325_v18  ;;  %v11356_v18 = vld [vmem:[%s10572_s10 + $0xfa] sm:$0xff]  ;;  %12748 = vst [vmem:[#allocation77_spill] sm:$0xff] %v11359_v20  ;;  %12749 = vst [vmem:[#allocation78_spill] sm:$0xff] %v11362_v11 }
  0xb8   : > { %12747 = vst [vmem:[#allocation76_spill] sm:$0xff] %v11356_v18 }
  0xb9   : > { %9174 = vmatmul.mubr.msk.f32.gmra.mrb[18].mxu1 %vm339_vm1, %v11336_v3  ;;  %v11385_v3 = vld [vmem:[%s10577_s13 + $0x122] sm:$0xff] }
  0xba   : > { %9624 = vmatmul.mubr.msk.f32.gmra.mrb[18].mxu0 %vm339_vm1, %v11339_v5  ;;  %9176 = vmatprep.mubr.msk.f32.mxu1 %vm339_vm1, %v11342_v12  ;;  %v11379_v12 = vld [vmem:[%s10577_s13 + $0x112] sm:$0xff]  ;;  %v11382_v5 = vld [vmem:[%s10572_s10 + $0x122] sm:$0xff]  ;;  %12754 = vst [vmem:[#allocation83_spill] sm:$0xff] %v11385_v3 }
  0xbb   : > { %9626 = vmatprep.mubr.msk.f32.mxu0 %vm339_vm1, %v11345_v24  ;;  %v11376_v24 = vld [vmem:[%s10572_s10 + $0x112] sm:$0xff]  ;;  %12752 = vst [vmem:[#allocation81_spill] sm:$0xff] %v11379_v12  ;;  %12753 = vst [vmem:[#allocation82_spill] sm:$0xff] %v11382_v5 }
  0xbc   : > { %12751 = vst [vmem:[#allocation80_spill] sm:$0xff] %v11376_v24 }
  0xbd   : > { %9177 = vmatmul.mubr.msk.f32.gmra.mrb[20].mxu1 %vm339_vm1, %v11356_v18  ;;  %v11405_v18 = vld [vmem:[%s10577_s13 + $0x13a] sm:$0xff] }
  0xbe   : > { %9627 = vmatmul.mubr.msk.f32.gmra.mrb[20].mxu0 %vm339_vm1, %v11359_v20  ;;  %9179 = vmatprep.mubr.msk.f32.mxu1 %vm339_vm1, %v11362_v11  ;;  %v11399_v11 = vld [vmem:[%s10577_s13 + $0x12a] sm:$0xff]  ;;  %v11402_v20 = vld [vmem:[%s10572_s10 + $0x13a] sm:$0xff]  ;;  %12758 = vst [vmem:[#allocation87_spill] sm:$0xff] %v11405_v18 }
  0xbf   : > { %9629 = vmatprep.mubr.msk.f32.mxu0 %vm339_vm1, %v11365_v16  ;;  %v11396_v16 = vld [vmem:[%s10572_s10 + $0x12a] sm:$0xff]  ;;  %12756 = vst [vmem:[#allocation85_spill] sm:$0xff] %v11399_v11  ;;  %12757 = vst [vmem:[#allocation86_spill] sm:$0xff] %v11402_v20 }
  0xc0   : > { %12755 = vst [vmem:[#allocation84_spill] sm:$0xff] %v11396_v16 }
  0xc1   : > { %9180 = vmatmul.mubr.msk.f32.gmra.mrb[22].mxu1 %vm339_vm1, %v11376_v24  ;;  %v11425_v24 = vld [vmem:[%s10577_s13 + $0x152] sm:$0xff] }
  0xc2   : > { %9630 = vmatmul.mubr.msk.f32.gmra.mrb[22].mxu0 %vm339_vm1, %v11379_v12  ;;  %9182 = vmatprep.mubr.msk.f32.mxu1 %vm339_vm1, %v11382_v5  ;;  %v11419_v5 = vld [vmem:[%s10577_s13 + $0x142] sm:$0xff]  ;;  %v11422_v12 = vld [vmem:[%s10572_s10 + $0x152] sm:$0xff]  ;;  %12760 = vst [vmem:[#allocation89_spill] sm:$0xff] %v11425_v24 }
  0xc3   : > { %9632 = vmatprep.mubr.msk.f32.mxu0 %vm339_vm1, %v11385_v3  ;;  %v11416_v3 = vld [vmem:[%s10572_s10 + $0x142] sm:$0xff]  ;;  %12759 = vst [vmem:[#allocation88_spill] sm:$0xff] %v11422_v12 }
  0xc5   : > { %9183 = vmatmul.mubr.msk.f32.gmra.mrb[24].mxu1 %vm339_vm1, %v11396_v16  ;;  %v11445_v16 = vld [vmem:[%s10577_s13 + $0x16a] sm:$0xff] }
  0xc6   : > { %9633 = vmatmul.mubr.msk.f32.gmra.mrb[24].mxu0 %vm339_vm1, %v11399_v11  ;;  %9185 = vmatprep.mubr.msk.f32.mxu1 %vm339_vm1, %v11402_v20  ;;  %v11439_v20 = vld [vmem:[%s10577_s13 + $0x15a] sm:$0xff]  ;;  %v11442_v11 = vld [vmem:[%s10572_s10 + $0x16a] sm:$0xff]  ;;  %12761 = vst [vmem:[#allocation90_spill] sm:$0xff] %v11445_v16 }
  0xc7   : > { %9635 = vmatprep.mubr.msk.f32.mxu0 %vm339_vm1, %v11405_v18  ;;  %v11436_v18 = vld [vmem:[%s10572_s10 + $0x15a] sm:$0xff] }
  0xc9   : > { %9186 = vmatmul.mubr.msk.f32.gmra.mrb[26].mxu1 %vm339_vm1, %v11416_v3 }
  0xca   : > { %9636 = vmatmul.mubr.msk.f32.gmra.mrb[26].mxu0 %vm339_vm1, %v11419_v5  ;;  %9188 = vmatprep.mubr.msk.f32.mxu1 %vm339_vm1, %v11422_v12  ;;  %v11459_v12 = vld [vmem:[%s10577_s13 + $0x172] sm:$0xff] }
  0xcb   : > { %9638 = vmatprep.mubr.msk.f32.mxu0 %vm339_vm1, %v11425_v24  ;;  %v11456_v24 = vld [vmem:[%s10572_s10 + $0x172] sm:$0xff]  ;;  %12762 = vst [vmem:[#allocation91_spill] sm:$0xff] %v11459_v12 }
  0xcd   : > { %9189 = vmatmul.mubr.msk.f32.gmra.mrb[28].mxu1 %vm339_vm1, %v11436_v18 }
  0xce   : > { %9639 = vmatmul.mubr.msk.f32.gmra.mrb[28].mxu0 %vm339_vm1, %v11439_v20  ;;  %9191 = vmatprep.mubr.msk.f32.mxu1 %vm339_vm1, %v11442_v11 }
  0xcf   : > { %9641 = vmatprep.mubr.msk.f32.mxu0 %vm339_vm1, %v11445_v16  ;;  %v11476_v16 = vld [vmem:[%s12578_s2 + $0x14] sm:$0xf] }
  0xd1   : > { %9192 = vmatmul.mubr.msk.f32.gmra.mrb[30].mxu1 %vm339_vm1, %v11456_v24 }
  0xd2   : > { %9642 = vmatmul.mubr.msk.f32.gmra.mrb[30].mxu0 %vm339_vm1, %v11459_v12  ;;  %9196 = vmatprep.mubr.msk.f32.mxu1 %vm339_vm1, %v10820_v14  ;;  %v11481_v12 = vld [vmem:[%s12579_s3 + $0x14] sm:$0xf]  ;;  %v11688_v14 = vld [vmem:[%s10572_s10 + $0x79] sm:$0xff] }
  0xd3   : > { %9646 = vmatprep.mubr.msk.f32.mxu0 %vm339_vm1, %v10587_v9  ;;  %v12763_v9 = vld [vmem:[#allocation32_spill] sm:$0xff] }
  0xd5   : > { %9197 = vmatmul.mubr.msk.f32.vlgmr.msra.gmra.mrb[0].mxu1 %vm339_vm1, %v10842_v22  ;;  %v12777_v22 = vld [vmem:[#allocation13_spill] sm:$0xff] }
  0xd6   : > { %9647 = vmatmul.mubr.msk.f32.vlgmr.msra.gmra.mrb[0].mxu0 %vm339_vm1, %v10605_v13  ;;  %9245 = vmatpush3.msk.msra.mxu1 %vm436_vm0, %v11156_v4  ;;  %v12764_v13 = vld [vmem:[#allocation2_spill] sm:$0xff]  ;;  %v12788_v4 = vld [vmem:[#allocation24_spill] sm:$0xff] }
  0xd7   : > { %9695 = vmatpush3.msk.msra.mxu0 %vm436_vm0, %v11161_v1  ;;  %9199 = vmatprep.mubr.msk.f32.mxu1 %vm339_vm1, %v10852_v26  ;;  %v11699_v26 = vld [vmem:[%s10572_s10 + $0x81] sm:$0xff] }
  0xd8   : > { %9649 = vmatprep.mubr.msk.f32.mxu0 %vm339_vm1, %v10612_v15  ;;  %9294 = vmatprep.subr.msk.mxu1 %vm436_vm0, %v11476_v16  ;;  %v12765_v15 = vld [vmem:[#allocation34_spill] sm:$0xff] }
  0xd9   : > { %9744 = vmatprep.subr.msk.mxu0 %vm436_vm0, %v11481_v12  ;;  %9200 = vmatmul.mubr.msk.f32.gmra.mrb[2].mxu1 %vm339_vm1, %v10870_v10  ;;  %v12778_v10 = vld [vmem:[#allocation14_spill] sm:$0xff] }
  0xda   : > { %9650 = vmatmul.mubr.msk.f32.gmra.mrb[2].mxu0 %vm339_vm1, %v10626_v17  ;;  %9202 = vmatprep.mubr.msk.f32.mxu1 %vm339_vm1, %v10876_v30  ;;  %v12766_v17 = vld [vmem:[#allocation3_spill] sm:$0xff]  ;;  %v12790_v1 = vld [vmem:[#allocation26_spill] sm:$0xff] }
  0xdb   : > { %9652 = vmatprep.mubr.msk.f32.mxu0 %vm339_vm1, %v10630_v19  ;;  %v11600_v19 = vld [vmem:[%s10572_s10 + $0x180] sm:$0xff]  ;;  %v12779_v30 = vld [vmem:[#allocation15_spill] sm:$0xff] }
  0xdd   : > { %9203 = vmatmul.mubr.msk.f32.gmra.mrb[4].mxu1 %vm339_vm1, %v10890_v34  ;;  %v11716_v34 = vld [vmem:[%s10572_s10 + $0xa9] sm:$0xff] }
  0xde   : > { %9653 = vmatmul.mubr.msk.f32.gmra.mrb[4].mxu0 %vm339_vm1, %v10640_v21  ;;  %9205 = vmatprep.mubr.msk.f32.mxu1 %vm339_vm1, %v10896_v38  ;;  %v11603_v21 = vld [vmem:[%s10577_s13 + $0x180] sm:$0xff]  ;;  %v12781_v38 = vld [vmem:[#allocation17_spill] sm:$0xff] }
  0xdf   : > { %9655 = vmatprep.mubr.msk.f32.mxu0 %vm339_vm1, %v10644_v23  ;;  %v12767_v23 = vld [vmem:[#allocation36_spill] sm:$0xff] }
  0xe1   : > { %9206 = vmatmul.mubr.msk.f32.gmra.mrb[6].mxu1 %vm339_vm1, %v10910_v42  ;;  %v11730_v42 = vld [vmem:[%s10572_s10 + $0xc1] sm:$0xff] }
  0xe2   : > { %9656 = vmatmul.mubr.msk.f32.gmra.mrb[6].mxu0 %vm339_vm1, %v10654_v25  ;;  %9208 = vmatprep.mubr.msk.f32.mxu1 %vm339_vm1, %v10916_v46  ;;  %v12768_v25 = vld [vmem:[#allocation4_spill] sm:$0xff]  ;;  %v12783_v46 = vld [vmem:[#allocation19_spill] sm:$0xff] }
  0xe3   : > { %9658 = vmatprep.mubr.msk.f32.mxu0 %vm339_vm1, %v10658_v27  ;;  %v11614_v27 = vld [vmem:[%s10572_s10 + $0x188] sm:$0xff] }
  0xe5   : > { %9209 = vmatmul.mubr.msk.f32.gmra.mrb[8].mxu1 %vm339_vm1, %v10930_v50  ;;  %v11744_v50 = vld [vmem:[%s10572_s10 + $0xd9] sm:$0xff] }
  0xe6   : > { %9659 = vmatmul.mubr.msk.f32.gmra.mrb[8].mxu0 %vm339_vm1, %v10668_v29  ;;  %9211 = vmatprep.mubr.msk.f32.mxu1 %vm339_vm1, %v10936_v54  ;;  %v11617_v29 = vld [vmem:[%s10577_s13 + $0x188] sm:$0xff]  ;;  %v12785_v54 = vld [vmem:[#allocation21_spill] sm:$0xff] }
  0xe7   : > { %9661 = vmatprep.mubr.msk.f32.mxu0 %vm339_vm1, %v10672_v31  ;;  %v7618_v31 = vld [vmem:[%s10572_s10 + $0x19] sm:$0xff] }
  0xe9   : > { %9212 = vmatmul.mubr.msk.f32.gmra.mrb[10].mxu1 %vm339_vm1, %v10950_v58  ;;  %v11758_v58 = vld [vmem:[%s10572_s10 + $0xf1] sm:$0xff] }
  0xea   : > { %9662 = vmatmul.mubr.msk.f32.gmra.mrb[10].mxu0 %vm339_vm1, %v10682_v33  ;;  %9214 = vmatprep.mubr.msk.f32.mxu1 %vm339_vm1, %v10956_v62  ;;  %v12769_v33 = vld [vmem:[#allocation5_spill] sm:$0xff]  ;;  %v12787_v62 = vld [vmem:[#allocation23_spill] sm:$0xff] }
  0xeb   : > { %9664 = vmatprep.mubr.msk.f32.mxu0 %vm339_vm1, %v10686_v35  ;;  %v7619_v35 = vld [vmem:[%s10572_s10 + $0x21] sm:$0xff] }
  0xed   : > { %9215 = vmatmul.mubr.msk.f32.gmra.mrb[12].mxu1 %vm339_vm1, %v10970_v2  ;;  %v11772_v2 = vld [vmem:[%s10572_s10 + $0x109] sm:$0xff] }
  0xee   : > { %9665 = vmatmul.mubr.msk.f32.gmra.mrb[12].mxu0 %vm339_vm1, %v10696_v37  ;;  %9217 = vmatprep.mubr.msk.f32.mxu1 %vm339_vm1, %v10976_v6  ;;  %v11629_v37 = vld [vmem:[%s10572_s10 + $0x31] sm:$0xff] }
  0xef   : > { %9667 = vmatprep.mubr.msk.f32.mxu0 %vm339_vm1, %v10700_v39  ;;  %v12770_v39 = vld [vmem:[#allocation6_spill] sm:$0xff]  ;;  %v12789_v6 = vld [vmem:[#allocation25_spill] sm:$0xff] }
  0xf1   : > { %9218 = vmatmul.mubr.msk.f32.gmra.mrb[14].mxu1 %vm339_vm1, %v10990_v8  ;;  %v11786_v8 = vld [vmem:[%s10572_s10 + $0x121] sm:$0xff] }
  0xf2   : > { %9668 = vmatmul.mubr.msk.f32.gmra.mrb[14].mxu0 %vm339_vm1, %v10710_v41  ;;  %9220 = vmatprep.mubr.msk.f32.mxu1 %vm339_vm1, %v10996_v0  ;;  %v11637_v41 = vld [vmem:[%s12578_s2 + $0x18] sm:$0xf] }
  0xf3   : > { %9670 = vmatprep.mubr.msk.f32.mxu0 %vm339_vm1, %v10714_v43  ;;  %v11642_v43 = vld [vmem:[%s12579_s3 + $0x18] sm:$0xf] }
  0xf4   : > { %v11769_v0 = vld [vmem:[%s10572_s10 + $0xf9] sm:$0xff] }
  0xf5   : > { %9221 = vmatmul.mubr.msk.f32.gmra.mrb[16].mxu1 %vm339_vm1, %v11010_v7  ;;  %v11783_v7 = vld [vmem:[%s10572_s10 + $0x111] sm:$0xff] }
  0xf6   : > { %9671 = vmatmul.mubr.msk.f32.gmra.mrb[16].mxu0 %vm339_vm1, %v10724_v45  ;;  %9223 = vmatprep.mubr.msk.f32.mxu1 %vm339_vm1, %v11016_v56  ;;  %v11649_v45 = vld [vmem:[%s10572_s10 + $0x39] sm:$0xff]  ;;  %v11755_v56 = vld [vmem:[%s10572_s10 + $0xe1] sm:$0xff] }
  0xf7   : > { %9673 = vmatprep.mubr.msk.f32.mxu0 %vm339_vm1, %v10728_v47  ;;  %v12771_v47 = vld [vmem:[#allocation7_spill] sm:$0xff] }
  0xf9   : > { %9224 = vmatmul.mubr.msk.f32.gmra.mrb[18].mxu1 %vm339_vm1, %v11030_v60  ;;  %v12786_v60 = vld [vmem:[#allocation22_spill] sm:$0xff] }
  0xfa   : > { %9674 = vmatmul.mubr.msk.f32.gmra.mrb[18].mxu0 %vm339_vm1, %v10738_v49  ;;  %9226 = vmatprep.mubr.msk.f32.mxu1 %vm339_vm1, %v11036_v48  ;;  %v11656_v49 = vld [vmem:[%s10572_s10 + $0x49] sm:$0xff] }
  0xfb   : > { %9676 = vmatprep.mubr.msk.f32.mxu0 %vm339_vm1, %v10742_v51  ;;  %v12772_v51 = vld [vmem:[#allocation8_spill] sm:$0xff] }
  0xfc   : > { %v11741_v48 = vld [vmem:[%s10572_s10 + $0xc9] sm:$0xff] }
  0xfd   : > { %9227 = vmatmul.mubr.msk.f32.gmra.mrb[20].mxu1 %vm339_vm1, %v11050_v52  ;;  %v12784_v52 = vld [vmem:[#allocation20_spill] sm:$0xff] }
  0xfe   : > { %9677 = vmatmul.mubr.msk.f32.gmra.mrb[20].mxu0 %vm339_vm1, %v10752_v53  ;;  %9229 = vmatprep.mubr.msk.f32.mxu1 %vm339_vm1, %v11056_v40  ;;  %v12773_v53 = vld [vmem:[#allocation9_spill] sm:$0xff] }
  0xff   : > { %9679 = vmatprep.mubr.msk.f32.mxu0 %vm339_vm1, %v10756_v55  ;;  %v11671_v55 = vld [vmem:[%s10572_s10 + $0x51] sm:$0xff] }
 0x100   : > { %v11727_v40 = vld [vmem:[%s10572_s10 + $0xb1] sm:$0xff] }
 0x101   : > { %9230 = vmatmul.mubr.msk.f32.gmra.mrb[22].mxu1 %vm339_vm1, %v11070_v44  ;;  %v12782_v44 = vld [vmem:[#allocation18_spill] sm:$0xff] }
 0x102   : > { %9680 = vmatmul.mubr.msk.f32.gmra.mrb[22].mxu0 %vm339_vm1, %v10766_v57  ;;  %9232 = vmatprep.mubr.msk.f32.mxu1 %vm339_vm1, %v11076_v32  ;;  %v11674_v57 = vld [vmem:[%s10572_s10 + $0x61] sm:$0xff]  ;;  %v11713_v32 = vld [vmem:[%s10572_s10 + $0x99] sm:$0xff] }
 0x103   : > { %9682 = vmatprep.mubr.msk.f32.mxu0 %vm339_vm1, %v10770_v59  ;;  %v12774_v59 = vld [vmem:[#allocation10_spill] sm:$0xff] }
 0x105   : > { %9233 = vmatmul.mubr.msk.f32.gmra.mrb[24].mxu1 %vm339_vm1, %v11090_v36  ;;  %v12780_v36 = vld [vmem:[#allocation16_spill] sm:$0xff] }
 0x106   : > { %9683 = vmatmul.mubr.msk.f32.gmra.mrb[24].mxu0 %vm339_vm1, %v10780_v61  ;;  %9235 = vmatprep.mubr.msk.f32.mxu1 %vm339_vm1, %v11096_v28  ;;  %v12775_v61 = vld [vmem:[#allocation11_spill] sm:$0xff]  ;;  %v11702_v28 = vld [vmem:[%s10572_s10 + $0x91] sm:$0xff] }
 0x107   : > { %9685 = vmatprep.mubr.msk.f32.mxu0 %vm339_vm1, %v10784_v63  ;;  %v11685_v63 = vld [vmem:[%s10572_s10 + $0x69] sm:$0xff] }
 0x109   : > { %9236 = vmatmul.mubr.msk.f32.gmra.mrb[26].mxu1 %vm339_vm1, %v12763_v9  ;;  %v11797_v9 = vld [vmem:[%s10572_s10 + $0x129] sm:$0xff] }
 0x10a   : > { %9686 = vmatmul.mubr.msk.f32.gmra.mrb[26].mxu0 %vm339_vm1, %v12764_v13  ;;  %9238 = vmatprep.mubr.msk.f32.mxu1 %vm339_vm1, %v12765_v15  ;;  %v11800_v13 = vld [vmem:[%s10572_s10 + $0x139] sm:$0xff]  ;;  %v12792_v15 = vld [vmem:[#allocation28_spill] sm:$0xff] }
 0x10b   : > { %9688 = vmatprep.mubr.msk.f32.mxu0 %vm339_vm1, %v12766_v17  ;;  %v12793_v17 = vld [vmem:[#allocation29_spill] sm:$0xff] }
 0x10d   : > { %9239 = vmatmul.mubr.msk.f32.gmra.mrb[28].mxu1 %vm339_vm1, %v12767_v23  ;;  %v11811_v23 = vld [vmem:[%s10572_s10 + $0x141] sm:$0xff] }
 0x10e   : > { %9689 = vmatmul.mubr.msk.f32.gmra.mrb[28].mxu0 %vm339_vm1, %v12768_v25  ;;  %9241 = vmatprep.mubr.msk.f32.mxu1 %vm339_vm1, %v11600_v19  ;;  %v11814_v25 = vld [vmem:[%s10572_s10 + $0x151] sm:$0xff] }
 0x10f   : > { %9691 = vmatprep.mubr.msk.f32.mxu0 %vm339_vm1, %v11603_v21 }
 0x111   : > { %9242 = vmatmul.mubr.msk.f32.gmra.mrb[30].mxu1 %vm339_vm1, %v11614_v27 }
 0x112   : > { %9692 = vmatmul.mubr.msk.f32.gmra.mrb[30].mxu0 %vm339_vm1, %v11617_v29  ;;  %9246 = vmatprep.mubr.msk.f32.mxu1 %vm339_vm1, %v7618_v31  ;;  %v12794_v31 = vld [vmem:[#allocation30_spill] sm:$0xff] }
 0x113   : > { %9696 = vmatprep.mubr.msk.f32.mxu0 %vm339_vm1, %v12769_v33  ;;  %v12795_v33 = vld [vmem:[#allocation31_spill] sm:$0xff] }
 0x115   : > { %9247 = vmatmul.mubr.msk.f32.vlgmr.msra.gmra.mrb[0].mxu1 %vm339_vm1, %v7619_v35  ;;  %v11825_v35 = vld [vmem:[%s10572_s10 + $0x159] sm:$0xff] }
 0x116   : > { %9697 = vmatmul.mubr.msk.f32.vlgmr.msra.gmra.mrb[0].mxu0 %vm339_vm1, %v12770_v39  ;;  %9295 = vmatpush3.msk.msra.mxu1 %vm436_vm0, %v11476_v16  ;;  %v12776_v16 = vld [vmem:[#allocation12_spill] sm:$0xff] }
 0x117   : > { %9745 = vmatpush3.msk.msra.mxu0 %vm436_vm0, %v11481_v12  ;;  %9249 = vmatprep.mubr.msk.f32.mxu1 %vm339_vm1, %v11629_v37  ;;  %v12791_v12 = vld [vmem:[#allocation27_spill] sm:$0xff] }
 0x118   : > { %9699 = vmatprep.mubr.msk.f32.mxu0 %vm339_vm1, %v12771_v47  ;;  %9344 = vmatprep.subr.msk.mxu1 %vm436_vm0, %v11637_v41  ;;  %v11828_v39 = vld [vmem:[%s10572_s10 + $0x169] sm:$0xff]  ;;  %v12796_v47 = vld [vmem:[#allocation33_spill] sm:$0xff] }
 0x119   : > { %9794 = vmatprep.subr.msk.mxu0 %vm436_vm0, %v11642_v43  ;;  %9250 = vmatmul.mubr.msk.f32.gmra.mrb[2].mxu1 %vm339_vm1, %v11649_v45 }
 0x11a   : > { %9700 = vmatmul.mubr.msk.f32.gmra.mrb[2].mxu0 %vm339_vm1, %v12772_v51  ;;  %9252 = vmatprep.mubr.msk.f32.mxu1 %vm339_vm1, %v11656_v49  ;;  %v12797_v51 = vld [vmem:[#allocation35_spill] sm:$0xff] }
 0x11b   : > { %9702 = vmatprep.mubr.msk.f32.mxu0 %vm339_vm1, %v12773_v53  ;;  %v11839_v53 = vld [vmem:[%s10572_s10 + $0x171] sm:$0xff] }
 0x11d   : > { %9253 = vmatmul.mubr.msk.f32.gmra.mrb[4].mxu1 %vm339_vm1, %v11671_v55 }
 0x11e   : > { %9703 = vmatmul.mubr.msk.f32.gmra.mrb[4].mxu0 %vm339_vm1, %v12774_v59  ;;  %9255 = vmatprep.mubr.msk.f32.mxu1 %vm339_vm1, %v11674_v57  ;;  %v11842_v59 = vld [vmem:[%s10572_s10 + $0x181] sm:$0xff] }
 0x11f   : > { %9705 = vmatprep.mubr.msk.f32.mxu0 %vm339_vm1, %v12775_v61  ;;  %v11845_v61 = vld [vmem:[%s10577_s13 + $0x181] sm:$0xff] }
 0x121   : > { %9256 = vmatmul.mubr.msk.f32.gmra.mrb[6].mxu1 %vm339_vm1, %v11685_v63 }
 0x122   : > { %9706 = vmatmul.mubr.msk.f32.gmra.mrb[6].mxu0 %vm339_vm1, %v12776_v16  ;;  %9258 = vmatprep.mubr.msk.f32.mxu1 %vm339_vm1, %v11688_v14  ;;  %v12798_v16 = vld [vmem:[#allocation37_spill] sm:$0xff] }
 0x123   : > { %9708 = vmatprep.mubr.msk.f32.mxu0 %vm339_vm1, %v12777_v22  ;;  %v11856_v22 = vld [vmem:[%s10572_s10 + $0x189] sm:$0xff] }
 0x125   : > { %9259 = vmatmul.mubr.msk.f32.gmra.mrb[8].mxu1 %vm339_vm1, %v11699_v26 }
 0x126   : > { %9709 = vmatmul.mubr.msk.f32.gmra.mrb[8].mxu0 %vm339_vm1, %v12778_v10  ;;  %9261 = vmatprep.mubr.msk.f32.mxu1 %vm339_vm1, %v11702_v28  ;;  %v11859_v10 = vld [vmem:[%s10577_s13 + $0x189] sm:$0xff] }
 0x127   : > { %9711 = vmatprep.mubr.msk.f32.mxu0 %vm339_vm1, %v12779_v30  ;;  %v12799_v30 = vld [vmem:[#allocation38_spill] sm:$0xff] }
 0x129   : > { %9262 = vmatmul.mubr.msk.f32.gmra.mrb[10].mxu1 %vm339_vm1, %v11713_v32 }
 0x12a   : > { %9712 = vmatmul.mubr.msk.f32.gmra.mrb[10].mxu0 %vm339_vm1, %v12780_v36  ;;  %9264 = vmatprep.mubr.msk.f32.mxu1 %vm339_vm1, %v11716_v34  ;;  %v12800_v36 = vld [vmem:[#allocation39_spill] sm:$0xff] }
 0x12b   : > { %9714 = vmatprep.mubr.msk.f32.mxu0 %vm339_vm1, %v12781_v38  ;;  %v12801_v38 = vld [vmem:[#allocation40_spill] sm:$0xff] }
 0x12d   : > { %9265 = vmatmul.mubr.msk.f32.gmra.mrb[12].mxu1 %vm339_vm1, %v11727_v40 }
 0x12e   : > { %9715 = vmatmul.mubr.msk.f32.gmra.mrb[12].mxu0 %vm339_vm1, %v12782_v44  ;;  %9267 = vmatprep.mubr.msk.f32.mxu1 %vm339_vm1, %v11730_v42  ;;  %v12802_v44 = vld [vmem:[#allocation41_spill] sm:$0xff] }
 0x12f   : > { %9717 = vmatprep.mubr.msk.f32.mxu0 %vm339_vm1, %v12783_v46  ;;  %v11876_v46 = vld [vmem:[%s12578_s2 + $0x1c] sm:$0xf] }
 0x131   : > { %9268 = vmatmul.mubr.msk.f32.gmra.mrb[14].mxu1 %vm339_vm1, %v11741_v48 }
 0x132   : > { %9718 = vmatmul.mubr.msk.f32.gmra.mrb[14].mxu0 %vm339_vm1, %v12784_v52  ;;  %9270 = vmatprep.mubr.msk.f32.mxu1 %vm339_vm1, %v11744_v50  ;;  %v11881_v52 = vld [vmem:[%s12579_s3 + $0x1c] sm:$0xf] }
 0x133   : > { %9720 = vmatprep.mubr.msk.f32.mxu0 %vm339_vm1, %v12785_v54  ;;  %v12803_v54 = vld [vmem:[#allocation42_spill] sm:$0xff] }
 0x135   : > { %9271 = vmatmul.mubr.msk.f32.gmra.mrb[16].mxu1 %vm339_vm1, %v11755_v56 }
 0x136   : > { %9721 = vmatmul.mubr.msk.f32.gmra.mrb[16].mxu0 %vm339_vm1, %v12786_v60  ;;  %9273 = vmatprep.mubr.msk.f32.mxu1 %vm339_vm1, %v11758_v58  ;;  %v12804_v60 = vld [vmem:[#allocation43_spill] sm:$0xff] }
 0x137   : > { %9723 = vmatprep.mubr.msk.f32.mxu0 %vm339_vm1, %v12787_v62  ;;  %v12805_v62 = vld [vmem:[#allocation44_spill] sm:$0xff] }
 0x139   : > { %9274 = vmatmul.mubr.msk.f32.gmra.mrb[18].mxu1 %vm339_vm1, %v11769_v0 }
 0x13a   : > { %9724 = vmatmul.mubr.msk.f32.gmra.mrb[18].mxu0 %vm339_vm1, %v12788_v4  ;;  %9276 = vmatprep.mubr.msk.f32.mxu1 %vm339_vm1, %v11772_v2  ;;  %v12806_v4 = vld [vmem:[#allocation45_spill] sm:$0xff] }
 0x13b   : > { %9726 = vmatprep.mubr.msk.f32.mxu0 %vm339_vm1, %v12789_v6  ;;  %v12809_v6 = vld [vmem:[#allocation48_spill] sm:$0xff] }
 0x13d   : > { %9277 = vmatmul.mubr.msk.f32.gmra.mrb[20].mxu1 %vm339_vm1, %v11783_v7 }
 0x13e   : > { %9727 = vmatmul.mubr.msk.f32.gmra.mrb[20].mxu0 %vm339_vm1, %v12790_v1  ;;  %9279 = vmatprep.mubr.msk.f32.mxu1 %vm339_vm1, %v11786_v8  ;;  %v12810_v1 = vld [vmem:[#allocation49_spill] sm:$0xff] }
 0x13f   : > { %9729 = vmatprep.mubr.msk.f32.mxu0 %vm339_vm1, %v12791_v12  ;;  %v12811_v12 = vld [vmem:[#allocation50_spill] sm:$0xff] }
 0x141   : > { %9280 = vmatmul.mubr.msk.f32.gmra.mrb[22].mxu1 %vm339_vm1, %v11797_v9 }
 0x142   : > { %9730 = vmatmul.mubr.msk.f32.gmra.mrb[22].mxu0 %vm339_vm1, %v12792_v15  ;;  %9282 = vmatprep.mubr.msk.f32.mxu1 %vm339_vm1, %v11800_v13  ;;  %v12812_v15 = vld [vmem:[#allocation51_spill] sm:$0xff] }
 0x143   : > { %9732 = vmatprep.mubr.msk.f32.mxu0 %vm339_vm1, %v12793_v17  ;;  %v12813_v17 = vld [vmem:[#allocation52_spill] sm:$0xff] }
 0x145   : > { %9283 = vmatmul.mubr.msk.f32.gmra.mrb[24].mxu1 %vm339_vm1, %v11811_v23 }
 0x146   : > { %9733 = vmatmul.mubr.msk.f32.gmra.mrb[24].mxu0 %vm339_vm1, %v12794_v31  ;;  %9285 = vmatprep.mubr.msk.f32.mxu1 %vm339_vm1, %v11814_v25  ;;  %v12814_v31 = vld [vmem:[#allocation53_spill] sm:$0xff] }
 0x147   : > { %9735 = vmatprep.mubr.msk.f32.mxu0 %vm339_vm1, %v12795_v33  ;;  %v12815_v33 = vld [vmem:[#allocation54_spill] sm:$0xff] }
 0x149   : > { %9286 = vmatmul.mubr.msk.f32.gmra.mrb[26].mxu1 %vm339_vm1, %v11825_v35 }
 0x14a   : > { %9736 = vmatmul.mubr.msk.f32.gmra.mrb[26].mxu0 %vm339_vm1, %v12796_v47  ;;  %9288 = vmatprep.mubr.msk.f32.mxu1 %vm339_vm1, %v11828_v39  ;;  %v12816_v47 = vld [vmem:[#allocation55_spill] sm:$0xff] }
 0x14b   : > { %9738 = vmatprep.mubr.msk.f32.mxu0 %vm339_vm1, %v12797_v51  ;;  %v12817_v51 = vld [vmem:[#allocation56_spill] sm:$0xff] }
 0x14d   : > { %9289 = vmatmul.mubr.msk.f32.gmra.mrb[28].mxu1 %vm339_vm1, %v11839_v53 }
 0x14e   : > { %9739 = vmatmul.mubr.msk.f32.gmra.mrb[28].mxu0 %vm339_vm1, %v12798_v16  ;;  %9291 = vmatprep.mubr.msk.f32.mxu1 %vm339_vm1, %v11842_v59  ;;  %v12818_v16 = vld [vmem:[#allocation57_spill] sm:$0xff] }
 0x14f   : > { %9741 = vmatprep.mubr.msk.f32.mxu0 %vm339_vm1, %v11845_v61 }
 0x151   : > { %9292 = vmatmul.mubr.msk.f32.gmra.mrb[30].mxu1 %vm339_vm1, %v11856_v22 }
 0x152   : > { %9742 = vmatmul.mubr.msk.f32.gmra.mrb[30].mxu0 %vm339_vm1, %v11859_v10  ;;  %9296 = vmatprep.mubr.msk.f32.mxu1 %vm339_vm1, %v12799_v30  ;;  %v12819_v30 = vld [vmem:[#allocation58_spill] sm:$0xff] }
 0x153   : > { %9746 = vmatprep.mubr.msk.f32.mxu0 %vm339_vm1, %v12800_v36  ;;  %v12820_v36 = vld [vmem:[#allocation59_spill] sm:$0xff] }
 0x155   : > { %9297 = vmatmul.mubr.msk.f32.vlgmr.msra.gmra.mrb[0].mxu1 %vm339_vm1, %v12801_v38  ;;  %v12821_v38 = vld [vmem:[#allocation60_spill] sm:$0xff] }
 0x156   : > { %9747 = vmatmul.mubr.msk.f32.vlgmr.msra.gmra.mrb[0].mxu0 %vm339_vm1, %v12802_v44  ;;  %9345 = vmatpush3.msk.msra.mxu1 %vm436_vm0, %v11637_v41  ;;  %v12807_v41 = vld [vmem:[#allocation46_spill] sm:$0xff]  ;;  %v12822_v44 = vld [vmem:[#allocation61_spill] sm:$0xff] }
 0x157   : > { %9795 = vmatpush3.msk.msra.mxu0 %vm436_vm0, %v11642_v43  ;;  %9299 = vmatprep.mubr.msk.f32.mxu1 %vm339_vm1, %v12803_v54  ;;  %v12808_v43 = vld [vmem:[#allocation47_spill] sm:$0xff]  ;;  %v12823_v54 = vld [vmem:[#allocation62_spill] sm:$0xff] }
 0x158   : > { %9749 = vmatprep.mubr.msk.f32.mxu0 %vm339_vm1, %v12804_v60  ;;  %9394 = vmatprep.subr.msk.mxu1 %vm436_vm0, %v11876_v46  ;;  %v12824_v60 = vld [vmem:[#allocation63_spill] sm:$0xff] }
 0x159   : > { %9844 = vmatprep.subr.msk.mxu0 %vm436_vm0, %v11881_v52  ;;  %9300 = vmatmul.mubr.msk.f32.gmra.mrb[2].mxu1 %vm339_vm1, %v12805_v62  ;;  %v12825_v62 = vld [vmem:[#allocation64_spill] sm:$0xff] }
 0x15a   : > { %9750 = vmatmul.mubr.msk.f32.gmra.mrb[2].mxu0 %vm339_vm1, %v12806_v4  ;;  %9302 = vmatprep.mubr.msk.f32.mxu1 %vm339_vm1, %v12807_v41  ;;  %v12826_v4 = vld [vmem:[#allocation65_spill] sm:$0xff]  ;;  %v12827_v41 = vld [vmem:[#allocation66_spill] sm:$0xff] }
 0x15b   : > { %9752 = vmatprep.mubr.msk.f32.mxu0 %vm339_vm1, %v12808_v43  ;;  %v12828_v43 = vld [vmem:[#allocation67_spill] sm:$0xff] }
 0x15d   : > { %9303 = vmatmul.mubr.msk.f32.gmra.mrb[4].mxu1 %vm339_vm1, %v12809_v6  ;;  %v12829_v6 = vld [vmem:[#allocation68_spill] sm:$0xff] }
 0x15e   : > { %9753 = vmatmul.mubr.msk.f32.gmra.mrb[4].mxu0 %vm339_vm1, %v12810_v1  ;;  %9305 = vmatprep.mubr.msk.f32.mxu1 %vm339_vm1, %v12811_v12  ;;  %v12830_v1 = vld [vmem:[#allocation69_spill] sm:$0xff]  ;;  %v12831_v12 = vld [vmem:[#allocation70_spill] sm:$0xff] }
 0x15f   : > { %9755 = vmatprep.mubr.msk.f32.mxu0 %vm339_vm1, %v12812_v15  ;;  %v12832_v15 = vld [vmem:[#allocation71_spill] sm:$0xff] }
 0x161   : > { %9306 = vmatmul.mubr.msk.f32.gmra.mrb[6].mxu1 %vm339_vm1, %v12813_v17  ;;  %v12833_v17 = vld [vmem:[#allocation72_spill] sm:$0xff] }
 0x162   : > { %9756 = vmatmul.mubr.msk.f32.gmra.mrb[6].mxu0 %vm339_vm1, %v12814_v31  ;;  %9308 = vmatprep.mubr.msk.f32.mxu1 %vm339_vm1, %v12815_v33  ;;  %v12834_v31 = vld [vmem:[#allocation73_spill] sm:$0xff]  ;;  %v12835_v33 = vld [vmem:[#allocation74_spill] sm:$0xff] }
 0x163   : > { %9758 = vmatprep.mubr.msk.f32.mxu0 %vm339_vm1, %v12816_v47  ;;  %v12836_v47 = vld [vmem:[#allocation75_spill] sm:$0xff] }
 0x165   : > { %9309 = vmatmul.mubr.msk.f32.gmra.mrb[8].mxu1 %vm339_vm1, %v12817_v51  ;;  %v12837_v51 = vld [vmem:[#allocation76_spill] sm:$0xff] }
 0x166   : > { %9759 = vmatmul.mubr.msk.f32.gmra.mrb[8].mxu0 %vm339_vm1, %v12818_v16  ;;  %9311 = vmatprep.mubr.msk.f32.mxu1 %vm339_vm1, %v12819_v30  ;;  %v12838_v16 = vld [vmem:[#allocation77_spill] sm:$0xff]  ;;  %v12839_v30 = vld [vmem:[#allocation78_spill] sm:$0xff] }
 0x167   : > { %9761 = vmatprep.mubr.msk.f32.mxu0 %vm339_vm1, %v12820_v36  ;;  %v12840_v36 = vld [vmem:[#allocation79_spill] sm:$0xff] }
 0x169   : > { %9312 = vmatmul.mubr.msk.f32.gmra.mrb[10].mxu1 %vm339_vm1, %v12821_v38  ;;  %v12841_v38 = vld [vmem:[#allocation80_spill] sm:$0xff] }
 0x16a   : > { %9762 = vmatmul.mubr.msk.f32.gmra.mrb[10].mxu0 %vm339_vm1, %v12822_v44  ;;  %9314 = vmatprep.mubr.msk.f32.mxu1 %vm339_vm1, %v12823_v54  ;;  %v12842_v44 = vld [vmem:[#allocation81_spill] sm:$0xff]  ;;  %v12843_v54 = vld [vmem:[#allocation82_spill] sm:$0xff] }
 0x16b   : > { %9764 = vmatprep.mubr.msk.f32.mxu0 %vm339_vm1, %v12824_v60  ;;  %v12844_v60 = vld [vmem:[#allocation83_spill] sm:$0xff] }
 0x16d   : > { %9315 = vmatmul.mubr.msk.f32.gmra.mrb[12].mxu1 %vm339_vm1, %v12825_v62  ;;  %v12845_v62 = vld [vmem:[#allocation84_spill] sm:$0xff] }
 0x16e   : > { %9765 = vmatmul.mubr.msk.f32.gmra.mrb[12].mxu0 %vm339_vm1, %v12826_v4  ;;  %9317 = vmatprep.mubr.msk.f32.mxu1 %vm339_vm1, %v12827_v41  ;;  %v12846_v4 = vld [vmem:[#allocation85_spill] sm:$0xff]  ;;  %v12847_v41 = vld [vmem:[#allocation86_spill] sm:$0xff] }
 0x16f   : > { %9767 = vmatprep.mubr.msk.f32.mxu0 %vm339_vm1, %v12828_v43  ;;  %v12848_v43 = vld [vmem:[#allocation87_spill] sm:$0xff] }
 0x171   : > { %9318 = vmatmul.mubr.msk.f32.gmra.mrb[14].mxu1 %vm339_vm1, %v12829_v6  ;;  %v12849_v6 = vld [vmem:[#allocation88_spill] sm:$0xff] }
 0x172   : > { %9768 = vmatmul.mubr.msk.f32.gmra.mrb[14].mxu0 %vm339_vm1, %v12830_v1  ;;  %9320 = vmatprep.mubr.msk.f32.mxu1 %vm339_vm1, %v12831_v12  ;;  %v12850_v1 = vld [vmem:[#allocation89_spill] sm:$0xff]  ;;  %v12003_v12 = vld [vmem:[%s10577_s13 + $0x182] sm:$0xff] }
 0x173   : > { %9770 = vmatprep.mubr.msk.f32.mxu0 %vm339_vm1, %v12832_v15  ;;  %v7750_v15 = vld [vmem:[%s10572_s10 + $0x30] sm:$0xff] }
 0x175   : > { %9321 = vmatmul.mubr.msk.f32.gmra.mrb[16].mxu1 %vm339_vm1, %v12833_v17  ;;  %v8247_v17 = vld [vmem:[%s10577_s13 + $0x30] sm:$0xff] }
 0x176   : > { %9771 = vmatmul.mubr.msk.f32.gmra.mrb[16].mxu0 %vm339_vm1, %v12834_v31  ;;  %9323 = vmatprep.mubr.msk.f32.mxu1 %vm339_vm1, %v12835_v33  ;;  %v8248_v31 = vld [vmem:[%s10577_s13 + $0x38] sm:$0xff]  ;;  %v7752_v33 = vld [vmem:[%s10572_s10 + $0x48] sm:$0xff] }
 0x177   : > { %9773 = vmatprep.mubr.msk.f32.mxu0 %vm339_vm1, %v12836_v47  ;;  %v8249_v47 = vld [vmem:[%s10577_s13 + $0x48] sm:$0xff] }
 0x179   : > { %9324 = vmatmul.mubr.msk.f32.gmra.mrb[18].mxu1 %vm339_vm1, %v12837_v51  ;;  %v12036_v51 = vld [vmem:[%s12578_s2 + $0x20] sm:$0xf] }
 0x17a   : > { %9774 = vmatmul.mubr.msk.f32.gmra.mrb[18].mxu0 %vm339_vm1, %v12838_v16  ;;  %9326 = vmatprep.mubr.msk.f32.mxu1 %vm339_vm1, %v12839_v30  ;;  %v12041_v16 = vld [vmem:[%s12579_s3 + $0x20] sm:$0xf]  ;;  %v7753_v30 = vld [vmem:[%s10572_s10 + $0x50] sm:$0xff] }
 0x17b   : > { %9776 = vmatprep.mubr.msk.f32.mxu0 %vm339_vm1, %v12840_v36  ;;  %v8250_v36 = vld [vmem:[%s10577_s13 + $0x50] sm:$0xff] }
 0x17d   : > { %9327 = vmatmul.mubr.msk.f32.gmra.mrb[20].mxu1 %vm339_vm1, %v12841_v38  ;;  %v7754_v38 = vld [vmem:[%s10572_s10 + $0x60] sm:$0xff] }
 0x17e   : > { %9777 = vmatmul.mubr.msk.f32.gmra.mrb[20].mxu0 %vm339_vm1, %v12842_v44  ;;  %9329 = vmatprep.mubr.msk.f32.mxu1 %vm339_vm1, %v12843_v54  ;;  %v8251_v44 = vld [vmem:[%s10577_s13 + $0x60] sm:$0xff]  ;;  %v7756_v54 = vld [vmem:[%s10572_s10 + $0x78] sm:$0xff] }
 0x17f   : > { %9779 = vmatprep.mubr.msk.f32.mxu0 %vm339_vm1, %v12844_v60  ;;  %v8253_v60 = vld [vmem:[%s10577_s13 + $0x78] sm:$0xff] }
 0x181   : > { %9330 = vmatmul.mubr.msk.f32.gmra.mrb[22].mxu1 %vm339_vm1, %v12845_v62  ;;  %v7757_v62 = vld [vmem:[%s10572_s10 + $0x80] sm:$0xff] }
 0x182   : > { %9780 = vmatmul.mubr.msk.f32.gmra.mrb[22].mxu0 %vm339_vm1, %v12846_v4  ;;  %9332 = vmatprep.mubr.msk.f32.mxu1 %vm339_vm1, %v12847_v41  ;;  %v8254_v4 = vld [vmem:[%s10577_s13 + $0x80] sm:$0xff]  ;;  %v7758_v41 = vld [vmem:[%s10572_s10 + $0x90] sm:$0xff] }
 0x183   : > { %9782 = vmatprep.mubr.msk.f32.mxu0 %vm339_vm1, %v12848_v43  ;;  %v8255_v43 = vld [vmem:[%s10577_s13 + $0x90] sm:$0xff] }
 0x185   : > { %9333 = vmatmul.mubr.msk.f32.gmra.mrb[24].mxu1 %vm339_vm1, %v11416_v3  ;;  %v12851_v3 = vld [vmem:[#allocation90_spill] sm:$0xff] }
 0x186   : > { %9783 = vmatmul.mubr.msk.f32.gmra.mrb[24].mxu0 %vm339_vm1, %v11419_v5  ;;  %9335 = vmatprep.mubr.msk.f32.mxu1 %vm339_vm1, %v12849_v6  ;;  %v12000_v5 = vld [vmem:[%s10572_s10 + $0x182] sm:$0xff]  ;;  %v7759_v6 = vld [vmem:[%s10572_s10 + $0x98] sm:$0xff] }
 0x187   : > { %9785 = vmatprep.mubr.msk.f32.mxu0 %vm339_vm1, %v12850_v1  ;;  %v8256_v1 = vld [vmem:[%s10577_s13 + $0x98] sm:$0xff] }
 0x189   : > { %9336 = vmatmul.mubr.msk.f32.gmra.mrb[26].mxu1 %vm339_vm1, %v11436_v18  ;;  %v12852_v18 = vld [vmem:[#allocation91_spill] sm:$0xff] }
 0x18a   : > { %9786 = vmatmul.mubr.msk.f32.gmra.mrb[26].mxu0 %vm339_vm1, %v11439_v20  ;;  %9338 = vmatprep.mubr.msk.f32.mxu1 %vm339_vm1, %v11442_v11  ;;  %v12014_v11 = vld [vmem:[%s10572_s10 + $0x18a] sm:$0xff] }
 0x18b   : > { %9788 = vmatprep.mubr.msk.f32.mxu0 %vm339_vm1, %v12851_v3  ;;  %v12017_v20 = vld [vmem:[%s10577_s13 + $0x18a] sm:$0xff] }
 0x18c   : > { %v7760_v3 = vld [vmem:[%s10572_s10 + $0xa8] sm:$0xff] }
 0x18d   : > { %9339 = vmatmul.mubr.msk.f32.gmra.mrb[28].mxu1 %vm339_vm1, %v11456_v24  ;;  %v7751_v24 = vld [vmem:[%s10572_s10 + $0x38] sm:$0xff] }
 0x18e   : > { %9789 = vmatmul.mubr.msk.f32.gmra.mrb[28].mxu0 %vm339_vm1, %v12852_v18  ;;  %9341 = vmatprep.mubr.msk.f32.mxu1 %vm339_vm1, %v12000_v5  ;;  %v8257_v18 = vld [vmem:[%s10577_s13 + $0xa8] sm:$0xff] }
 0x18f   : > { %9791 = vmatprep.mubr.msk.f32.mxu0 %vm339_vm1, %v12003_v12 }
 0x191   : > { %9342 = vmatmul.mubr.msk.f32.gmra.mrb[30].mxu1 %vm339_vm1, %v12014_v11 }
 0x192   : > { %9792 = vmatmul.mubr.msk.f32.gmra.mrb[30].mxu0 %vm339_vm1, %v12017_v20  ;;  %9346 = vmatprep.mubr.msk.f32.mxu1 %vm339_vm1, %v7750_v15  ;;  %v7761_v15 = vld [vmem:[%s10572_s10 + $0xb0] sm:$0xff] }
 0x193   : > { %9796 = vmatprep.mubr.msk.f32.mxu0 %vm339_vm1, %v8247_v17  ;;  %v8258_v17 = vld [vmem:[%s10577_s13 + $0xb0] sm:$0xff] }
 0x195   : > { %9347 = vmatmul.mubr.msk.f32.vlgmr.msra.gmra.mrb[0].mxu1 %vm339_vm1, %v7751_v24  ;;  %v7762_v24 = vld [vmem:[%s10572_s10 + $0xc0] sm:$0xff] }
 0x196   : > { %9797 = vmatmul.mubr.msk.f32.vlgmr.msra.gmra.mrb[0].mxu0 %vm339_vm1, %v8248_v31  ;;  %9395 = vmatpush3.msk.msra.mxu1 %vm436_vm0, %v11876_v46  ;;  %v7755_v46 = vld [vmem:[%s10572_s10 + $0x68] sm:$0xff]  ;;  %v8259_v31 = vld [vmem:[%s10577_s13 + $0xc0] sm:$0xff] }
 0x197   : > { %9845 = vmatpush3.msk.msra.mxu0 %vm436_vm0, %v11881_v52  ;;  %9349 = vmatprep.mubr.msk.f32.mxu1 %vm339_vm1, %v7752_v33  ;;  %v8252_v52 = vld [vmem:[%s10577_s13 + $0x68] sm:$0xff] }
 0x198   : > { %9799 = vmatprep.mubr.msk.f32.mxu0 %vm339_vm1, %v8249_v47  ;;  %9444 = vmatprep.subr.msk.mxu1 %vm436_vm0, %v12036_v51  ;;  %v7763_v33 = vld [vmem:[%s10572_s10 + $0xc8] sm:$0xff] }
 0x199   : > { %9894 = vmatprep.subr.msk.mxu0 %vm436_vm0, %v12041_v16  ;;  %9350 = vmatmul.mubr.msk.f32.gmra.mrb[2].mxu1 %vm339_vm1, %v7753_v30  ;;  %v8260_v47 = vld [vmem:[%s10577_s13 + $0xc8] sm:$0xff]  ;;  %v7764_v30 = vld [vmem:[%s10572_s10 + $0xd8] sm:$0xff] }
 0x19a   : > { %9800 = vmatmul.mubr.msk.f32.gmra.mrb[2].mxu0 %vm339_vm1, %v8250_v36  ;;  %9352 = vmatprep.mubr.msk.f32.mxu1 %vm339_vm1, %v7754_v38  ;;  %v8261_v36 = vld [vmem:[%s10577_s13 + $0xd8] sm:$0xff]  ;;  %v7765_v38 = vld [vmem:[%s10572_s10 + $0xe0] sm:$0xff] }
 0x19b   : > { %9802 = vmatprep.mubr.msk.f32.mxu0 %vm339_vm1, %v8251_v44  ;;  %v8262_v44 = vld [vmem:[%s10577_s13 + $0xe0] sm:$0xff] }
 0x19d   : > { %9353 = vmatmul.mubr.msk.f32.gmra.mrb[4].mxu1 %vm339_vm1, %v7755_v46  ;;  %v7766_v46 = vld [vmem:[%s10572_s10 + $0xf0] sm:$0xff] }
 0x19e   : > { %9803 = vmatmul.mubr.msk.f32.gmra.mrb[4].mxu0 %vm339_vm1, %v8252_v52  ;;  %9355 = vmatprep.mubr.msk.f32.mxu1 %vm339_vm1, %v7756_v54  ;;  %v8263_v52 = vld [vmem:[%s10577_s13 + $0xf0] sm:$0xff]  ;;  %v7767_v54 = vld [vmem:[%s10572_s10 + $0xf8] sm:$0xff] }
 0x19f   : > { %9805 = vmatprep.mubr.msk.f32.mxu0 %vm339_vm1, %v8253_v60  ;;  %v8264_v60 = vld [vmem:[%s10577_s13 + $0xf8] sm:$0xff] }
 0x1a1   : > { %9356 = vmatmul.mubr.msk.f32.gmra.mrb[6].mxu1 %vm339_vm1, %v7757_v62  ;;  %v7768_v62 = vld [vmem:[%s10572_s10 + $0x108] sm:$0xff] }
 0x1a2   : > { %9806 = vmatmul.mubr.msk.f32.gmra.mrb[6].mxu0 %vm339_vm1, %v8254_v4  ;;  %9358 = vmatprep.mubr.msk.f32.mxu1 %vm339_vm1, %v7758_v41  ;;  %v8265_v4 = vld [vmem:[%s10577_s13 + $0x108] sm:$0xff]  ;;  %v7769_v41 = vld [vmem:[%s10572_s10 + $0x110] sm:$0xff] }
 0x1a3   : > { %9808 = vmatprep.mubr.msk.f32.mxu0 %vm339_vm1, %v8255_v43  ;;  %v8266_v43 = vld [vmem:[%s10577_s13 + $0x110] sm:$0xff] }
 0x1a5   : > { %9359 = vmatmul.mubr.msk.f32.gmra.mrb[8].mxu1 %vm339_vm1, %v7759_v6  ;;  %v7770_v6 = vld [vmem:[%s10572_s10 + $0x120] sm:$0xff] }
 0x1a6   : > { %9809 = vmatmul.mubr.msk.f32.gmra.mrb[8].mxu0 %vm339_vm1, %v8256_v1  ;;  %9361 = vmatprep.mubr.msk.f32.mxu1 %vm339_vm1, %v7760_v3  ;;  %v8267_v1 = vld [vmem:[%s10577_s13 + $0x120] sm:$0xff]  ;;  %v7771_v3 = vld [vmem:[%s10572_s10 + $0x128] sm:$0xff] }
 0x1a7   : > { %9811 = vmatprep.mubr.msk.f32.mxu0 %vm339_vm1, %v8257_v18  ;;  %v8268_v18 = vld [vmem:[%s10577_s13 + $0x128] sm:$0xff] }
 0x1a9   : > { %9362 = vmatmul.mubr.msk.f32.gmra.mrb[10].mxu1 %vm339_vm1, %v7761_v15  ;;  %v7772_v15 = vld [vmem:[%s10572_s10 + $0x138] sm:$0xff] }
 0x1aa   : > { %9812 = vmatmul.mubr.msk.f32.gmra.mrb[10].mxu0 %vm339_vm1, %v8258_v17  ;;  %9364 = vmatprep.mubr.msk.f32.mxu1 %vm339_vm1, %v7762_v24  ;;  %v8269_v17 = vld [vmem:[%s10577_s13 + $0x138] sm:$0xff]  ;;  %v7773_v24 = vld [vmem:[%s10572_s10 + $0x140] sm:$0xff] }
 0x1ab   : > { %9814 = vmatprep.mubr.msk.f32.mxu0 %vm339_vm1, %v8259_v31  ;;  %v8270_v31 = vld [vmem:[%s10577_s13 + $0x140] sm:$0xff] }
 0x1ad   : > { %9365 = vmatmul.mubr.msk.f32.gmra.mrb[12].mxu1 %vm339_vm1, %v7763_v33  ;;  %v7774_v33 = vld [vmem:[%s10572_s10 + $0x150] sm:$0xff] }
 0x1ae   : > { %9815 = vmatmul.mubr.msk.f32.gmra.mrb[12].mxu0 %vm339_vm1, %v8260_v47  ;;  %9367 = vmatprep.mubr.msk.f32.mxu1 %vm339_vm1, %v7764_v30  ;;  %v8271_v47 = vld [vmem:[%s10577_s13 + $0x150] sm:$0xff]  ;;  %v7775_v30 = vld [vmem:[%s10572_s10 + $0x158] sm:$0xff] }
 0x1af   : > { %9817 = vmatprep.mubr.msk.f32.mxu0 %vm339_vm1, %v8261_v36  ;;  %v8272_v36 = vld [vmem:[%s10577_s13 + $0x158] sm:$0xff] }
 0x1b1   : > { %9368 = vmatmul.mubr.msk.f32.gmra.mrb[14].mxu1 %vm339_vm1, %v7765_v38  ;;  %v7776_v38 = vld [vmem:[%s10572_s10 + $0x168] sm:$0xff] }
 0x1b2   : > { %9818 = vmatmul.mubr.msk.f32.gmra.mrb[14].mxu0 %vm339_vm1, %v8262_v44  ;;  %9370 = vmatprep.mubr.msk.f32.mxu1 %vm339_vm1, %v7766_v46  ;;  %v8273_v44 = vld [vmem:[%s10577_s13 + $0x168] sm:$0xff]  ;;  %v7777_v46 = vld [vmem:[%s10572_s10 + $0x170] sm:$0xff] }
 0x1b3   : > { %9820 = vmatprep.mubr.msk.f32.mxu0 %vm339_vm1, %v8263_v52  ;;  %v8274_v52 = vld [vmem:[%s10577_s13 + $0x170] sm:$0xff] }
 0x1b5   : > { %9371 = vmatmul.mubr.msk.f32.gmra.mrb[16].mxu1 %vm339_vm1, %v7767_v54  ;;  %v7780_v54 = vld [vmem:[%s10572_s10 + $0x198] sm:$0xff] }
 0x1b6   : > { %9821 = vmatmul.mubr.msk.f32.gmra.mrb[16].mxu0 %vm339_vm1, %v8264_v60  ;;  %9373 = vmatprep.mubr.msk.f32.mxu1 %vm339_vm1, %v7768_v62  ;;  %v8277_v60 = vld [vmem:[%s10577_s13 + $0x198] sm:$0xff]  ;;  %v7781_v62 = vld [vmem:[%s10572_s10 + $0x1a0] sm:$0xff] }
 0x1b7   : > { %9823 = vmatprep.mubr.msk.f32.mxu0 %vm339_vm1, %v8265_v4  ;;  %v8313_v4 = vld [vmem:[%s10577_s13 + $0x31] sm:$0xff] }
 0x1b9   : > { %9374 = vmatmul.mubr.msk.f32.gmra.mrb[18].mxu1 %vm339_vm1, %v7769_v41  ;;  %v7885_v41 = vld [vmem:[%s10572_s10 + $0x52] sm:$0xff] }
 0x1ba   : > { %9824 = vmatmul.mubr.msk.f32.gmra.mrb[18].mxu0 %vm339_vm1, %v8266_v43  ;;  %9376 = vmatprep.mubr.msk.f32.mxu1 %vm339_vm1, %v7770_v6  ;;  %v8382_v43 = vld [vmem:[%s10577_s13 + $0x52] sm:$0xff]  ;;  %v7886_v6 = vld [vmem:[%s10572_s10 + $0x62] sm:$0xff] }
 0x1bb   : > { %9826 = vmatprep.mubr.msk.f32.mxu0 %vm339_vm1, %v8267_v1  ;;  %v8383_v1 = vld [vmem:[%s10577_s13 + $0x62] sm:$0xff] }
 0x1bd   : > { %9377 = vmatmul.mubr.msk.f32.gmra.mrb[20].mxu1 %vm339_vm1, %v7771_v3  ;;  %v7887_v3 = vld [vmem:[%s10572_s10 + $0x6a] sm:$0xff] }
 0x1be   : > { %9827 = vmatmul.mubr.msk.f32.gmra.mrb[20].mxu0 %vm339_vm1, %v8268_v18  ;;  %9379 = vmatprep.mubr.msk.f32.mxu1 %vm339_vm1, %v7772_v15  ;;  %v8384_v18 = vld [vmem:[%s10577_s13 + $0x6a] sm:$0xff]  ;;  %v7888_v15 = vld [vmem:[%s10572_s10 + $0x7a] sm:$0xff] }
 0x1bf   : > { %9829 = vmatprep.mubr.msk.f32.mxu0 %vm339_vm1, %v8269_v17  ;;  %v8385_v17 = vld [vmem:[%s10577_s13 + $0x7a] sm:$0xff] }
 0x1c1   : > { %9380 = vmatmul.mubr.msk.f32.gmra.mrb[22].mxu1 %vm339_vm1, %v7773_v24  ;;  %v7889_v24 = vld [vmem:[%s10572_s10 + $0x82] sm:$0xff] }
 0x1c2   : > { %9830 = vmatmul.mubr.msk.f32.gmra.mrb[22].mxu0 %vm339_vm1, %v8270_v31  ;;  %9382 = vmatprep.mubr.msk.f32.mxu1 %vm339_vm1, %v7774_v33  ;;  %v8386_v31 = vld [vmem:[%s10577_s13 + $0x82] sm:$0xff]  ;;  %v7890_v33 = vld [vmem:[%s10572_s10 + $0x92] sm:$0xff] }
 0x1c3   : > { %9832 = vmatprep.mubr.msk.f32.mxu0 %vm339_vm1, %v8271_v47  ;;  %v8387_v47 = vld [vmem:[%s10577_s13 + $0x92] sm:$0xff] }
 0x1c5   : > { %9383 = vmatmul.mubr.msk.f32.gmra.mrb[24].mxu1 %vm339_vm1, %v7775_v30  ;;  %v7891_v30 = vld [vmem:[%s10572_s10 + $0x9a] sm:$0xff] }
 0x1c6   : > { %9833 = vmatmul.mubr.msk.f32.gmra.mrb[24].mxu0 %vm339_vm1, %v8272_v36  ;;  %9385 = vmatprep.mubr.msk.f32.mxu1 %vm339_vm1, %v7776_v38  ;;  %v8388_v36 = vld [vmem:[%s10577_s13 + $0x9a] sm:$0xff]  ;;  %v7892_v38 = vld [vmem:[%s10572_s10 + $0xaa] sm:$0xff] }
 0x1c7   : > { %9835 = vmatprep.mubr.msk.f32.mxu0 %vm339_vm1, %v8273_v44  ;;  %v8389_v44 = vld [vmem:[%s10577_s13 + $0xaa] sm:$0xff] }
 0x1c9   : > { %9386 = vmatmul.mubr.msk.f32.gmra.mrb[26].mxu1 %vm339_vm1, %v7777_v46  ;;  %v7893_v46 = vld [vmem:[%s10572_s10 + $0xb2] sm:$0xff] }
 0x1ca   : > { %9836 = vmatmul.mubr.msk.f32.gmra.mrb[26].mxu0 %vm339_vm1, %v8274_v52  ;;  %9388 = vmatprep.mubr.msk.f32.mxu1 %vm339_vm1, %v11600_v19  ;;  %v8278_v19 = vld [vmem:[%s10577_s13 + $0x1a0] sm:$0xff]  ;;  %v8390_v52 = vld [vmem:[%s10577_s13 + $0xb2] sm:$0xff] }
 0x1cb   : > { %9838 = vmatprep.mubr.msk.f32.mxu0 %vm339_vm1, %v11603_v21  ;;  %v8314_v21 = vld [vmem:[%s10577_s13 + $0x39] sm:$0xff] }
 0x1cd   : > { %9389 = vmatmul.mubr.msk.f32.gmra.mrb[28].mxu1 %vm339_vm1, %v11614_v27  ;;  %v8315_v27 = vld [vmem:[%s10577_s13 + $0x49] sm:$0xff] }
 0x1ce   : > { %9839 = vmatmul.mubr.msk.f32.gmra.mrb[28].mxu0 %vm339_vm1, %v11617_v29  ;;  %9391 = vmatprep.mubr.msk.f32.mxu1 %vm339_vm1, %v7780_v54  ;;  %v8316_v29 = vld [vmem:[%s10577_s13 + $0x51] sm:$0xff]  ;;  %v7894_v54 = vld [vmem:[%s10572_s10 + $0xc2] sm:$0xff] }
 0x1cf   : > { %9841 = vmatprep.mubr.msk.f32.mxu0 %vm339_vm1, %v8277_v60  ;;  %v8391_v60 = vld [vmem:[%s10577_s13 + $0xc2] sm:$0xff] }
 0x1d1   : > { %9392 = vmatmul.mubr.msk.f32.gmra.mrb[30].mxu1 %vm339_vm1, %v7781_v62  ;;  %v7895_v62 = vld [vmem:[%s10572_s10 + $0xca] sm:$0xff] }
 0x1d2   : > { %9842 = vmatmul.mubr.msk.f32.gmra.mrb[30].mxu0 %vm339_vm1, %v8278_v19  ;;  %9396 = vmatprep.mubr.msk.f32.mxu1 %vm339_vm1, %v11629_v37  ;;  %v8317_v37 = vld [vmem:[%s10577_s13 + $0x61] sm:$0xff]  ;;  %v8392_v19 = vld [vmem:[%s10577_s13 + $0xca] sm:$0xff] }
 0x1d3   : > { %9846 = vmatprep.mubr.msk.f32.mxu0 %vm339_vm1, %v8313_v4  ;;  %v7896_v4 = vld [vmem:[%s10572_s10 + $0xda] sm:$0xff] }
 0x1d5   : > { %9397 = vmatmul.mubr.msk.f32.vlgmr.msra.gmra.mrb[0].mxu1 %vm339_vm1, %v11649_v45  ;;  %v8318_v45 = vld [vmem:[%s10577_s13 + $0x69] sm:$0xff] }
 0x1d6   : > { %9847 = vmatmul.mubr.msk.f32.vlgmr.msra.gmra.mrb[0].mxu0 %vm339_vm1, %v8314_v21  ;;  %9445 = vmatpush3.msk.msra.mxu1 %vm436_vm0, %v12036_v51  ;;  %v8319_v51 = vld [vmem:[%s10577_s13 + $0x79] sm:$0xff] }
 0x1d7   : > { %9895 = vmatpush3.msk.msra.mxu0 %vm436_vm0, %v12041_v16  ;;  %9399 = vmatprep.mubr.msk.f32.mxu1 %vm339_vm1, %v11656_v49  ;;  %v8320_v49 = vld [vmem:[%s10577_s13 + $0x81] sm:$0xff]  ;;  %v8381_v16 = vld [vmem:[%s10577_s13 + $0x4a] sm:$0xff] }
 0x1d8   : > { %9849 = vmatprep.mubr.msk.f32.mxu0 %vm339_vm1, %v8315_v27  ;;  %v8393_v21 = vld [vmem:[%s10577_s13 + $0xda] sm:$0xff]  ;;  %v7897_v27 = vld [vmem:[%s10572_s10 + $0xe2] sm:$0xff] }
 0x1d9   : > { %9400 = vmatmul.mubr.msk.f32.gmra.mrb[2].mxu1 %vm339_vm1, %v11671_v55  ;;  %v8321_v55 = vld [vmem:[%s10577_s13 + $0x91] sm:$0xff] }
 0x1da   : > { %9850 = vmatmul.mubr.msk.f32.gmra.mrb[2].mxu0 %vm339_vm1, %v8316_v29  ;;  %9402 = vmatprep.mubr.msk.f32.mxu1 %vm339_vm1, %v11674_v57  ;;  %v8322_v57 = vld [vmem:[%s10577_s13 + $0x99] sm:$0xff]  ;;  %v8394_v29 = vld [vmem:[%s10577_s13 + $0xe2] sm:$0xff] }
 0x1db   : > { %9852 = vmatprep.mubr.msk.f32.mxu0 %vm339_vm1, %v8317_v37  ;;  %v7898_v37 = vld [vmem:[%s10572_s10 + $0xf2] sm:$0xff] }
 0x1dd   : > { %9403 = vmatmul.mubr.msk.f32.gmra.mrb[4].mxu1 %vm339_vm1, %v11685_v63  ;;  %v8323_v63 = vld [vmem:[%s10577_s13 + $0xa9] sm:$0xff] }
 0x1de   : > { %9853 = vmatmul.mubr.msk.f32.gmra.mrb[4].mxu0 %vm339_vm1, %v8318_v45  ;;  %9405 = vmatprep.mubr.msk.f32.mxu1 %vm339_vm1, %v11688_v14  ;;  %v8324_v14 = vld [vmem:[%s10577_s13 + $0xb1] sm:$0xff] }
 0x1df   : > { %9855 = vmatprep.mubr.msk.f32.mxu0 %vm339_vm1, %v8319_v51  ;;  %v8395_v45 = vld [vmem:[%s10577_s13 + $0xf2] sm:$0xff]  ;;  %v7899_v51 = vld [vmem:[%s10572_s10 + $0xfa] sm:$0xff] }
 0x1e1   : > { %9406 = vmatmul.mubr.msk.f32.gmra.mrb[6].mxu1 %vm339_vm1, %v11699_v26  ;;  %v8325_v26 = vld [vmem:[%s10577_s13 + $0xc1] sm:$0xff] }
 0x1e2   : > { %9856 = vmatmul.mubr.msk.f32.gmra.mrb[6].mxu0 %vm339_vm1, %v8320_v49  ;;  %9408 = vmatprep.mubr.msk.f32.mxu1 %vm339_vm1, %v11702_v28  ;;  %v8326_v28 = vld [vmem:[%s10577_s13 + $0xc9] sm:$0xff]  ;;  %v8396_v49 = vld [vmem:[%s10577_s13 + $0xfa] sm:$0xff] }
 0x1e3   : > { %9858 = vmatprep.mubr.msk.f32.mxu0 %vm339_vm1, %v8321_v55  ;;  %v7900_v55 = vld [vmem:[%s10572_s10 + $0x10a] sm:$0xff] }
 0x1e5   : > { %9409 = vmatmul.mubr.msk.f32.gmra.mrb[8].mxu1 %vm339_vm1, %v11713_v32  ;;  %v8327_v32 = vld [vmem:[%s10577_s13 + $0xd9] sm:$0xff] }
 0x1e6   : > { %9859 = vmatmul.mubr.msk.f32.gmra.mrb[8].mxu0 %vm339_vm1, %v8322_v57  ;;  %9411 = vmatprep.mubr.msk.f32.mxu1 %vm339_vm1, %v11716_v34  ;;  %v8328_v34 = vld [vmem:[%s10577_s13 + $0xe1] sm:$0xff]  ;;  %v8397_v57 = vld [vmem:[%s10577_s13 + $0x10a] sm:$0xff] }
 0x1e7   : > { %9861 = vmatprep.mubr.msk.f32.mxu0 %vm339_vm1, %v8323_v63  ;;  %v7901_v63 = vld [vmem:[%s10572_s10 + $0x112] sm:$0xff] }
 0x1e9   : > { %9412 = vmatmul.mubr.msk.f32.gmra.mrb[10].mxu1 %vm339_vm1, %v11727_v40  ;;  %v8329_v40 = vld [vmem:[%s10577_s13 + $0xf1] sm:$0xff] }
 0x1ea   : > { %9862 = vmatmul.mubr.msk.f32.gmra.mrb[10].mxu0 %vm339_vm1, %v8324_v14  ;;  %9414 = vmatprep.mubr.msk.f32.mxu1 %vm339_vm1, %v11730_v42  ;;  %v8330_v42 = vld [vmem:[%s10577_s13 + $0xf9] sm:$0xff] }
 0x1eb   : > { %9864 = vmatprep.mubr.msk.f32.mxu0 %vm339_vm1, %v8325_v26  ;;  %v8398_v14 = vld [vmem:[%s10577_s13 + $0x112] sm:$0xff]  ;;  %v7902_v26 = vld [vmem:[%s10572_s10 + $0x122] sm:$0xff] }
 0x1ed   : > { %9415 = vmatmul.mubr.msk.f32.gmra.mrb[12].mxu1 %vm339_vm1, %v11741_v48  ;;  %v8331_v48 = vld [vmem:[%s10577_s13 + $0x109] sm:$0xff] }
 0x1ee   : > { %9865 = vmatmul.mubr.msk.f32.gmra.mrb[12].mxu0 %vm339_vm1, %v8326_v28  ;;  %9417 = vmatprep.mubr.msk.f32.mxu1 %vm339_vm1, %v11744_v50  ;;  %v8332_v50 = vld [vmem:[%s10577_s13 + $0x111] sm:$0xff]  ;;  %v8399_v28 = vld [vmem:[%s10577_s13 + $0x122] sm:$0xff] }
 0x1ef   : > { %9867 = vmatprep.mubr.msk.f32.mxu0 %vm339_vm1, %v8327_v32  ;;  %v7903_v32 = vld [vmem:[%s10572_s10 + $0x12a] sm:$0xff] }
 0x1f1   : > { %9418 = vmatmul.mubr.msk.f32.gmra.mrb[14].mxu1 %vm339_vm1, %v11755_v56  ;;  %v8333_v56 = vld [vmem:[%s10577_s13 + $0x121] sm:$0xff] }
 0x1f2   : > { %9868 = vmatmul.mubr.msk.f32.gmra.mrb[14].mxu0 %vm339_vm1, %v8328_v34  ;;  %9420 = vmatprep.mubr.msk.f32.mxu1 %vm339_vm1, %v11758_v58  ;;  %v8334_v58 = vld [vmem:[%s10577_s13 + $0x129] sm:$0xff] }
 0x1f3   : > { %9870 = vmatprep.mubr.msk.f32.mxu0 %vm339_vm1, %v8329_v40  ;;  %v8400_v34 = vld [vmem:[%s10577_s13 + $0x12a] sm:$0xff]  ;;  %v7904_v40 = vld [vmem:[%s10572_s10 + $0x13a] sm:$0xff] }
 0x1f5   : > { %9421 = vmatmul.mubr.msk.f32.gmra.mrb[16].mxu1 %vm339_vm1, %v11769_v0  ;;  %v8335_v0 = vld [vmem:[%s10577_s13 + $0x139] sm:$0xff] }
 0x1f6   : > { %9871 = vmatmul.mubr.msk.f32.gmra.mrb[16].mxu0 %vm339_vm1, %v8330_v42  ;;  %9423 = vmatprep.mubr.msk.f32.mxu1 %vm339_vm1, %v11772_v2  ;;  %v8336_v2 = vld [vmem:[%s10577_s13 + $0x141] sm:$0xff] }
 0x1f7   : > { %9873 = vmatprep.mubr.msk.f32.mxu0 %vm339_vm1, %v8331_v48  ;;  %v8401_v42 = vld [vmem:[%s10577_s13 + $0x13a] sm:$0xff]  ;;  %v7905_v48 = vld [vmem:[%s10572_s10 + $0x142] sm:$0xff] }
 0x1f9   : > { %9424 = vmatmul.mubr.msk.f32.gmra.mrb[18].mxu1 %vm339_vm1, %v11783_v7  ;;  %v8337_v7 = vld [vmem:[%s10577_s13 + $0x151] sm:$0xff] }
 0x1fa   : > { %9874 = vmatmul.mubr.msk.f32.gmra.mrb[18].mxu0 %vm339_vm1, %v8332_v50  ;;  %9426 = vmatprep.mubr.msk.f32.mxu1 %vm339_vm1, %v11786_v8  ;;  %v8338_v8 = vld [vmem:[%s10577_s13 + $0x159] sm:$0xff]  ;;  %v8402_v50 = vld [vmem:[%s10577_s13 + $0x142] sm:$0xff] }
 0x1fb   : > { %9876 = vmatprep.mubr.msk.f32.mxu0 %vm339_vm1, %v8333_v56  ;;  %v7906_v56 = vld [vmem:[%s10572_s10 + $0x152] sm:$0xff] }
 0x1fd   : > { %9427 = vmatmul.mubr.msk.f32.gmra.mrb[20].mxu1 %vm339_vm1, %v11797_v9  ;;  %v8339_v9 = vld [vmem:[%s10577_s13 + $0x169] sm:$0xff] }
 0x1fe   : > { %9877 = vmatmul.mubr.msk.f32.gmra.mrb[20].mxu0 %vm339_vm1, %v8334_v58  ;;  %9429 = vmatprep.mubr.msk.f32.mxu1 %vm339_vm1, %v11800_v13  ;;  %v8340_v13 = vld [vmem:[%s10577_s13 + $0x171] sm:$0xff] }
 0x1ff   : > { %9879 = vmatprep.mubr.msk.f32.mxu0 %vm339_vm1, %v8335_v0  ;;  %v8403_v58 = vld [vmem:[%s10577_s13 + $0x152] sm:$0xff]  ;;  %v7907_v0 = vld [vmem:[%s10572_s10 + $0x15a] sm:$0xff] }
 0x201   : > { %9430 = vmatmul.mubr.msk.f32.gmra.mrb[22].mxu1 %vm339_vm1, %v11811_v23  ;;  %v7846_v23 = vld [vmem:[%s10572_s10 + $0x199] sm:$0xff] }
 0x202   : > { %9880 = vmatmul.mubr.msk.f32.gmra.mrb[22].mxu0 %vm339_vm1, %v8336_v2  ;;  %9432 = vmatprep.mubr.msk.f32.mxu1 %vm339_vm1, %v11814_v25  ;;  %v8343_v25 = vld [vmem:[%s10577_s13 + $0x199] sm:$0xff] }
 0x203   : > { %9882 = vmatprep.mubr.msk.f32.mxu0 %vm339_vm1, %v8337_v7  ;;  %v8404_v2 = vld [vmem:[%s10577_s13 + $0x15a] sm:$0xff]  ;;  %v7908_v7 = vld [vmem:[%s10572_s10 + $0x16a] sm:$0xff] }
 0x205   : > { %9433 = vmatmul.mubr.msk.f32.gmra.mrb[24].mxu1 %vm339_vm1, %v11825_v35  ;;  %v7847_v35 = vld [vmem:[%s10572_s10 + $0x1a1] sm:$0xff] }
 0x206   : > { %9883 = vmatmul.mubr.msk.f32.gmra.mrb[24].mxu0 %vm339_vm1, %v8338_v8  ;;  %9435 = vmatprep.mubr.msk.f32.mxu1 %vm339_vm1, %v11828_v39  ;;  %v8344_v39 = vld [vmem:[%s10577_s13 + $0x1a1] sm:$0xff]  ;;  %v8405_v8 = vld [vmem:[%s10577_s13 + $0x16a] sm:$0xff] }
 0x207   : > { %9885 = vmatprep.mubr.msk.f32.mxu0 %vm339_vm1, %v8339_v9  ;;  %v7909_v9 = vld [vmem:[%s10572_s10 + $0x172] sm:$0xff] }
 0x209   : > { %9436 = vmatmul.mubr.msk.f32.gmra.mrb[26].mxu1 %vm339_vm1, %v11839_v53  ;;  %v7882_v53 = vld [vmem:[%s10572_s10 + $0x32] sm:$0xff] }
 0x20a   : > { %9886 = vmatmul.mubr.msk.f32.gmra.mrb[26].mxu0 %vm339_vm1, %v8340_v13  ;;  %9438 = vmatprep.mubr.msk.f32.mxu1 %vm339_vm1, %v11842_v59  ;;  %v8379_v59 = vld [vmem:[%s10577_s13 + $0x32] sm:$0xff] }
 0x20b   : > { %9888 = vmatprep.mubr.msk.f32.mxu0 %vm339_vm1, %v11845_v61  ;;  %v7883_v61 = vld [vmem:[%s10572_s10 + $0x3a] sm:$0xff]  ;;  %v8406_v13 = vld [vmem:[%s10577_s13 + $0x172] sm:$0xff] }
 0x20d   : > { %9439 = vmatmul.mubr.msk.f32.gmra.mrb[28].mxu1 %vm339_vm1, %v11856_v22  ;;  %v8380_v22 = vld [vmem:[%s10577_s13 + $0x3a] sm:$0xff] }
 0x20e   : > { %9889 = vmatmul.mubr.msk.f32.gmra.mrb[28].mxu0 %vm339_vm1, %v11859_v10  ;;  %9441 = vmatprep.mubr.msk.f32.mxu1 %vm339_vm1, %v7846_v23  ;;  %v7884_v10 = vld [vmem:[%s10572_s10 + $0x4a] sm:$0xff]  ;;  %v7912_v23 = vld [vmem:[%s10572_s10 + $0x19a] sm:$0xff] }
 0x20f   : > { %9891 = vmatprep.mubr.msk.f32.mxu0 %vm339_vm1, %v8343_v25  ;;  %v8409_v25 = vld [vmem:[%s10577_s13 + $0x19a] sm:$0xff] }
 0x211   : > { %9442 = vmatmul.mubr.msk.f32.gmra.mrb[30].mxu1 %vm339_vm1, %v7847_v35  ;;  %v7913_v35 = vld [vmem:[%s10572_s10 + $0x1a2] sm:$0xff]  ;;  %s8449_s10 = sshll.u32 %s12854_s22, 8 }
 0x212   : > { %9892 = vmatmul.mubr.msk.f32.gmra.mrb[30].mxu0 %vm339_vm1, %v8344_v39  ;;  %9446 = vmatprep.mubr.msk.f32.mxu1 %vm339_vm1, %v7882_v53  ;;  %v8410_v39 = vld [vmem:[%s10577_s13 + $0x1a2] sm:$0xff]  ;;  %s12446_s29 = scalar_lea.vmem %s12582_s6, %s8449_s10 }
 0x213   : > { %9896 = vmatprep.mubr.msk.f32.mxu0 %vm339_vm1, %v8379_v59 }
 0x215   : > { %9447 = vmatmul.mubr.msk.f32.vlgmr.msra.gmra.mrb[0].mxu1 %vm339_vm1, %v7883_v61  ;;  %v12437_v61 = vld [vmem:[%s12581_s5] ss:$0 sm:$0xff] }
 0x216   : > { %9897 = vmatmul.mubr.msk.f32.vlgmr.msra.gmra.mrb[0].mxu0 %vm339_vm1, %v8380_v22  ;;  %9449 = vmatprep.mubr.msk.f32.mxu1 %vm339_vm1, %v7884_v10 }
 0x217   : > { %9899 = vmatprep.mubr.msk.f32.mxu0 %vm339_vm1, %v8381_v16 }
 0x219   : > { %9450 = vmatmul.mubr.msk.f32.gmra.mrb[2].mxu1 %vm339_vm1, %v7885_v41 }
 0x21a   : > { %9900 = vmatmul.mubr.msk.f32.gmra.mrb[2].mxu0 %vm339_vm1, %v8382_v43  ;;  %9452 = vmatprep.mubr.msk.f32.mxu1 %vm339_vm1, %v7886_v6 }
 0x21b   : > { %9902 = vmatprep.mubr.msk.f32.mxu0 %vm339_vm1, %v8383_v1 }
 0x21d   : > { %9453 = vmatmul.mubr.msk.f32.gmra.mrb[4].mxu1 %vm339_vm1, %v7887_v3 }
 0x21e   : > { %9903 = vmatmul.mubr.msk.f32.gmra.mrb[4].mxu0 %vm339_vm1, %v8384_v18  ;;  %9455 = vmatprep.mubr.msk.f32.mxu1 %vm339_vm1, %v7888_v15 }
 0x21f   : > { %9905 = vmatprep.mubr.msk.f32.mxu0 %vm339_vm1, %v8385_v17 }
 0x221   : > { %9456 = vmatmul.mubr.msk.f32.gmra.mrb[6].mxu1 %vm339_vm1, %v7889_v24 }
 0x222   : > { %9906 = vmatmul.mubr.msk.f32.gmra.mrb[6].mxu0 %vm339_vm1, %v8386_v31  ;;  %9458 = vmatprep.mubr.msk.f32.mxu1 %vm339_vm1, %v7890_v33 }
 0x223   : > { %9908 = vmatprep.mubr.msk.f32.mxu0 %vm339_vm1, %v8387_v47 }
 0x225   : > { %9459 = vmatmul.mubr.msk.f32.gmra.mrb[8].mxu1 %vm339_vm1, %v7891_v30 }
 0x226   : > { %9909 = vmatmul.mubr.msk.f32.gmra.mrb[8].mxu0 %vm339_vm1, %v8388_v36  ;;  %9461 = vmatprep.mubr.msk.f32.mxu1 %vm339_vm1, %v7892_v38 }
 0x227   : > { %9911 = vmatprep.mubr.msk.f32.mxu0 %vm339_vm1, %v8389_v44 }
 0x229   : > { %9462 = vmatmul.mubr.msk.f32.gmra.mrb[10].mxu1 %vm339_vm1, %v7893_v46 }
 0x22a   : > { %9912 = vmatmul.mubr.msk.f32.gmra.mrb[10].mxu0 %vm339_vm1, %v8390_v52  ;;  %9464 = vmatprep.mubr.msk.f32.mxu1 %vm339_vm1, %v7894_v54 }
 0x22b   : > { %9914 = vmatprep.mubr.msk.f32.mxu0 %vm339_vm1, %v8391_v60 }
 0x22d   : > { %9465 = vmatmul.mubr.msk.f32.gmra.mrb[12].mxu1 %vm339_vm1, %v7895_v62 }
 0x22e   : > { %9915 = vmatmul.mubr.msk.f32.gmra.mrb[12].mxu0 %vm339_vm1, %v8392_v19  ;;  %9467 = vmatprep.mubr.msk.f32.mxu1 %vm339_vm1, %v7896_v4 }
 0x22f   : > { %9917 = vmatprep.mubr.msk.f32.mxu0 %vm339_vm1, %v8393_v21 }
 0x231   : > { %9468 = vmatmul.mubr.msk.f32.gmra.mrb[14].mxu1 %vm339_vm1, %v7897_v27 }
 0x232   : > { %9918 = vmatmul.mubr.msk.f32.gmra.mrb[14].mxu0 %vm339_vm1, %v8394_v29  ;;  %9470 = vmatprep.mubr.msk.f32.mxu1 %vm339_vm1, %v7898_v37 }
 0x233   : > { %9920 = vmatprep.mubr.msk.f32.mxu0 %vm339_vm1, %v8395_v45 }
 0x235   : > { %9471 = vmatmul.mubr.msk.f32.gmra.mrb[16].mxu1 %vm339_vm1, %v7899_v51 }
 0x236   : > { %9921 = vmatmul.mubr.msk.f32.gmra.mrb[16].mxu0 %vm339_vm1, %v8396_v49  ;;  %9473 = vmatprep.mubr.msk.f32.mxu1 %vm339_vm1, %v7900_v55 }
 0x237   : > { %9923 = vmatprep.mubr.msk.f32.mxu0 %vm339_vm1, %v8397_v57 }
 0x239   : > { %9474 = vmatmul.mubr.msk.f32.gmra.mrb[18].mxu1 %vm339_vm1, %v7901_v63 }
 0x23a   : > { %9924 = vmatmul.mubr.msk.f32.gmra.mrb[18].mxu0 %vm339_vm1, %v8398_v14  ;;  %9476 = vmatprep.mubr.msk.f32.mxu1 %vm339_vm1, %v7902_v26 }
 0x23b   : > { %9926 = vmatprep.mubr.msk.f32.mxu0 %vm339_vm1, %v8399_v28 }
 0x23d   : > { %9477 = vmatmul.mubr.msk.f32.gmra.mrb[20].mxu1 %vm339_vm1, %v7903_v32 }
 0x23e   : > { %9927 = vmatmul.mubr.msk.f32.gmra.mrb[20].mxu0 %vm339_vm1, %v8400_v34  ;;  %9479 = vmatprep.mubr.msk.f32.mxu1 %vm339_vm1, %v7904_v40 }
 0x23f   : > { %9929 = vmatprep.mubr.msk.f32.mxu0 %vm339_vm1, %v8401_v42 }
 0x241   : > { %9480 = vmatmul.mubr.msk.f32.gmra.mrb[22].mxu1 %vm339_vm1, %v7905_v48 }
 0x242   : > { %9930 = vmatmul.mubr.msk.f32.gmra.mrb[22].mxu0 %vm339_vm1, %v8402_v50  ;;  %9482 = vmatprep.mubr.msk.f32.mxu1 %vm339_vm1, %v7906_v56 }
 0x243   : > { %9932 = vmatprep.mubr.msk.f32.mxu0 %vm339_vm1, %v8403_v58 }
 0x245   : > { %9483 = vmatmul.mubr.msk.f32.gmra.mrb[24].mxu1 %vm339_vm1, %v7907_v0 }
 0x246   : > { %9933 = vmatmul.mubr.msk.f32.gmra.mrb[24].mxu0 %vm339_vm1, %v8404_v2  ;;  %9485 = vmatprep.mubr.msk.f32.mxu1 %vm339_vm1, %v7908_v7 }
 0x247   : > { %9935 = vmatprep.mubr.msk.f32.mxu0 %vm339_vm1, %v8405_v8 }
 0x249   : > { %9486 = vmatmul.mubr.msk.f32.gmra.mrb[26].mxu1 %vm339_vm1, %v7909_v9 }
 0x24a   : > { %9936 = vmatmul.mubr.msk.f32.gmra.mrb[26].mxu0 %vm339_vm1, %v8406_v13  ;;  %9488 = vmatprep.mubr.msk.f32.mxu1 %vm339_vm1, %v12000_v5 }
 0x24b   : > { %9938 = vmatprep.mubr.msk.f32.mxu0 %vm339_vm1, %v12003_v12 }
 0x24d   : > { %9489 = vmatmul.mubr.msk.f32.gmra.mrb[28].mxu1 %vm339_vm1, %v12014_v11  ;;  %v12432_v11 = vld [vmem:[%s12580_s4] ss:$0 sm:$0xff] }
 0x24e   : > { %9939 = vmatmul.mubr.msk.f32.gmra.mrb[28].mxu0 %vm339_vm1, %v12017_v20  ;;  %9491 = vmatprep.mubr.msk.f32.mxu1 %vm339_vm1, %v7912_v23 }
 0x24f   : > { %9941 = vmatprep.mubr.msk.f32.mxu0 %vm339_vm1, %v8409_v25 }
 0x251   : > { %9492 = vmatmul.mubr.msk.f32.gmra.mrb[30].mxu1 %vm339_vm1, %v7913_v35 }
 0x252   : > { %9942 = vmatmul.mubr.msk.f32.gmra.mrb[30].mxu0 %vm339_vm1, %v8410_v39 }
 0x2e8   : > { %v9448_v5 = vpop.f32.mrb[0].mxu1 }
 0x2e9   : > { %v9898_v12 = vpop.f32.mrb[0].mxu0  ;;  %v3530_v59 = vpop.f32.mrb[1].mxu1 }
 0x2ea   : > { %v9944_v53 = vadd.f32 %v9898_v12, %v9448_v5  ;;  %v7041_v20 = vpop.f32.mrb[1].mxu0 }
 0x2eb   : > { %v9945_v22 = vadd.f32 %v7041_v20, %v3530_v59 }
 0x2ec   : > { %v7240_v10 = vmul.f32 %v9944_v53, %v12432_v11  ;;  %v9451_v41 = vpop.f32.mrb[2].mxu1 }
 0x2ed   : > { %v7239_v16 = vmul.f32 %v9945_v22, %v12432_v11  ;;  %v9901_v43 = vpop.f32.mrb[2].mxu0  ;;  %v3540_v3 = vpop.f32.mrb[3].mxu1 }
 0x2ee   : > { %v7279_v6 = vadd.f32 %v12437_v61, %v7240_v10  ;;  %v9946_v1 = vadd.f32 %v9901_v43, %v9451_v41  ;;  %v7051_v18 = vpop.f32.mrb[3].mxu0 }
 0x2ef   : > { %v7278_v15 = vadd.f32 %v12437_v61, %v7239_v16  ;;  %v9947_v17 = vadd.f32 %v7051_v18, %v3540_v3 }
 0x2f0   : > { %v7311_v24 = vmax.f32 %v7279_v6, 0.0  ;;  %v7242_v31 = vmul.f32 %v9946_v1, %v12432_v11  ;;  %v9454_v30 = vpop.f32.mrb[4].mxu1 }
 0x2f1   : > { %v7310_v33 = vmax.f32 %v7278_v15, 0.0  ;;  %v7241_v47 = vmul.f32 %v9947_v17, %v12432_v11  ;;  %v9904_v36 = vpop.f32.mrb[4].mxu0  ;;  %v3550_v46 = vpop.f32.mrb[5].mxu1 }
 0x2f2   : > { %7344 = vst.msk [vmem:[%s12446_s29 + $0x8] sm:$0xff] %vm7342_vm2, %v7311_v24  ;;  %v7281_v38 = vadd.f32 %v12437_v61, %v7242_v31  ;;  %v9948_v44 = vadd.f32 %v9904_v36, %v9454_v30  ;;  %v7061_v52 = vpop.f32.mrb[5].mxu0 }
 0x2f3   : > { %7343 = vst.msk [vmem:[%s12446_s29] sm:$0xff] %vm7342_vm2, %v7310_v33  ;;  %v7280_v54 = vadd.f32 %v12437_v61, %v7241_v47  ;;  %v9949_v60 = vadd.f32 %v7061_v52, %v3550_v46 }
 0x2f4   : > { %v7313_v62 = vmax.f32 %v7281_v38, 0.0  ;;  %v7244_v19 = vmul.f32 %v9948_v44, %v12432_v11  ;;  %v9457_v27 = vpop.f32.mrb[6].mxu1 }
 0x2f5   : > { %v7312_v4 = vmax.f32 %v7280_v54, 0.0  ;;  %v7243_v21 = vmul.f32 %v9949_v60, %v12432_v11  ;;  %v9907_v29 = vpop.f32.mrb[6].mxu0  ;;  %v3560_v51 = vpop.f32.mrb[7].mxu1 }
 0x2f6   : > { %7346 = vst.msk [vmem:[%s12446_s29 + $0x18] sm:$0xff] %vm7342_vm2, %v7313_v62  ;;  %v7283_v37 = vadd.f32 %v12437_v61, %v7244_v19  ;;  %v9950_v45 = vadd.f32 %v9907_v29, %v9457_v27  ;;  %v7071_v49 = vpop.f32.mrb[7].mxu0 }
 0x2f7   : > { %7345 = vst.msk [vmem:[%s12446_s29 + $0x10] sm:$0xff] %vm7342_vm2, %v7312_v4  ;;  %v7282_v55 = vadd.f32 %v12437_v61, %v7243_v21  ;;  %v9951_v57 = vadd.f32 %v7071_v49, %v3560_v51 }
 0x2f8   : > { %v7315_v63 = vmax.f32 %v7283_v37, 0.0  ;;  %v7246_v14 = vmul.f32 %v9950_v45, %v12432_v11  ;;  %v9460_v32 = vpop.f32.mrb[8].mxu1 }
 0x2f9   : > { %v7314_v26 = vmax.f32 %v7282_v55, 0.0  ;;  %v7245_v28 = vmul.f32 %v9951_v57, %v12432_v11  ;;  %v9910_v34 = vpop.f32.mrb[8].mxu0  ;;  %v3570_v48 = vpop.f32.mrb[9].mxu1 }
 0x2fa   : > { %7348 = vst.msk [vmem:[%s12446_s29 + $0x28] sm:$0xff] %vm7342_vm2, %v7315_v63  ;;  %v7285_v40 = vadd.f32 %v12437_v61, %v7246_v14  ;;  %v9952_v42 = vadd.f32 %v9910_v34, %v9460_v32  ;;  %v7081_v50 = vpop.f32.mrb[9].mxu0 }
 0x2fb   : > { %7347 = vst.msk [vmem:[%s12446_s29 + $0x20] sm:$0xff] %vm7342_vm2, %v7314_v26  ;;  %v7284_v56 = vadd.f32 %v12437_v61, %v7245_v28  ;;  %v9953_v58 = vadd.f32 %v7081_v50, %v3570_v48 }
 0x2fc   : > { %v7317_v0 = vmax.f32 %v7285_v40, 0.0  ;;  %v7248_v2 = vmul.f32 %v9952_v42, %v12432_v11  ;;  %v9463_v9 = vpop.f32.mrb[10].mxu1 }
 0x2fd   : > { %v7316_v7 = vmax.f32 %v7284_v56, 0.0  ;;  %v7247_v8 = vmul.f32 %v9953_v58, %v12432_v11  ;;  %v9913_v13 = vpop.f32.mrb[10].mxu0  ;;  %v3580_v35 = vpop.f32.mrb[11].mxu1 }
 0x2fe   : > { %7350 = vst.msk [vmem:[%s12446_s29 + $0x38] sm:$0xff] %vm7342_vm2, %v7317_v0  ;;  %v7287_v23 = vadd.f32 %v12437_v61, %v7248_v2  ;;  %v9954_v25 = vadd.f32 %v9913_v13, %v9463_v9  ;;  %v7091_v39 = vpop.f32.mrb[11].mxu0 }
 0x2ff   : > { %7349 = vst.msk [vmem:[%s12446_s29 + $0x30] sm:$0xff] %vm7342_vm2, %v7316_v7  ;;  %v7286_v5 = vadd.f32 %v12437_v61, %v7247_v8  ;;  %v9955_v12 = vadd.f32 %v7091_v39, %v3580_v35 }
 0x300   : > { %v7319_v53 = vmax.f32 %v7287_v23, 0.0  ;;  %v7250_v59 = vmul.f32 %v9954_v25, %v12432_v11  ;;  %v9466_v10 = vpop.f32.mrb[12].mxu1 }
 0x301   : > { %v7318_v20 = vmax.f32 %v7286_v5, 0.0  ;;  %v7249_v22 = vmul.f32 %v9955_v12, %v12432_v11  ;;  %v9916_v16 = vpop.f32.mrb[12].mxu0  ;;  %v3590_v6 = vpop.f32.mrb[13].mxu1 }
 0x302   : > { %7352 = vst.msk [vmem:[%s12446_s29 + $0x48] sm:$0xff] %vm7342_vm2, %v7319_v53  ;;  %v7289_v41 = vadd.f32 %v12437_v61, %v7250_v59  ;;  %v9956_v43 = vadd.f32 %v9916_v16, %v9466_v10  ;;  %v7101_v1 = vpop.f32.mrb[13].mxu0 }
 0x303   : > { %7351 = vst.msk [vmem:[%s12446_s29 + $0x40] sm:$0xff] %vm7342_vm2, %v7318_v20  ;;  %v7288_v3 = vadd.f32 %v12437_v61, %v7249_v22  ;;  %v9957_v18 = vadd.f32 %v7101_v1, %v3590_v6 }
 0x304   : > { %v7321_v15 = vmax.f32 %v7289_v41, 0.0  ;;  %v7252_v17 = vmul.f32 %v9956_v43, %v12432_v11  ;;  %v9469_v33 = vpop.f32.mrb[14].mxu1 }
 0x305   : > { %v7320_v24 = vmax.f32 %v7288_v3, 0.0  ;;  %v7251_v31 = vmul.f32 %v9957_v18, %v12432_v11  ;;  %v9919_v47 = vpop.f32.mrb[14].mxu0  ;;  %v3600_v38 = vpop.f32.mrb[15].mxu1 }
 0x306   : > { %7354 = vst.msk [vmem:[%s12446_s29 + $0x58] sm:$0xff] %vm7342_vm2, %v7321_v15  ;;  %v7291_v30 = vadd.f32 %v12437_v61, %v7252_v17  ;;  %v9958_v36 = vadd.f32 %v9919_v47, %v9469_v33  ;;  %v7111_v44 = vpop.f32.mrb[15].mxu0 }
 0x307   : > { %7353 = vst.msk [vmem:[%s12446_s29 + $0x50] sm:$0xff] %vm7342_vm2, %v7320_v24  ;;  %v7290_v46 = vadd.f32 %v12437_v61, %v7251_v31  ;;  %v9959_v52 = vadd.f32 %v7111_v44, %v3600_v38 }
 0x308   : > { %v7323_v54 = vmax.f32 %v7291_v30, 0.0  ;;  %v7254_v60 = vmul.f32 %v9958_v36, %v12432_v11  ;;  %v9472_v4 = vpop.f32.mrb[16].mxu1 }
 0x309   : > { %v7322_v62 = vmax.f32 %v7290_v46, 0.0  ;;  %v7253_v19 = vmul.f32 %v9959_v52, %v12432_v11  ;;  %v9922_v21 = vpop.f32.mrb[16].mxu0  ;;  %v3610_v37 = vpop.f32.mrb[17].mxu1 }
 0x30a   : > { %7356 = vst.msk [vmem:[%s12446_s29 + $0x68] sm:$0xff] %vm7342_vm2, %v7323_v54  ;;  %v7293_v27 = vadd.f32 %v12437_v61, %v7254_v60  ;;  %v9960_v29 = vadd.f32 %v9922_v21, %v9472_v4  ;;  %v7121_v45 = vpop.f32.mrb[17].mxu0 }
 0x30b   : > { %7355 = vst.msk [vmem:[%s12446_s29 + $0x60] sm:$0xff] %vm7342_vm2, %v7322_v62  ;;  %v7292_v51 = vadd.f32 %v12437_v61, %v7253_v19  ;;  %v9961_v49 = vadd.f32 %v7121_v45, %v3610_v37 }
 0x30c   : > { %v7325_v55 = vmax.f32 %v7293_v27, 0.0  ;;  %v7256_v57 = vmul.f32 %v9960_v29, %v12432_v11  ;;  %v9475_v26 = vpop.f32.mrb[18].mxu1 }
 0x30d   : > { %v7324_v63 = vmax.f32 %v7292_v51, 0.0  ;;  %v7255_v14 = vmul.f32 %v9961_v49, %v12432_v11  ;;  %v9925_v28 = vpop.f32.mrb[18].mxu0  ;;  %v3620_v40 = vpop.f32.mrb[19].mxu1 }
 0x30e   : > { %7358 = vst.msk [vmem:[%s12446_s29 + $0x78] sm:$0xff] %vm7342_vm2, %v7325_v55  ;;  %v7295_v32 = vadd.f32 %v12437_v61, %v7256_v57  ;;  %v9962_v34 = vadd.f32 %v9925_v28, %v9475_v26  ;;  %v7131_v42 = vpop.f32.mrb[19].mxu0 }
 0x30f   : > { %7357 = vst.msk [vmem:[%s12446_s29 + $0x70] sm:$0xff] %vm7342_vm2, %v7324_v63  ;;  %v7294_v48 = vadd.f32 %v12437_v61, %v7255_v14  ;;  %v9963_v50 = vadd.f32 %v7131_v42, %v3620_v40 }
 0x310   : > { %v7327_v56 = vmax.f32 %v7295_v32, 0.0  ;;  %v7258_v58 = vmul.f32 %v9962_v34, %v12432_v11  ;;  %v9478_v7 = vpop.f32.mrb[20].mxu1 }
 0x311   : > { %v7326_v0 = vmax.f32 %v7294_v48, 0.0  ;;  %v7257_v2 = vmul.f32 %v9963_v50, %v12432_v11  ;;  %v9928_v8 = vpop.f32.mrb[20].mxu0  ;;  %v3630_v23 = vpop.f32.mrb[21].mxu1 }
 0x312   : > { %7360 = vst.msk [vmem:[%s12446_s29 + $0x88] sm:$0xff] %vm7342_vm2, %v7327_v56  ;;  %v7297_v9 = vadd.f32 %v12437_v61, %v7258_v58  ;;  %v9964_v13 = vadd.f32 %v9928_v8, %v9478_v7  ;;  %v7141_v25 = vpop.f32.mrb[21].mxu0 }
 0x313   : > { %7359 = vst.msk [vmem:[%s12446_s29 + $0x80] sm:$0xff] %vm7342_vm2, %v7326_v0  ;;  %v7296_v35 = vadd.f32 %v12437_v61, %v7257_v2  ;;  %v9965_v39 = vadd.f32 %v7141_v25, %v3630_v23 }
 0x314   : > { %v7329_v5 = vmax.f32 %v7297_v9, 0.0  ;;  %v7260_v12 = vmul.f32 %v9964_v13, %v12432_v11  ;;  %v9481_v20 = vpop.f32.mrb[22].mxu1 }
 0x315   : > { %v7328_v53 = vmax.f32 %v7296_v35, 0.0  ;;  %v7259_v59 = vmul.f32 %v9965_v39, %v12432_v11  ;;  %v9931_v22 = vpop.f32.mrb[22].mxu0  ;;  %v3640_v41 = vpop.f32.mrb[23].mxu1 }
 0x316   : > { %7362 = vst.msk [vmem:[%s12446_s29 + $0x98] sm:$0xff] %vm7342_vm2, %v7329_v5  ;;  %v7299_v10 = vadd.f32 %v12437_v61, %v7260_v12  ;;  %v9966_v16 = vadd.f32 %v9931_v22, %v9481_v20  ;;  %v7151_v43 = vpop.f32.mrb[23].mxu0 }
 0x317   : > { %7361 = vst.msk [vmem:[%s12446_s29 + $0x90] sm:$0xff] %vm7342_vm2, %v7328_v53  ;;  %v7298_v6 = vadd.f32 %v12437_v61, %v7259_v59  ;;  %v9967_v1 = vadd.f32 %v7151_v43, %v3640_v41 }
 0x318   : > { %v7331_v3 = vmax.f32 %v7299_v10, 0.0  ;;  %v7262_v18 = vmul.f32 %v9966_v16, %v12432_v11  ;;  %v9484_v24 = vpop.f32.mrb[24].mxu1 }
 0x319   : > { %v7330_v15 = vmax.f32 %v7298_v6, 0.0  ;;  %v7261_v17 = vmul.f32 %v9967_v1, %v12432_v11  ;;  %v9934_v31 = vpop.f32.mrb[24].mxu0  ;;  %v3650_v30 = vpop.f32.mrb[25].mxu1 }
 0x31a   : > { %7364 = vst.msk [vmem:[%s12446_s29 + $0xa8] sm:$0xff] %vm7342_vm2, %v7331_v3  ;;  %v7301_v33 = vadd.f32 %v12437_v61, %v7262_v18  ;;  %v9968_v47 = vadd.f32 %v9934_v31, %v9484_v24  ;;  %v7161_v36 = vpop.f32.mrb[25].mxu0 }
 0x31b   : > { %7363 = vst.msk [vmem:[%s12446_s29 + $0xa0] sm:$0xff] %vm7342_vm2, %v7330_v15  ;;  %v7300_v38 = vadd.f32 %v12437_v61, %v7261_v17  ;;  %v9969_v44 = vadd.f32 %v7161_v36, %v3650_v30 }
 0x31c   : > { %v7333_v46 = vmax.f32 %v7301_v33, 0.0  ;;  %v7264_v52 = vmul.f32 %v9968_v47, %v12432_v11  ;;  %v9487_v62 = vpop.f32.mrb[26].mxu1 }
 0x31d   : > { %v7332_v54 = vmax.f32 %v7300_v38, 0.0  ;;  %v7263_v60 = vmul.f32 %v9969_v44, %v12432_v11  ;;  %v9937_v19 = vpop.f32.mrb[26].mxu0  ;;  %v3660_v27 = vpop.f32.mrb[27].mxu1 }
 0x31e   : > { %7366 = vst.msk [vmem:[%s12446_s29 + $0xb8] sm:$0xff] %vm7342_vm2, %v7333_v46  ;;  %v7303_v4 = vadd.f32 %v12437_v61, %v7264_v52  ;;  %v9970_v21 = vadd.f32 %v9937_v19, %v9487_v62  ;;  %v7171_v29 = vpop.f32.mrb[27].mxu0 }
 0x31f   : > { %7365 = vst.msk [vmem:[%s12446_s29 + $0xb0] sm:$0xff] %vm7342_vm2, %v7332_v54  ;;  %v7302_v37 = vadd.f32 %v12437_v61, %v7263_v60  ;;  %v9971_v45 = vadd.f32 %v7171_v29, %v3660_v27 }
 0x320   : > { %v7335_v51 = vmax.f32 %v7303_v4, 0.0  ;;  %v7266_v49 = vmul.f32 %v9970_v21, %v12432_v11  ;;  %v9490_v63 = vpop.f32.mrb[28].mxu1 }
 0x321   : > { %v7334_v55 = vmax.f32 %v7302_v37, 0.0  ;;  %v7265_v57 = vmul.f32 %v9971_v45, %v12432_v11  ;;  %v9940_v14 = vpop.f32.mrb[28].mxu0  ;;  %v3670_v32 = vpop.f32.mrb[29].mxu1 }
 0x322   : > { %7368 = vst.msk [vmem:[%s12446_s29 + $0xc8] sm:$0xff] %vm7342_vm2, %v7335_v51  ;;  %v7305_v26 = vadd.f32 %v12437_v61, %v7266_v49  ;;  %v9972_v28 = vadd.f32 %v9940_v14, %v9490_v63  ;;  %v7181_v34 = vpop.f32.mrb[29].mxu0 }
 0x323   : > { %7367 = vst.msk [vmem:[%s12446_s29 + $0xc0] sm:$0xff] %vm7342_vm2, %v7334_v55  ;;  %v7304_v40 = vadd.f32 %v12437_v61, %v7265_v57  ;;  %v9973_v42 = vadd.f32 %v7181_v34, %v3670_v32 }
 0x324   : > { %v7337_v48 = vmax.f32 %v7305_v26, 0.0  ;;  %v7268_v50 = vmul.f32 %v9972_v28, %v12432_v11  ;;  %v9493_v0 = vpop.f32.mrb[30].mxu1 }
 0x325   : > { %v7336_v56 = vmax.f32 %v7304_v40, 0.0  ;;  %v7267_v58 = vmul.f32 %v9973_v42, %v12432_v11  ;;  %v9943_v2 = vpop.f32.mrb[30].mxu0  ;;  %v3680_v9 = vpop.f32.mrb[31].mxu1 }
 0x326   : > { %7370 = vst.msk [vmem:[%s12446_s29 + $0xd8] sm:$0xff] %vm7342_vm2, %v7337_v48  ;;  %v7307_v7 = vadd.f32 %v12437_v61, %v7268_v50  ;;  %v9974_v8 = vadd.f32 %v9943_v2, %v9493_v0  ;;  %v7191_v13 = vpop.f32.mrb[31].mxu0 }
 0x327   : > { %7369 = vst.msk [vmem:[%s12446_s29 + $0xd0] sm:$0xff] %vm7342_vm2, %v7336_v56  ;;  %v7306_v23 = vadd.f32 %v12437_v61, %v7267_v58  ;;  %v9975_v25 = vadd.f32 %v7191_v13, %v3680_v9 }
 0x328   : > { %v7339_v35 = vmax.f32 %v7307_v7, 0.0  ;;  %v7270_v39 = vmul.f32 %v9974_v8, %v12432_v11 }
 0x329   : > { %v7338_v5 = vmax.f32 %v7306_v23, 0.0  ;;  %v7269_v12 = vmul.f32 %v9975_v25, %v12432_v11 }
 0x32a   : > { %7372 = vst.msk [vmem:[%s12446_s29 + $0xe8] sm:$0xff] %vm7342_vm2, %v7339_v35  ;;  %v7309_v53 = vadd.f32 %v12437_v61, %v7270_v39 }
 0x32b   : > { %7371 = vst.msk [vmem:[%s12446_s29 + $0xe0] sm:$0xff] %vm7342_vm2, %v7338_v5  ;;  %v7308_v59 = vadd.f32 %v12437_v61, %v7269_v12 }
 0x32c   : > { %v7341_v20 = vmax.f32 %v7309_v53, 0.0 }
 0x32d   : > { %v7340_v22 = vmax.f32 %v7308_v59, 0.0 }
 0x32e   : > { %7374 = vst.msk [vmem:[%s12446_s29 + $0xf8] sm:$0xff] %vm7342_vm2, %v7341_v20 }
 0x32f   : > { %7373 = vst.msk [vmem:[%s12446_s29 + $0xf0] sm:$0xff] %vm7342_vm2, %v7340_v22 }
 0x330 PF: > { %s16_s21 = sadd.s32 1, %s10503_s21  }
 0x331   : > { %p13_p4 = scmp.ge.s32.totalorder %s16_s21, 4  }
 0x333   :  { %15 = sbr.rel (!%p13_p4) target bundleno = 1 (0x1), region = 97 }

</bundles_post_ra>
